<compile_context>
chip_gen: v7x
topology: tpu7x:2x2x1
jax: 0.10.0
libtpu: 0.0.40
codegen_flags: <defaults>
</compile_context>

<pallas_src>
import functools

import jax
import jax.numpy as jnp
import numpy as np
from jax.experimental import pallas as pl
from jax.experimental.pallas import tpu as pltpu

GROUP_SIZE = 128     # AWQ q_group_size
PACK = 8             # int4 values packed per int32

VOCAB = 256
HIDDEN = 256
INTER = 256
NUM_HEADS = 2
BATCH = 2
SEQ = 8


def _round_up(x, m):
    return (x + m - 1) // m * m


# ----------------------------- Pallas kernel --------------------------------
def _awq_gemm_kernel(x_ref, qw_ref, s_ref, zs_ref, b_ref, o_ref,
                     acc_ref, w_ref, *, gpb):
    kk = pl.program_id(2)

    @pl.when(kk == 0)
    def _init():
        acc_ref[...] = jnp.zeros_like(acc_ref)

    sub = GROUP_SIZE // PACK          # packed int32 rows per quant group (16)

    # ---- unpack all gpb quant groups into the bf16 weight scratch with the
    #      per-group scale folded in (natural K order, static slice stores only;
    #      shift/mask/mul are int32/f32, v5e-safe).
    for g in range(gpb):                                 # statically unrolled
        qw = qw_ref[pl.ds(g * sub, sub), :]              # [16, tn] i32
        s_g = s_ref[pl.ds(g, 1), :]                      # [1, tn] f32
        for j in range(PACK):
            nib = ((qw >> (4 * j)) & 0xF).astype(jnp.float32)   # 0..15 exact
            w_ref[pl.ds(g * GROUP_SIZE + j * sub, sub), :] = (
                nib * s_g).astype(w_ref.dtype)

    # ---- one fused K=tkb bf16 matmul on the MXU (full 256-deep utilization on
    #      v6e/v7x), f32 accumulate.
    xb = x_ref[...].astype(jnp.bfloat16)                 # cast in-kernel (no wrapper pass)
    p = jnp.dot(xb, w_ref[...], preferred_element_type=jnp.float32)

    # ---- zero-point correction on the [tm, tn] accumulator:
    #      acc += p - sum_g rowsum(x_g) * (z_g * s_g)
    corr = None
    for g in range(gpb):
        xs_g = jnp.sum(
            xb[:, g * GROUP_SIZE:(g + 1) * GROUP_SIZE].astype(jnp.float32),
            axis=1, keepdims=True)                       # [tm, 1] f32
        t = xs_g * zs_ref[pl.ds(g, 1), :]                # [tm, tn]
        corr = t if corr is None else corr + t
    acc_ref[...] += p - corr

    @pl.when(kk == pl.num_programs(2) - 1)
    def _fin():
        o_ref[...] = (acc_ref[...] + b_ref[...]).astype(o_ref.dtype)


def _pick_tn(N, M):
    """Lane-dense output tile; prefer >= 2 j-tiles (v7x megacore)."""
    cands = (1024, 512, 256, 128) if M <= 64 else (512, 256, 128)
    for c in cands:
        if N % c == 0 and N // c >= 2:
            return c
    for c in (1024, 512, 256, 128):
        if N % c == 0:
            return c
    raise ValueError("N must be a multiple of 128")


def awq_linear(x, qweight, scales, zscales, bias, *, tm_cap=256):
    """y = x @ dequant(qweight; zeros, scales) + bias; dequant+GEMM run in Pallas."""
    M, K = x.shape
    n_groups, N = scales.shape
    assert K == n_groups * GROUP_SIZE and N % 128 == 0
    out_dtype = x.dtype

    # --- groups per grid step (tkb = gpb * 128) -------------------------------
    if n_groups <= 8:
        gpb = n_groups                 # whole K depth in a single fused matmul
    elif n_groups % 8 == 0:
        gpb = 8                        # tkb = 1024: fat steps for weight-stream-bound decode
    else:
        # TODO(synk): pad K / n_groups so the per-step scale BlockSpec stays legal.
        raise NotImplementedError("n_groups must be <= 8 or a multiple of 8")
    tkb = gpb * GROUP_SIZE

    tn = _pick_tn(N, M)

    # token (M) tiling: pad to a sublane-friendly multiple; cap so prefill-scale M
    # never blows the VMEM budget (v7x has only 64 MiB physical).
    tm = min(_round_up(M, 16), tm_cap)
    m_pad = _round_up(M, tm)
    xp = x if m_pad == M else jnp.pad(x, ((0, m_pad - M), (0, 0)))

    grid = (m_pad // tm, N // tn, n_groups // gpb)

    # --- VMEM budget from the actual double-buffered footprint (+30% headroom) --
    xsz = x.dtype.itemsize
    osz = jnp.dtype(out_dtype).itemsize
    blk_in = tm * tkb * xsz + (tkb // PACK) * tn * 4 + 2 * (gpb * tn * 4) + tn * 4
    blk_out = tm * tn * osz
    scratch = tm * tn * 4 + tkb * tn * 2
    vmem_limit = int(min(112 * 2**20,
                         max(4 * 2**20, round(1.3 * (2 * blk_in + 2 * blk_out + scratch)))))

    cost = pl.CostEstimate(
        flops=2 * m_pad * N * K,
        transcendentals=0,
        bytes_accessed=(m_pad * K * xsz + K * N // 2
                        + 2 * n_groups * N * 4 + N * 4 + m_pad * N * osz))

    out = pl.pallas_call(
        functools.partial(_awq_gemm_kernel, gpb=gpb),
        out_shape=jax.ShapeDtypeStruct((m_pad, N), out_dtype),
        grid_spec=pltpu.PrefetchScalarGridSpec(
            num_scalar_prefetch=0,
            grid=grid,
            in_specs=[
                pl.BlockSpec((tm, tkb), lambda i, j, k: (i, k)),          # x
                pl.BlockSpec((tkb // PACK, tn), lambda i, j, k: (k, j)),  # packed int4
                pl.BlockSpec((gpb, tn), lambda i, j, k: (k, j)),          # scales (per step)
                pl.BlockSpec((gpb, tn), lambda i, j, k: (k, j)),          # z*s   (per step)
                pl.BlockSpec((1, tn), lambda i, j, k: (0, j)),            # bias
            ],
            out_specs=pl.BlockSpec((tm, tn), lambda i, j, k: (i, j)),
            scratch_shapes=[pltpu.VMEM((tm, tn), jnp.float32),            # f32 accumulator
                            pltpu.VMEM((tkb, tn), jnp.bfloat16)],         # scaled weight tile
        ),
        compiler_params=pltpu.CompilerParams(
            dimension_semantics=("parallel", "parallel", "arbitrary"),
            vmem_limit_bytes=vmem_limit),
        cost_estimate=cost,
    )(xp, qweight, scales, zscales, bias)

    if m_pad != M:
        out = out[:M]
    return out


# ------------------------- AWQ quantization (setup) --------------------------
def quantize_awq(w):
    """AWQ-style asymmetric per-group (along K) 4-bit quantization of W[K, N]."""
    K, N = w.shape
    g = GROUP_SIZE
    wg = w.reshape(K // g, g, N)
    wmax = wg.max(axis=1)
    wmin = wg.min(axis=1)
    scales = jnp.maximum((wmax - wmin) / 15.0, 1e-8)
    zeros = jnp.clip(jnp.round(-wmin / scales), 0, 15)
    q = jnp.clip(jnp.round(wg / scales[:, None, :]) + zeros[:, None, :], 0, 15)
    return q.reshape(K, N).astype(jnp.int32), zeros.astype(jnp.int32), scales.astype(jnp.float32)


def pack_int4(q):
    """Pack int4 [K,N] -> int32 [K//8, N].  Within each GROUP_SIZE-row block,
    local row j*(GROUP_SIZE//8)+i goes to nibble j of packed local row i."""
    K, N = q.shape
    g = GROUP_SIZE
    qb = q.reshape(K // g, PACK, g // PACK, N)
    packed = jnp.zeros((K // g, g // PACK, N), jnp.int32)
    for j in range(PACK):
        packed = packed | (qb[:, j] << (4 * j))
    return packed.reshape(K // PACK, N)


def make_awq_linear(key, K, N, w_scale=0.02):
    kw, kb = jax.random.split(key)
    w = jax.random.normal(kw, (K, N), jnp.float32) * w_scale
    b = jax.random.normal(kb, (1, N), jnp.float32) * 0.01
    q, zeros, scales = quantize_awq(w)
    zscales = (zeros.astype(jnp.float32) * scales).astype(jnp.float32)  # precomputed z*s
    return dict(qweight=pack_int4(q), qzeros=zeros, scales=scales,
                zscales=zscales, bias=b, q_raw=q)


def apply_awq(p, x):
    return awq_linear(x, p["qweight"], p["scales"], p["zscales"], p["bias"])


def apply_ref(p, x):  # plain-JAX reference (dequant then matmul, full f32)
    z = jnp.repeat(p["qzeros"], GROUP_SIZE, axis=0).astype(jnp.float32)
    s = jnp.repeat(p["scales"], GROUP_SIZE, axis=0)
    w = (p["q_raw"].astype(jnp.float32) - z) * s
    return x @ w + p["bias"]


# ----------------------- tiny causal-LM forward (glue) -----------------------
def rms_norm(x, w, eps=1e-6):
    var = jnp.mean(x * x, axis=-1, keepdims=True)
    return x * jax.lax.rsqrt(var + eps) * w


def attention(q, k, v):
    B, S, H = q.shape
    hd = H // NUM_HEADS

    def split(t):
        return t.reshape(B, S, NUM_HEADS, hd).transpose(0, 2, 1, 3)

    q, k, v = split(q), split(k), split(v)
    att = jnp.einsum("bhqd,bhkd->bhqk", q, k) / jnp.sqrt(jnp.float32(hd))
    mask = jnp.tril(jnp.ones((S, S), bool))
    att = jnp.where(mask[None, None], att, -1e30)
    att = jax.nn.softmax(att, axis=-1)
    o = jnp.einsum("bhqk,bhkd->bhqd", att, v)
    return o.transpose(0, 2, 1, 3).reshape(B, S, H)


def causal_lm_forward(params, input_ids, linear_fn):
    B, S = input_ids.shape
    x = params["embed"][input_ids]                              # [B, S, H]
    # attention block (QKV fused into one wide-N quantized linear)
    h = rms_norm(x, params["ln1_w"]).reshape(B * S, HIDDEN)
    qkv = linear_fn(params["qkv_proj"], h)                      # [M, 3H]
    q = qkv[:, :HIDDEN].reshape(B, S, HIDDEN)
    k = qkv[:, HIDDEN:2 * HIDDEN].reshape(B, S, HIDDEN)
    v = qkv[:, 2 * HIDDEN:].reshape(B, S, HIDDEN)
    a = attention(q, k, v).reshape(B * S, HIDDEN)
    x = x + linear_fn(params["o_proj"], a).reshape(B, S, HIDDEN)
    # MLP block (gate+up fused into one wide-N quantized linear)
    h = rms_norm(x, params["ln2_w"]).reshape(B * S, HIDDEN)
    gu = linear_fn(params["gate_up_proj"], h)                   # [M, 2*INTER]
    g, u = gu[:, :INTER], gu[:, INTER:]
    d = linear_fn(params["down_proj"], jax.nn.silu(g) * u).reshape(B, S, HIDDEN)
    x = x + d
    # head
    h = rms_norm(x, params["lnf_w"]).reshape(B * S, HIDDEN)
    return linear_fn(params["lm_head"], h).reshape(B, S, VOCAB)

# TODO(synk): quantize()/pack()/save_quantized()/from_pretrained()/generate() are
# host-side HF/checkpoint plumbing with no device-kernel equivalent; omitted.


if __name__ == "__main__":
    key = jax.random.PRNGKey(0)
    keys = jax.random.split(key, 10)
    params = dict(
        embed=jax.random.normal(keys[0], (VOCAB, HIDDEN), jnp.float32) * 0.02,
        ln1_w=jnp.ones((HIDDEN,), jnp.float32),
        ln2_w=jnp.ones((HIDDEN,), jnp.float32),
        lnf_w=jnp.ones((HIDDEN,), jnp.float32),
        qkv_proj=make_awq_linear(keys[1], HIDDEN, 3 * HIDDEN),
        o_proj=make_awq_linear(keys[4], HIDDEN, HIDDEN),
        gate_up_proj=make_awq_linear(keys[5], HIDDEN, 2 * INTER),
        down_proj=make_awq_linear(keys[7], INTER, HIDDEN),
        lm_head=make_awq_linear(keys[8], HIDDEN, VOCAB),
    )
    input_ids = jax.random.randint(keys[9], (BATCH, SEQ), 0, VOCAB)

    fwd = jax.jit(lambda p, ids: causal_lm_forward(p, ids, apply_awq))
    logits = jax.block_until_ready(fwd(params, input_ids))

    ref = causal_lm_forward(params, input_ids, apply_ref)
    np.testing.assert_allclose(np.asarray(logits), np.asarray(ref), rtol=2.5e-2, atol=2.5e-2)
    print("KERNEL_OK")
</pallas_src>

<mosaic_0001>
module attributes {stable_mosaic.version = 11 : i64} {
  func.func @_awq_gemm_kernel(%arg0: i32, %arg1: i32, %arg2: i32, %arg3: memref<16x256xf32, #tpu.memory_space<vmem>>, %arg4: memref<32x128xi32, #tpu.memory_space<vmem>>, %arg5: memref<2x128xf32, #tpu.memory_space<vmem>>, %arg6: memref<2x128xf32, #tpu.memory_space<vmem>>, %arg7: memref<1x128xf32, #tpu.memory_space<vmem>>, %arg8: memref<16x128xf32, #tpu.memory_space<vmem>>, %arg9: memref<16x128xf32, #tpu.memory_space<vmem>>, %arg10: memref<256x128xbf16, #tpu.memory_space<vmem>>) attributes {dimension_semantics = [#tpu.dimension_semantics<parallel>, #tpu.dimension_semantics<parallel>, #tpu.dimension_semantics<arbitrary>], iteration_bounds = array<i64: 1, 2, 1>, scalar_prefetch = 0 : i64, scratch_operands = 2 : i64, tpu.core_type = #tpu.core_type<tc>, window_params = [{transform_indices = @transform_0, window_bounds = array<i64: 16, 256>}, {transform_indices = @transform_1, window_bounds = array<i64: 32, 128>}, {transform_indices = @transform_2, window_bounds = array<i64: 2, 128>}, {transform_indices = @transform_3, window_bounds = array<i64: 2, 128>}, {transform_indices = @transform_4, window_bounds = array<i64: 1, 128>}, {transform_indices = @transform_5, window_bounds = array<i64: 16, 128>}]} {
    %c0_i32 = arith.constant 0 : i32
    %0 = arith.cmpi eq, %arg2, %c0_i32 : i32
    %1 = arith.extui %0 : i1 to i32
    %c0_i32_0 = arith.constant 0 : i32
    %2 = arith.cmpi ne, %1, %c0_i32_0 : i32
    scf.if %2 {
      %cst_64 = arith.constant 0.000000e+00 : f32
      %179 = vector.broadcast %cst_64 : f32 to vector<16x128xf32>
      %c0_65 = arith.constant 0 : index
      %c0_66 = arith.constant 0 : index
      %180 = vector.load %arg9[%c0_65, %c0_66] : memref<16x128xf32, #tpu.memory_space<vmem>>, vector<16x128xf32>
      tpu.vector_store %arg9[%c0_65, %c0_66], %179 {strides = array<i32>} : memref<16x128xf32, #tpu.memory_space<vmem>>, vector<16x128xf32>,
    } else {
    }
    %c0 = arith.constant 0 : index
    %c0_1 = arith.constant 0 : index
    %3 = vector.load %arg4[%c0, %c0_1] : memref<32x128xi32, #tpu.memory_space<vmem>>, vector<16x128xi32>
    %c0_2 = arith.constant 0 : index
    %c0_3 = arith.constant 0 : index
    %4 = vector.load %arg5[%c0_2, %c0_3] : memref<2x128xf32, #tpu.memory_space<vmem>>, vector<1x128xf32>
    %c0_i32_4 = arith.constant 0 : i32
    %5 = vector.broadcast %c0_i32_4 : i32 to vector<16x128xi32>
    %6 = arith.shrsi %3, %5 : vector<16x128xi32>
    %c15_i32 = arith.constant 15 : i32
    %7 = vector.broadcast %c15_i32 : i32 to vector<16x128xi32>
    %8 = arith.andi %6, %7 : vector<16x128xi32>
    %9 = arith.sitofp %8 : vector<16x128xi32> to vector<16x128xf32>
    %10 = vector.broadcast %4 : vector<1x128xf32> to vector<16x128xf32>
    %11 = arith.mulf %9, %10 : vector<16x128xf32>
    %12 = arith.truncf %11 : vector<16x128xf32> to vector<16x128xbf16>
    %c0_5 = arith.constant 0 : index
    %c0_6 = arith.constant 0 : index
    %13 = vector.load %arg10[%c0_5, %c0_6] : memref<256x128xbf16, #tpu.memory_space<vmem>>, vector<16x128xbf16>
    tpu.vector_store %arg10[%c0_5, %c0_6], %12 {strides = array<i32>} : memref<256x128xbf16, #tpu.memory_space<vmem>>, vector<16x128xbf16>,
    %c4_i32 = arith.constant 4 : i32
    %14 = vector.broadcast %c4_i32 : i32 to vector<16x128xi32>
    %15 = arith.shrsi %3, %14 : vector<16x128xi32>
    %c15_i32_7 = arith.constant 15 : i32
    %16 = vector.broadcast %c15_i32_7 : i32 to vector<16x128xi32>
    %17 = arith.andi %15, %16 : vector<16x128xi32>
    %18 = arith.sitofp %17 : vector<16x128xi32> to vector<16x128xf32>
    %19 = vector.broadcast %4 : vector<1x128xf32> to vector<16x128xf32>
    %20 = arith.mulf %18, %19 : vector<16x128xf32>
    %21 = arith.truncf %20 : vector<16x128xf32> to vector<16x128xbf16>
    %c16 = arith.constant 16 : index
    %c0_8 = arith.constant 0 : index
    %22 = vector.load %arg10[%c16, %c0_8] : memref<256x128xbf16, #tpu.memory_space<vmem>>, vector<16x128xbf16>
    tpu.vector_store %arg10[%c16, %c0_8], %21 {strides = array<i32>} : memref<256x128xbf16, #tpu.memory_space<vmem>>, vector<16x128xbf16>,
    %c8_i32 = arith.constant 8 : i32
    %23 = vector.broadcast %c8_i32 : i32 to vector<16x128xi32>
    %24 = arith.shrsi %3, %23 : vector<16x128xi32>
    %c15_i32_9 = arith.constant 15 : i32
    %25 = vector.broadcast %c15_i32_9 : i32 to vector<16x128xi32>
    %26 = arith.andi %24, %25 : vector<16x128xi32>
    %27 = arith.sitofp %26 : vector<16x128xi32> to vector<16x128xf32>
    %28 = vector.broadcast %4 : vector<1x128xf32> to vector<16x128xf32>
    %29 = arith.mulf %27, %28 : vector<16x128xf32>
    %30 = arith.truncf %29 : vector<16x128xf32> to vector<16x128xbf16>
    %c32 = arith.constant 32 : index
    %c0_10 = arith.constant 0 : index
    %31 = vector.load %arg10[%c32, %c0_10] : memref<256x128xbf16, #tpu.memory_space<vmem>>, vector<16x128xbf16>
    tpu.vector_store %arg10[%c32, %c0_10], %30 {strides = array<i32>} : memref<256x128xbf16, #tpu.memory_space<vmem>>, vector<16x128xbf16>,
    %c12_i32 = arith.constant 12 : i32
    %32 = vector.broadcast %c12_i32 : i32 to vector<16x128xi32>
    %33 = arith.shrsi %3, %32 : vector<16x128xi32>
    %c15_i32_11 = arith.constant 15 : i32
    %34 = vector.broadcast %c15_i32_11 : i32 to vector<16x128xi32>
    %35 = arith.andi %33, %34 : vector<16x128xi32>
    %36 = arith.sitofp %35 : vector<16x128xi32> to vector<16x128xf32>
    %37 = vector.broadcast %4 : vector<1x128xf32> to vector<16x128xf32>
    %38 = arith.mulf %36, %37 : vector<16x128xf32>
    %39 = arith.truncf %38 : vector<16x128xf32> to vector<16x128xbf16>
    %c48 = arith.constant 48 : index
    %c0_12 = arith.constant 0 : index
    %40 = vector.load %arg10[%c48, %c0_12] : memref<256x128xbf16, #tpu.memory_space<vmem>>, vector<16x128xbf16>
    tpu.vector_store %arg10[%c48, %c0_12], %39 {strides = array<i32>} : memref<256x128xbf16, #tpu.memory_space<vmem>>, vector<16x128xbf16>,
    %c16_i32 = arith.constant 16 : i32
    %41 = vector.broadcast %c16_i32 : i32 to vector<16x128xi32>
    %42 = arith.shrsi %3, %41 : vector<16x128xi32>
    %c15_i32_13 = arith.constant 15 : i32
    %43 = vector.broadcast %c15_i32_13 : i32 to vector<16x128xi32>
    %44 = arith.andi %42, %43 : vector<16x128xi32>
    %45 = arith.sitofp %44 : vector<16x128xi32> to vector<16x128xf32>
    %46 = vector.broadcast %4 : vector<1x128xf32> to vector<16x128xf32>
    %47 = arith.mulf %45, %46 : vector<16x128xf32>
    %48 = arith.truncf %47 : vector<16x128xf32> to vector<16x128xbf16>
    %c64 = arith.constant 64 : index
    %c0_14 = arith.constant 0 : index
    %49 = vector.load %arg10[%c64, %c0_14] : memref<256x128xbf16, #tpu.memory_space<vmem>>, vector<16x128xbf16>
    tpu.vector_store %arg10[%c64, %c0_14], %48 {strides = array<i32>} : memref<256x128xbf16, #tpu.memory_space<vmem>>, vector<16x128xbf16>,
    %c20_i32 = arith.constant 20 : i32
    %50 = vector.broadcast %c20_i32 : i32 to vector<16x128xi32>
    %51 = arith.shrsi %3, %50 : vector<16x128xi32>
    %c15_i32_15 = arith.constant 15 : i32
    %52 = vector.broadcast %c15_i32_15 : i32 to vector<16x128xi32>
    %53 = arith.andi %51, %52 : vector<16x128xi32>
    %54 = arith.sitofp %53 : vector<16x128xi32> to vector<16x128xf32>
    %55 = vector.broadcast %4 : vector<1x128xf32> to vector<16x128xf32>
    %56 = arith.mulf %54, %55 : vector<16x128xf32>
    %57 = arith.truncf %56 : vector<16x128xf32> to vector<16x128xbf16>
    %c80 = arith.constant 80 : index
    %c0_16 = arith.constant 0 : index
    %58 = vector.load %arg10[%c80, %c0_16] : memref<256x128xbf16, #tpu.memory_space<vmem>>, vector<16x128xbf16>
    tpu.vector_store %arg10[%c80, %c0_16], %57 {strides = array<i32>} : memref<256x128xbf16, #tpu.memory_space<vmem>>, vector<16x128xbf16>,
    %c24_i32 = arith.constant 24 : i32
    %59 = vector.broadcast %c24_i32 : i32 to vector<16x128xi32>
    %60 = arith.shrsi %3, %59 : vector<16x128xi32>
    %c15_i32_17 = arith.constant 15 : i32
    %61 = vector.broadcast %c15_i32_17 : i32 to vector<16x128xi32>
    %62 = arith.andi %60, %61 : vector<16x128xi32>
    %63 = arith.sitofp %62 : vector<16x128xi32> to vector<16x128xf32>
    %64 = vector.broadcast %4 : vector<1x128xf32> to vector<16x128xf32>
    %65 = arith.mulf %63, %64 : vector<16x128xf32>
    %66 = arith.truncf %65 : vector<16x128xf32> to vector<16x128xbf16>
    %c96 = arith.constant 96 : index
    %c0_18 = arith.constant 0 : index
    %67 = vector.load %arg10[%c96, %c0_18] : memref<256x128xbf16, #tpu.memory_space<vmem>>, vector<16x128xbf16>
    tpu.vector_store %arg10[%c96, %c0_18], %66 {strides = array<i32>} : memref<256x128xbf16, #tpu.memory_space<vmem>>, vector<16x128xbf16>,
    %c28_i32 = arith.constant 28 : i32
    %68 = vector.broadcast %c28_i32 : i32 to vector<16x128xi32>
    %69 = arith.shrsi %3, %68 : vector<16x128xi32>
    %c15_i32_19 = arith.constant 15 : i32
    %70 = vector.broadcast %c15_i32_19 : i32 to vector<16x128xi32>
    %71 = arith.andi %69, %70 : vector<16x128xi32>
    %72 = arith.sitofp %71 : vector<16x128xi32> to vector<16x128xf32>
    %73 = vector.broadcast %4 : vector<1x128xf32> to vector<16x128xf32>
    %74 = arith.mulf %72, %73 : vector<16x128xf32>
    %75 = arith.truncf %74 : vector<16x128xf32> to vector<16x128xbf16>
    %c112 = arith.constant 112 : index
    %c0_20 = arith.constant 0 : index
    %76 = vector.load %arg10[%c112, %c0_20] : memref<256x128xbf16, #tpu.memory_space<vmem>>, vector<16x128xbf16>
    tpu.vector_store %arg10[%c112, %c0_20], %75 {strides = array<i32>} : memref<256x128xbf16, #tpu.memory_space<vmem>>, vector<16x128xbf16>,
    %c16_21 = arith.constant 16 : index
    %c0_22 = arith.constant 0 : index
    %77 = vector.load %arg4[%c16_21, %c0_22] : memref<32x128xi32, #tpu.memory_space<vmem>>, vector<16x128xi32>
    %c1 = arith.constant 1 : index
    %c0_23 = arith.constant 0 : index
    %78 = vector.load %arg5[%c1, %c0_23] : memref<2x128xf32, #tpu.memory_space<vmem>>, vector<1x128xf32>
    %c0_i32_24 = arith.constant 0 : i32
    %79 = vector.broadcast %c0_i32_24 : i32 to vector<16x128xi32>
    %80 = arith.shrsi %77, %79 : vector<16x128xi32>
    %c15_i32_25 = arith.constant 15 : i32
    %81 = vector.broadcast %c15_i32_25 : i32 to vector<16x128xi32>
    %82 = arith.andi %80, %81 : vector<16x128xi32>
    %83 = arith.sitofp %82 : vector<16x128xi32> to vector<16x128xf32>
    %84 = vector.broadcast %78 : vector<1x128xf32> to vector<16x128xf32>
    %85 = arith.mulf %83, %84 : vector<16x128xf32>
    %86 = arith.truncf %85 : vector<16x128xf32> to vector<16x128xbf16>
    %c128 = arith.constant 128 : index
    %c0_26 = arith.constant 0 : index
    %87 = vector.load %arg10[%c128, %c0_26] : memref<256x128xbf16, #tpu.memory_space<vmem>>, vector<16x128xbf16>
    tpu.vector_store %arg10[%c128, %c0_26], %86 {strides = array<i32>} : memref<256x128xbf16, #tpu.memory_space<vmem>>, vector<16x128xbf16>,
    %c4_i32_27 = arith.constant 4 : i32
    %88 = vector.broadcast %c4_i32_27 : i32 to vector<16x128xi32>
    %89 = arith.shrsi %77, %88 : vector<16x128xi32>
    %c15_i32_28 = arith.constant 15 : i32
    %90 = vector.broadcast %c15_i32_28 : i32 to vector<16x128xi32>
    %91 = arith.andi %89, %90 : vector<16x128xi32>
    %92 = arith.sitofp %91 : vector<16x128xi32> to vector<16x128xf32>
    %93 = vector.broadcast %78 : vector<1x128xf32> to vector<16x128xf32>
    %94 = arith.mulf %92, %93 : vector<16x128xf32>
    %95 = arith.truncf %94 : vector<16x128xf32> to vector<16x128xbf16>
    %c144 = arith.constant 144 : index
    %c0_29 = arith.constant 0 : index
    %96 = vector.load %arg10[%c144, %c0_29] : memref<256x128xbf16, #tpu.memory_space<vmem>>, vector<16x128xbf16>
    tpu.vector_store %arg10[%c144, %c0_29], %95 {strides = array<i32>} : memref<256x128xbf16, #tpu.memory_space<vmem>>, vector<16x128xbf16>,
    %c8_i32_30 = arith.constant 8 : i32
    %97 = vector.broadcast %c8_i32_30 : i32 to vector<16x128xi32>
    %98 = arith.shrsi %77, %97 : vector<16x128xi32>
    %c15_i32_31 = arith.constant 15 : i32
    %99 = vector.broadcast %c15_i32_31 : i32 to vector<16x128xi32>
    %100 = arith.andi %98, %99 : vector<16x128xi32>
    %101 = arith.sitofp %100 : vector<16x128xi32> to vector<16x128xf32>
    %102 = vector.broadcast %78 : vector<1x128xf32> to vector<16x128xf32>
    %103 = arith.mulf %101, %102 : vector<16x128xf32>
    %104 = arith.truncf %103 : vector<16x128xf32> to vector<16x128xbf16>
    %c160 = arith.constant 160 : index
    %c0_32 = arith.constant 0 : index
    %105 = vector.load %arg10[%c160, %c0_32] : memref<256x128xbf16, #tpu.memory_space<vmem>>, vector<16x128xbf16>
    tpu.vector_store %arg10[%c160, %c0_32], %104 {strides = array<i32>} : memref<256x128xbf16, #tpu.memory_space<vmem>>, vector<16x128xbf16>,
    %c12_i32_33 = arith.constant 12 : i32
    %106 = vector.broadcast %c12_i32_33 : i32 to vector<16x128xi32>
    %107 = arith.shrsi %77, %106 : vector<16x128xi32>
    %c15_i32_34 = arith.constant 15 : i32
    %108 = vector.broadcast %c15_i32_34 : i32 to vector<16x128xi32>
    %109 = arith.andi %107, %108 : vector<16x128xi32>
    %110 = arith.sitofp %109 : vector<16x128xi32> to vector<16x128xf32>
    %111 = vector.broadcast %78 : vector<1x128xf32> to vector<16x128xf32>
    %112 = arith.mulf %110, %111 : vector<16x128xf32>
    %113 = arith.truncf %112 : vector<16x128xf32> to vector<16x128xbf16>
    %c176 = arith.constant 176 : index
    %c0_35 = arith.constant 0 : index
    %114 = vector.load %arg10[%c176, %c0_35] : memref<256x128xbf16, #tpu.memory_space<vmem>>, vector<16x128xbf16>
    tpu.vector_store %arg10[%c176, %c0_35], %113 {strides = array<i32>} : memref<256x128xbf16, #tpu.memory_space<vmem>>, vector<16x128xbf16>,
    %c16_i32_36 = arith.constant 16 : i32
    %115 = vector.broadcast %c16_i32_36 : i32 to vector<16x128xi32>
    %116 = arith.shrsi %77, %115 : vector<16x128xi32>
    %c15_i32_37 = arith.constant 15 : i32
    %117 = vector.broadcast %c15_i32_37 : i32 to vector<16x128xi32>
    %118 = arith.andi %116, %117 : vector<16x128xi32>
    %119 = arith.sitofp %118 : vector<16x128xi32> to vector<16x128xf32>
    %120 = vector.broadcast %78 : vector<1x128xf32> to vector<16x128xf32>
    %121 = arith.mulf %119, %120 : vector<16x128xf32>
    %122 = arith.truncf %121 : vector<16x128xf32> to vector<16x128xbf16>
    %c192 = arith.constant 192 : index
    %c0_38 = arith.constant 0 : index
    %123 = vector.load %arg10[%c192, %c0_38] : memref<256x128xbf16, #tpu.memory_space<vmem>>, vector<16x128xbf16>
    tpu.vector_store %arg10[%c192, %c0_38], %122 {strides = array<i32>} : memref<256x128xbf16, #tpu.memory_space<vmem>>, vector<16x128xbf16>,
    %c20_i32_39 = arith.constant 20 : i32
    %124 = vector.broadcast %c20_i32_39 : i32 to vector<16x128xi32>
    %125 = arith.shrsi %77, %124 : vector<16x128xi32>
    %c15_i32_40 = arith.constant 15 : i32
    %126 = vector.broadcast %c15_i32_40 : i32 to vector<16x128xi32>
    %127 = arith.andi %125, %126 : vector<16x128xi32>
    %128 = arith.sitofp %127 : vector<16x128xi32> to vector<16x128xf32>
    %129 = vector.broadcast %78 : vector<1x128xf32> to vector<16x128xf32>
    %130 = arith.mulf %128, %129 : vector<16x128xf32>
    %131 = arith.truncf %130 : vector<16x128xf32> to vector<16x128xbf16>
    %c208 = arith.constant 208 : index
    %c0_41 = arith.constant 0 : index
    %132 = vector.load %arg10[%c208, %c0_41] : memref<256x128xbf16, #tpu.memory_space<vmem>>, vector<16x128xbf16>
    tpu.vector_store %arg10[%c208, %c0_41], %131 {strides = array<i32>} : memref<256x128xbf16, #tpu.memory_space<vmem>>, vector<16x128xbf16>,
    %c24_i32_42 = arith.constant 24 : i32
    %133 = vector.broadcast %c24_i32_42 : i32 to vector<16x128xi32>
    %134 = arith.shrsi %77, %133 : vector<16x128xi32>
    %c15_i32_43 = arith.constant 15 : i32
    %135 = vector.broadcast %c15_i32_43 : i32 to vector<16x128xi32>
    %136 = arith.andi %134, %135 : vector<16x128xi32>
    %137 = arith.sitofp %136 : vector<16x128xi32> to vector<16x128xf32>
    %138 = vector.broadcast %78 : vector<1x128xf32> to vector<16x128xf32>
    %139 = arith.mulf %137, %138 : vector<16x128xf32>
    %140 = arith.truncf %139 : vector<16x128xf32> to vector<16x128xbf16>
    %c224 = arith.constant 224 : index
    %c0_44 = arith.constant 0 : index
    %141 = vector.load %arg10[%c224, %c0_44] : memref<256x128xbf16, #tpu.memory_space<vmem>>, vector<16x128xbf16>
    tpu.vector_store %arg10[%c224, %c0_44], %140 {strides = array<i32>} : memref<256x128xbf16, #tpu.memory_space<vmem>>, vector<16x128xbf16>,
    %c28_i32_45 = arith.constant 28 : i32
    %142 = vector.broadcast %c28_i32_45 : i32 to vector<16x128xi32>
    %143 = arith.shrsi %77, %142 : vector<16x128xi32>
    %c15_i32_46 = arith.constant 15 : i32
    %144 = vector.broadcast %c15_i32_46 : i32 to vector<16x128xi32>
    %145 = arith.andi %143, %144 : vector<16x128xi32>
    %146 = arith.sitofp %145 : vector<16x128xi32> to vector<16x128xf32>
    %147 = vector.broadcast %78 : vector<1x128xf32> to vector<16x128xf32>
    %148 = arith.mulf %146, %147 : vector<16x128xf32>
    %149 = arith.truncf %148 : vector<16x128xf32> to vector<16x128xbf16>
    %c240 = arith.constant 240 : index
    %c0_47 = arith.constant 0 : index
    %150 = vector.load %arg10[%c240, %c0_47] : memref<256x128xbf16, #tpu.memory_space<vmem>>, vector<16x128xbf16>
    tpu.vector_store %arg10[%c240, %c0_47], %149 {strides = array<i32>} : memref<256x128xbf16, #tpu.memory_space<vmem>>, vector<16x128xbf16>,
    %c0_48 = arith.constant 0 : index
    %c0_49 = arith.constant 0 : index
    %151 = vector.load %arg3[%c0_48, %c0_49] : memref<16x256xf32, #tpu.memory_space<vmem>>, vector<16x256xf32>
    %152 = arith.truncf %151 : vector<16x256xf32> to vector<16x256xbf16>
    %c0_50 = arith.constant 0 : index
    %c0_51 = arith.constant 0 : index
    %153 = vector.load %arg10[%c0_50, %c0_51] : memref<256x128xbf16, #tpu.memory_space<vmem>>, vector<256x128xbf16>
    %cst = arith.constant dense<0.000000e+00> : vector<16x128xf32>
    %154 = tpu.matmul %152, %153, %cst {dimension_numbers = #tpu.dot_dimension_numbers<[1], [0], [0], [1], [0, 0, 1, 1], [], []>} : vector<16x256xbf16>, vector<256x128xbf16>, vector<16x128xf32> -> vector<16x128xf32>
    %155 = vector.extract_strided_slice %152 {offsets = [0, 0], sizes = [16, 128], strides = [1, 1]} : vector<16x256xbf16> to vector<16x128xbf16>
    %156 = arith.extf %155 : vector<16x128xbf16> to vector<16x128xf32>
    %cst_52 = arith.constant dense<0.000000e+00> : vector<16xf32>
    %157 = vector.multi_reduction <add>, %156, %cst_52 [1] : vector<16x128xf32> to vector<16xf32>
    %158 = vector.shape_cast %157 : vector<16xf32> to vector<16x1xf32>
    %c0_53 = arith.constant 0 : index
    %c0_54 = arith.constant 0 : index
    %159 = vector.load %arg6[%c0_53, %c0_54] : memref<2x128xf32, #tpu.memory_space<vmem>>, vector<1x128xf32>
    %160 = vector.broadcast %158 : vector<16x1xf32> to vector<16x128xf32>
    %161 = vector.broadcast %159 : vector<1x128xf32> to vector<16x128xf32>
    %162 = arith.mulf %160, %161 : vector<16x128xf32>
    %163 = vector.extract_strided_slice %152 {offsets = [0, 128], sizes = [16, 128], strides = [1, 1]} : vector<16x256xbf16> to vector<16x128xbf16>
    %164 = arith.extf %163 : vector<16x128xbf16> to vector<16x128xf32>
    %cst_55 = arith.constant dense<0.000000e+00> : vector<16xf32>
    %165 = vector.multi_reduction <add>, %164, %cst_55 [1] : vector<16x128xf32> to vector<16xf32>
    %166 = vector.shape_cast %165 : vector<16xf32> to vector<16x1xf32>
    %c1_56 = arith.constant 1 : index
    %c0_57 = arith.constant 0 : index
    %167 = vector.load %arg6[%c1_56, %c0_57] : memref<2x128xf32, #tpu.memory_space<vmem>>, vector<1x128xf32>
    %168 = vector.broadcast %166 : vector<16x1xf32> to vector<16x128xf32>
    %169 = vector.broadcast %167 : vector<1x128xf32> to vector<16x128xf32>
    %170 = arith.mulf %168, %169 : vector<16x128xf32>
    %171 = arith.addf %162, %170 : vector<16x128xf32>
    %c0_58 = arith.constant 0 : index
    %c0_59 = arith.constant 0 : index
    %172 = vector.load %arg9[%c0_58, %c0_59] : memref<16x128xf32, #tpu.memory_space<vmem>>, vector<16x128xf32>
    %173 = arith.subf %154, %171 : vector<16x128xf32>
    %174 = arith.addf %172, %173 : vector<16x128xf32>
    %c0_60 = arith.constant 0 : index
    %c0_61 = arith.constant 0 : index
    %175 = vector.load %arg9[%c0_60, %c0_61] : memref<16x128xf32, #tpu.memory_space<vmem>>, vector<16x128xf32>
    tpu.vector_store %arg9[%c0_60, %c0_61], %174 {strides = array<i32>} : memref<16x128xf32, #tpu.memory_space<vmem>>, vector<16x128xf32>,
    %c0_i32_62 = arith.constant 0 : i32
    %176 = arith.cmpi eq, %arg2, %c0_i32_62 : i32
    %177 = arith.extui %176 : i1 to i32
    %c0_i32_63 = arith.constant 0 : i32
    %178 = arith.cmpi ne, %177, %c0_i32_63 : i32
    scf.if %178 {
      %c0_64 = arith.constant 0 : index
      %c0_65 = arith.constant 0 : index
      %179 = vector.load %arg9[%c0_64, %c0_65] : memref<16x128xf32, #tpu.memory_space<vmem>>, vector<16x128xf32>
      %c0_66 = arith.constant 0 : index
      %c0_67 = arith.constant 0 : index
      %180 = vector.load %arg7[%c0_66, %c0_67] : memref<1x128xf32, #tpu.memory_space<vmem>>, vector<1x128xf32>
      %181 = vector.broadcast %180 : vector<1x128xf32> to vector<16x128xf32>
      %182 = arith.addf %179, %181 : vector<16x128xf32>
      %c0_68 = arith.constant 0 : index
      %c0_69 = arith.constant 0 : index
      %183 = vector.load %arg8[%c0_68, %c0_69] : memref<16x128xf32, #tpu.memory_space<vmem>>, vector<16x128xf32>
      tpu.vector_store %arg8[%c0_68, %c0_69], %182 {strides = array<i32>} : memref<16x128xf32, #tpu.memory_space<vmem>>, vector<16x128xf32>,
    } else {
    }
    return
  }
  func.func @transform_0(%arg0: i32, %arg1: i32, %arg2: i32) -> (i32, i32) {
    %c0_i32 = arith.constant 0 : i32
    return %arg0, %arg2 : i32, i32
  }
  func.func @transform_1(%arg0: i32, %arg1: i32, %arg2: i32) -> (i32, i32) {
    %c0_i32 = arith.constant 0 : i32
    return %arg2, %arg1 : i32, i32
  }
  func.func @transform_2(%arg0: i32, %arg1: i32, %arg2: i32) -> (i32, i32) {
    %c0_i32 = arith.constant 0 : i32
    return %arg2, %arg1 : i32, i32
  }
  func.func @transform_3(%arg0: i32, %arg1: i32, %arg2: i32) -> (i32, i32) {
    %c0_i32 = arith.constant 0 : i32
    return %arg2, %arg1 : i32, i32
  }
  func.func @transform_4(%arg0: i32, %arg1: i32, %arg2: i32) -> (i32, i32) {
    %c0_i32 = arith.constant 0 : i32
    %c0_i32_0 = arith.constant 0 : i32
    return %c0_i32, %arg1 : i32, i32
  }
  func.func @transform_5(%arg0: i32, %arg1: i32, %arg2: i32) -> (i32, i32) {
    %c0_i32 = arith.constant 0 : i32
    return %arg0, %arg1 : i32, i32
  }
}

module attributes {stable_mosaic.version = 11 : i64} {
  func.func @_awq_gemm_kernel(%arg0: i32, %arg1: i32, %arg2: i32, %arg3: memref<16x256xf32, #tpu.memory_space<vmem>>, %arg4: memref<32x256xi32, #tpu.memory_space<vmem>>, %arg5: memref<2x256xf32, #tpu.memory_space<vmem>>, %arg6: memref<2x256xf32, #tpu.memory_space<vmem>>, %arg7: memref<1x256xf32, #tpu.memory_space<vmem>>, %arg8: memref<16x256xf32, #tpu.memory_space<vmem>>, %arg9: memref<16x256xf32, #tpu.memory_space<vmem>>, %arg10: memref<256x256xbf16, #tpu.memory_space<vmem>>) attributes {dimension_semantics = [#tpu.dimension_semantics<parallel>, #tpu.dimension_semantics<parallel>, #tpu.dimension_semantics<arbitrary>], iteration_bounds = array<i64: 1, 3, 1>, scalar_prefetch = 0 : i64, scratch_operands = 2 : i64, tpu.core_type = #tpu.core_type<tc>, window_params = [{transform_indices = @transform_0, window_bounds = array<i64: 16, 256>}, {transform_indices = @transform_1, window_bounds = array<i64: 32, 256>}, {transform_indices = @transform_2, window_bounds = array<i64: 2, 256>}, {transform_indices = @transform_3, window_bounds = array<i64: 2, 256>}, {transform_indices = @transform_4, window_bounds = array<i64: 1, 256>}, {transform_indices = @transform_5, window_bounds = array<i64: 16, 256>}]} {
    %c0_i32 = arith.constant 0 : i32
    %0 = arith.cmpi eq, %arg2, %c0_i32 : i32
    %1 = arith.extui %0 : i1 to i32
    %c0_i32_0 = arith.constant 0 : i32
    %2 = arith.cmpi ne, %1, %c0_i32_0 : i32
    scf.if %2 {
      %cst_64 = arith.constant 0.000000e+00 : f32
      %179 = vector.broadcast %cst_64 : f32 to vector<16x256xf32>
      %c0_65 = arith.constant 0 : index
      %c0_66 = arith.constant 0 : index
      %180 = vector.load %arg9[%c0_65, %c0_66] : memref<16x256xf32, #tpu.memory_space<vmem>>, vector<16x256xf32>
      tpu.vector_store %arg9[%c0_65, %c0_66], %179 {strides = array<i32>} : memref<16x256xf32, #tpu.memory_space<vmem>>, vector<16x256xf32>,
    } else {
    }
    %c0 = arith.constant 0 : index
    %c0_1 = arith.constant 0 : index
    %3 = vector.load %arg4[%c0, %c0_1] : memref<32x256xi32, #tpu.memory_space<vmem>>, vector<16x256xi32>
    %c0_2 = arith.constant 0 : index
    %c0_3 = arith.constant 0 : index
    %4 = vector.load %arg5[%c0_2, %c0_3] : memref<2x256xf32, #tpu.memory_space<vmem>>, vector<1x256xf32>
    %c0_i32_4 = arith.constant 0 : i32
    %5 = vector.broadcast %c0_i32_4 : i32 to vector<16x256xi32>
    %6 = arith.shrsi %3, %5 : vector<16x256xi32>
    %c15_i32 = arith.constant 15 : i32
    %7 = vector.broadcast %c15_i32 : i32 to vector<16x256xi32>
    %8 = arith.andi %6, %7 : vector<16x256xi32>
    %9 = arith.sitofp %8 : vector<16x256xi32> to vector<16x256xf32>
    %10 = vector.broadcast %4 : vector<1x256xf32> to vector<16x256xf32>
    %11 = arith.mulf %9, %10 : vector<16x256xf32>
    %12 = arith.truncf %11 : vector<16x256xf32> to vector<16x256xbf16>
    %c0_5 = arith.constant 0 : index
    %c0_6 = arith.constant 0 : index
    %13 = vector.load %arg10[%c0_5, %c0_6] : memref<256x256xbf16, #tpu.memory_space<vmem>>, vector<16x256xbf16>
    tpu.vector_store %arg10[%c0_5, %c0_6], %12 {strides = array<i32>} : memref<256x256xbf16, #tpu.memory_space<vmem>>, vector<16x256xbf16>,
    %c4_i32 = arith.constant 4 : i32
    %14 = vector.broadcast %c4_i32 : i32 to vector<16x256xi32>
    %15 = arith.shrsi %3, %14 : vector<16x256xi32>
    %c15_i32_7 = arith.constant 15 : i32
    %16 = vector.broadcast %c15_i32_7 : i32 to vector<16x256xi32>
    %17 = arith.andi %15, %16 : vector<16x256xi32>
    %18 = arith.sitofp %17 : vector<16x256xi32> to vector<16x256xf32>
    %19 = vector.broadcast %4 : vector<1x256xf32> to vector<16x256xf32>
    %20 = arith.mulf %18, %19 : vector<16x256xf32>
    %21 = arith.truncf %20 : vector<16x256xf32> to vector<16x256xbf16>
    %c16 = arith.constant 16 : index
    %c0_8 = arith.constant 0 : index
    %22 = vector.load %arg10[%c16, %c0_8] : memref<256x256xbf16, #tpu.memory_space<vmem>>, vector<16x256xbf16>
    tpu.vector_store %arg10[%c16, %c0_8], %21 {strides = array<i32>} : memref<256x256xbf16, #tpu.memory_space<vmem>>, vector<16x256xbf16>,
    %c8_i32 = arith.constant 8 : i32
    %23 = vector.broadcast %c8_i32 : i32 to vector<16x256xi32>
    %24 = arith.shrsi %3, %23 : vector<16x256xi32>
    %c15_i32_9 = arith.constant 15 : i32
    %25 = vector.broadcast %c15_i32_9 : i32 to vector<16x256xi32>
    %26 = arith.andi %24, %25 : vector<16x256xi32>
    %27 = arith.sitofp %26 : vector<16x256xi32> to vector<16x256xf32>
    %28 = vector.broadcast %4 : vector<1x256xf32> to vector<16x256xf32>
    %29 = arith.mulf %27, %28 : vector<16x256xf32>
    %30 = arith.truncf %29 : vector<16x256xf32> to vector<16x256xbf16>
    %c32 = arith.constant 32 : index
    %c0_10 = arith.constant 0 : index
    %31 = vector.load %arg10[%c32, %c0_10] : memref<256x256xbf16, #tpu.memory_space<vmem>>, vector<16x256xbf16>
    tpu.vector_store %arg10[%c32, %c0_10], %30 {strides = array<i32>} : memref<256x256xbf16, #tpu.memory_space<vmem>>, vector<16x256xbf16>,
    %c12_i32 = arith.constant 12 : i32
    %32 = vector.broadcast %c12_i32 : i32 to vector<16x256xi32>
    %33 = arith.shrsi %3, %32 : vector<16x256xi32>
    %c15_i32_11 = arith.constant 15 : i32
    %34 = vector.broadcast %c15_i32_11 : i32 to vector<16x256xi32>
    %35 = arith.andi %33, %34 : vector<16x256xi32>
    %36 = arith.sitofp %35 : vector<16x256xi32> to vector<16x256xf32>
    %37 = vector.broadcast %4 : vector<1x256xf32> to vector<16x256xf32>
    %38 = arith.mulf %36, %37 : vector<16x256xf32>
    %39 = arith.truncf %38 : vector<16x256xf32> to vector<16x256xbf16>
    %c48 = arith.constant 48 : index
    %c0_12 = arith.constant 0 : index
    %40 = vector.load %arg10[%c48, %c0_12] : memref<256x256xbf16, #tpu.memory_space<vmem>>, vector<16x256xbf16>
    tpu.vector_store %arg10[%c48, %c0_12], %39 {strides = array<i32>} : memref<256x256xbf16, #tpu.memory_space<vmem>>, vector<16x256xbf16>,
    %c16_i32 = arith.constant 16 : i32
    %41 = vector.broadcast %c16_i32 : i32 to vector<16x256xi32>
    %42 = arith.shrsi %3, %41 : vector<16x256xi32>
    %c15_i32_13 = arith.constant 15 : i32
    %43 = vector.broadcast %c15_i32_13 : i32 to vector<16x256xi32>
    %44 = arith.andi %42, %43 : vector<16x256xi32>
    %45 = arith.sitofp %44 : vector<16x256xi32> to vector<16x256xf32>
    %46 = vector.broadcast %4 : vector<1x256xf32> to vector<16x256xf32>
    %47 = arith.mulf %45, %46 : vector<16x256xf32>
    %48 = arith.truncf %47 : vector<16x256xf32> to vector<16x256xbf16>
    %c64 = arith.constant 64 : index
    %c0_14 = arith.constant 0 : index
    %49 = vector.load %arg10[%c64, %c0_14] : memref<256x256xbf16, #tpu.memory_space<vmem>>, vector<16x256xbf16>
    tpu.vector_store %arg10[%c64, %c0_14], %48 {strides = array<i32>} : memref<256x256xbf16, #tpu.memory_space<vmem>>, vector<16x256xbf16>,
    %c20_i32 = arith.constant 20 : i32
    %50 = vector.broadcast %c20_i32 : i32 to vector<16x256xi32>
    %51 = arith.shrsi %3, %50 : vector<16x256xi32>
    %c15_i32_15 = arith.constant 15 : i32
    %52 = vector.broadcast %c15_i32_15 : i32 to vector<16x256xi32>
    %53 = arith.andi %51, %52 : vector<16x256xi32>
    %54 = arith.sitofp %53 : vector<16x256xi32> to vector<16x256xf32>
    %55 = vector.broadcast %4 : vector<1x256xf32> to vector<16x256xf32>
    %56 = arith.mulf %54, %55 : vector<16x256xf32>
    %57 = arith.truncf %56 : vector<16x256xf32> to vector<16x256xbf16>
    %c80 = arith.constant 80 : index
    %c0_16 = arith.constant 0 : index
    %58 = vector.load %arg10[%c80, %c0_16] : memref<256x256xbf16, #tpu.memory_space<vmem>>, vector<16x256xbf16>
    tpu.vector_store %arg10[%c80, %c0_16], %57 {strides = array<i32>} : memref<256x256xbf16, #tpu.memory_space<vmem>>, vector<16x256xbf16>,
    %c24_i32 = arith.constant 24 : i32
    %59 = vector.broadcast %c24_i32 : i32 to vector<16x256xi32>
    %60 = arith.shrsi %3, %59 : vector<16x256xi32>
    %c15_i32_17 = arith.constant 15 : i32
    %61 = vector.broadcast %c15_i32_17 : i32 to vector<16x256xi32>
    %62 = arith.andi %60, %61 : vector<16x256xi32>
    %63 = arith.sitofp %62 : vector<16x256xi32> to vector<16x256xf32>
    %64 = vector.broadcast %4 : vector<1x256xf32> to vector<16x256xf32>
    %65 = arith.mulf %63, %64 : vector<16x256xf32>
    %66 = arith.truncf %65 : vector<16x256xf32> to vector<16x256xbf16>
    %c96 = arith.constant 96 : index
    %c0_18 = arith.constant 0 : index
    %67 = vector.load %arg10[%c96, %c0_18] : memref<256x256xbf16, #tpu.memory_space<vmem>>, vector<16x256xbf16>
    tpu.vector_store %arg10[%c96, %c0_18], %66 {strides = array<i32>} : memref<256x256xbf16, #tpu.memory_space<vmem>>, vector<16x256xbf16>,
    %c28_i32 = arith.constant 28 : i32
    %68 = vector.broadcast %c28_i32 : i32 to vector<16x256xi32>
    %69 = arith.shrsi %3, %68 : vector<16x256xi32>
    %c15_i32_19 = arith.constant 15 : i32
    %70 = vector.broadcast %c15_i32_19 : i32 to vector<16x256xi32>
    %71 = arith.andi %69, %70 : vector<16x256xi32>
    %72 = arith.sitofp %71 : vector<16x256xi32> to vector<16x256xf32>
    %73 = vector.broadcast %4 : vector<1x256xf32> to vector<16x256xf32>
    %74 = arith.mulf %72, %73 : vector<16x256xf32>
    %75 = arith.truncf %74 : vector<16x256xf32> to vector<16x256xbf16>
    %c112 = arith.constant 112 : index
    %c0_20 = arith.constant 0 : index
    %76 = vector.load %arg10[%c112, %c0_20] : memref<256x256xbf16, #tpu.memory_space<vmem>>, vector<16x256xbf16>
    tpu.vector_store %arg10[%c112, %c0_20], %75 {strides = array<i32>} : memref<256x256xbf16, #tpu.memory_space<vmem>>, vector<16x256xbf16>,
    %c16_21 = arith.constant 16 : index
    %c0_22 = arith.constant 0 : index
    %77 = vector.load %arg4[%c16_21, %c0_22] : memref<32x256xi32, #tpu.memory_space<vmem>>, vector<16x256xi32>
    %c1 = arith.constant 1 : index
    %c0_23 = arith.constant 0 : index
    %78 = vector.load %arg5[%c1, %c0_23] : memref<2x256xf32, #tpu.memory_space<vmem>>, vector<1x256xf32>
    %c0_i32_24 = arith.constant 0 : i32
    %79 = vector.broadcast %c0_i32_24 : i32 to vector<16x256xi32>
    %80 = arith.shrsi %77, %79 : vector<16x256xi32>
    %c15_i32_25 = arith.constant 15 : i32
    %81 = vector.broadcast %c15_i32_25 : i32 to vector<16x256xi32>
    %82 = arith.andi %80, %81 : vector<16x256xi32>
    %83 = arith.sitofp %82 : vector<16x256xi32> to vector<16x256xf32>
    %84 = vector.broadcast %78 : vector<1x256xf32> to vector<16x256xf32>
    %85 = arith.mulf %83, %84 : vector<16x256xf32>
    %86 = arith.truncf %85 : vector<16x256xf32> to vector<16x256xbf16>
    %c128 = arith.constant 128 : index
    %c0_26 = arith.constant 0 : index
    %87 = vector.load %arg10[%c128, %c0_26] : memref<256x256xbf16, #tpu.memory_space<vmem>>, vector<16x256xbf16>
    tpu.vector_store %arg10[%c128, %c0_26], %86 {strides = array<i32>} : memref<256x256xbf16, #tpu.memory_space<vmem>>, vector<16x256xbf16>,
    %c4_i32_27 = arith.constant 4 : i32
    %88 = vector.broadcast %c4_i32_27 : i32 to vector<16x256xi32>
    %89 = arith.shrsi %77, %88 : vector<16x256xi32>
    %c15_i32_28 = arith.constant 15 : i32
    %90 = vector.broadcast %c15_i32_28 : i32 to vector<16x256xi32>
    %91 = arith.andi %89, %90 : vector<16x256xi32>
    %92 = arith.sitofp %91 : vector<16x256xi32> to vector<16x256xf32>
    %93 = vector.broadcast %78 : vector<1x256xf32> to vector<16x256xf32>
    %94 = arith.mulf %92, %93 : vector<16x256xf32>
    %95 = arith.truncf %94 : vector<16x256xf32> to vector<16x256xbf16>
    %c144 = arith.constant 144 : index
    %c0_29 = arith.constant 0 : index
    %96 = vector.load %arg10[%c144, %c0_29] : memref<256x256xbf16, #tpu.memory_space<vmem>>, vector<16x256xbf16>
    tpu.vector_store %arg10[%c144, %c0_29], %95 {strides = array<i32>} : memref<256x256xbf16, #tpu.memory_space<vmem>>, vector<16x256xbf16>,
    %c8_i32_30 = arith.constant 8 : i32
    %97 = vector.broadcast %c8_i32_30 : i32 to vector<16x256xi32>
    %98 = arith.shrsi %77, %97 : vector<16x256xi32>
    %c15_i32_31 = arith.constant 15 : i32
    %99 = vector.broadcast %c15_i32_31 : i32 to vector<16x256xi32>
    %100 = arith.andi %98, %99 : vector<16x256xi32>
    %101 = arith.sitofp %100 : vector<16x256xi32> to vector<16x256xf32>
    %102 = vector.broadcast %78 : vector<1x256xf32> to vector<16x256xf32>
    %103 = arith.mulf %101, %102 : vector<16x256xf32>
    %104 = arith.truncf %103 : vector<16x256xf32> to vector<16x256xbf16>
    %c160 = arith.constant 160 : index
    %c0_32 = arith.constant 0 : index
    %105 = vector.load %arg10[%c160, %c0_32] : memref<256x256xbf16, #tpu.memory_space<vmem>>, vector<16x256xbf16>
    tpu.vector_store %arg10[%c160, %c0_32], %104 {strides = array<i32>} : memref<256x256xbf16, #tpu.memory_space<vmem>>, vector<16x256xbf16>,
    %c12_i32_33 = arith.constant 12 : i32
    %106 = vector.broadcast %c12_i32_33 : i32 to vector<16x256xi32>
    %107 = arith.shrsi %77, %106 : vector<16x256xi32>
    %c15_i32_34 = arith.constant 15 : i32
    %108 = vector.broadcast %c15_i32_34 : i32 to vector<16x256xi32>
    %109 = arith.andi %107, %108 : vector<16x256xi32>
    %110 = arith.sitofp %109 : vector<16x256xi32> to vector<16x256xf32>
    %111 = vector.broadcast %78 : vector<1x256xf32> to vector<16x256xf32>
    %112 = arith.mulf %110, %111 : vector<16x256xf32>
    %113 = arith.truncf %112 : vector<16x256xf32> to vector<16x256xbf16>
    %c176 = arith.constant 176 : index
    %c0_35 = arith.constant 0 : index
    %114 = vector.load %arg10[%c176, %c0_35] : memref<256x256xbf16, #tpu.memory_space<vmem>>, vector<16x256xbf16>
    tpu.vector_store %arg10[%c176, %c0_35], %113 {strides = array<i32>} : memref<256x256xbf16, #tpu.memory_space<vmem>>, vector<16x256xbf16>,
    %c16_i32_36 = arith.constant 16 : i32
    %115 = vector.broadcast %c16_i32_36 : i32 to vector<16x256xi32>
    %116 = arith.shrsi %77, %115 : vector<16x256xi32>
    %c15_i32_37 = arith.constant 15 : i32
    %117 = vector.broadcast %c15_i32_37 : i32 to vector<16x256xi32>
    %118 = arith.andi %116, %117 : vector<16x256xi32>
    %119 = arith.sitofp %118 : vector<16x256xi32> to vector<16x256xf32>
    %120 = vector.broadcast %78 : vector<1x256xf32> to vector<16x256xf32>
    %121 = arith.mulf %119, %120 : vector<16x256xf32>
    %122 = arith.truncf %121 : vector<16x256xf32> to vector<16x256xbf16>
    %c192 = arith.constant 192 : index
    %c0_38 = arith.constant 0 : index
    %123 = vector.load %arg10[%c192, %c0_38] : memref<256x256xbf16, #tpu.memory_space<vmem>>, vector<16x256xbf16>
    tpu.vector_store %arg10[%c192, %c0_38], %122 {strides = array<i32>} : memref<256x256xbf16, #tpu.memory_space<vmem>>, vector<16x256xbf16>,
    %c20_i32_39 = arith.constant 20 : i32
    %124 = vector.broadcast %c20_i32_39 : i32 to vector<16x256xi32>
    %125 = arith.shrsi %77, %124 : vector<16x256xi32>
    %c15_i32_40 = arith.constant 15 : i32
    %126 = vector.broadcast %c15_i32_40 : i32 to vector<16x256xi32>
    %127 = arith.andi %125, %126 : vector<16x256xi32>
    %128 = arith.sitofp %127 : vector<16x256xi32> to vector<16x256xf32>
    %129 = vector.broadcast %78 : vector<1x256xf32> to vector<16x256xf32>
    %130 = arith.mulf %128, %129 : vector<16x256xf32>
    %131 = arith.truncf %130 : vector<16x256xf32> to vector<16x256xbf16>
    %c208 = arith.constant 208 : index
    %c0_41 = arith.constant 0 : index
    %132 = vector.load %arg10[%c208, %c0_41] : memref<256x256xbf16, #tpu.memory_space<vmem>>, vector<16x256xbf16>
    tpu.vector_store %arg10[%c208, %c0_41], %131 {strides = array<i32>} : memref<256x256xbf16, #tpu.memory_space<vmem>>, vector<16x256xbf16>,
    %c24_i32_42 = arith.constant 24 : i32
    %133 = vector.broadcast %c24_i32_42 : i32 to vector<16x256xi32>
    %134 = arith.shrsi %77, %133 : vector<16x256xi32>
    %c15_i32_43 = arith.constant 15 : i32
    %135 = vector.broadcast %c15_i32_43 : i32 to vector<16x256xi32>
    %136 = arith.andi %134, %135 : vector<16x256xi32>
    %137 = arith.sitofp %136 : vector<16x256xi32> to vector<16x256xf32>
    %138 = vector.broadcast %78 : vector<1x256xf32> to vector<16x256xf32>
    %139 = arith.mulf %137, %138 : vector<16x256xf32>
    %140 = arith.truncf %139 : vector<16x256xf32> to vector<16x256xbf16>
    %c224 = arith.constant 224 : index
    %c0_44 = arith.constant 0 : index
    %141 = vector.load %arg10[%c224, %c0_44] : memref<256x256xbf16, #tpu.memory_space<vmem>>, vector<16x256xbf16>
    tpu.vector_store %arg10[%c224, %c0_44], %140 {strides = array<i32>} : memref<256x256xbf16, #tpu.memory_space<vmem>>, vector<16x256xbf16>,
    %c28_i32_45 = arith.constant 28 : i32
    %142 = vector.broadcast %c28_i32_45 : i32 to vector<16x256xi32>
    %143 = arith.shrsi %77, %142 : vector<16x256xi32>
    %c15_i32_46 = arith.constant 15 : i32
    %144 = vector.broadcast %c15_i32_46 : i32 to vector<16x256xi32>
    %145 = arith.andi %143, %144 : vector<16x256xi32>
    %146 = arith.sitofp %145 : vector<16x256xi32> to vector<16x256xf32>
    %147 = vector.broadcast %78 : vector<1x256xf32> to vector<16x256xf32>
    %148 = arith.mulf %146, %147 : vector<16x256xf32>
    %149 = arith.truncf %148 : vector<16x256xf32> to vector<16x256xbf16>
    %c240 = arith.constant 240 : index
    %c0_47 = arith.constant 0 : index
    %150 = vector.load %arg10[%c240, %c0_47] : memref<256x256xbf16, #tpu.memory_space<vmem>>, vector<16x256xbf16>
    tpu.vector_store %arg10[%c240, %c0_47], %149 {strides = array<i32>} : memref<256x256xbf16, #tpu.memory_space<vmem>>, vector<16x256xbf16>,
    %c0_48 = arith.constant 0 : index
    %c0_49 = arith.constant 0 : index
    %151 = vector.load %arg3[%c0_48, %c0_49] : memref<16x256xf32, #tpu.memory_space<vmem>>, vector<16x256xf32>
    %152 = arith.truncf %151 : vector<16x256xf32> to vector<16x256xbf16>
    %c0_50 = arith.constant 0 : index
    %c0_51 = arith.constant 0 : index
    %153 = vector.load %arg10[%c0_50, %c0_51] : memref<256x256xbf16, #tpu.memory_space<vmem>>, vector<256x256xbf16>
    %cst = arith.constant dense<0.000000e+00> : vector<16x256xf32>
    %154 = tpu.matmul %152, %153, %cst {dimension_numbers = #tpu.dot_dimension_numbers<[1], [0], [0], [1], [0, 0, 1, 1], [], []>} : vector<16x256xbf16>, vector<256x256xbf16>, vector<16x256xf32> -> vector<16x256xf32>
    %155 = vector.extract_strided_slice %152 {offsets = [0, 0], sizes = [16, 128], strides = [1, 1]} : vector<16x256xbf16> to vector<16x128xbf16>
    %156 = arith.extf %155 : vector<16x128xbf16> to vector<16x128xf32>
    %cst_52 = arith.constant dense<0.000000e+00> : vector<16xf32>
    %157 = vector.multi_reduction <add>, %156, %cst_52 [1] : vector<16x128xf32> to vector<16xf32>
    %158 = vector.shape_cast %157 : vector<16xf32> to vector<16x1xf32>
    %c0_53 = arith.constant 0 : index
    %c0_54 = arith.constant 0 : index
    %159 = vector.load %arg6[%c0_53, %c0_54] : memref<2x256xf32, #tpu.memory_space<vmem>>, vector<1x256xf32>
    %160 = vector.broadcast %158 : vector<16x1xf32> to vector<16x256xf32>
    %161 = vector.broadcast %159 : vector<1x256xf32> to vector<16x256xf32>
    %162 = arith.mulf %160, %161 : vector<16x256xf32>
    %163 = vector.extract_strided_slice %152 {offsets = [0, 128], sizes = [16, 128], strides = [1, 1]} : vector<16x256xbf16> to vector<16x128xbf16>
    %164 = arith.extf %163 : vector<16x128xbf16> to vector<16x128xf32>
    %cst_55 = arith.constant dense<0.000000e+00> : vector<16xf32>
    %165 = vector.multi_reduction <add>, %164, %cst_55 [1] : vector<16x128xf32> to vector<16xf32>
    %166 = vector.shape_cast %165 : vector<16xf32> to vector<16x1xf32>
    %c1_56 = arith.constant 1 : index
    %c0_57 = arith.constant 0 : index
    %167 = vector.load %arg6[%c1_56, %c0_57] : memref<2x256xf32, #tpu.memory_space<vmem>>, vector<1x256xf32>
    %168 = vector.broadcast %166 : vector<16x1xf32> to vector<16x256xf32>
    %169 = vector.broadcast %167 : vector<1x256xf32> to vector<16x256xf32>
    %170 = arith.mulf %168, %169 : vector<16x256xf32>
    %171 = arith.addf %162, %170 : vector<16x256xf32>
    %c0_58 = arith.constant 0 : index
    %c0_59 = arith.constant 0 : index
    %172 = vector.load %arg9[%c0_58, %c0_59] : memref<16x256xf32, #tpu.memory_space<vmem>>, vector<16x256xf32>
    %173 = arith.subf %154, %171 : vector<16x256xf32>
    %174 = arith.addf %172, %173 : vector<16x256xf32>
    %c0_60 = arith.constant 0 : index
    %c0_61 = arith.constant 0 : index
    %175 = vector.load %arg9[%c0_60, %c0_61] : memref<16x256xf32, #tpu.memory_space<vmem>>, vector<16x256xf32>
    tpu.vector_store %arg9[%c0_60, %c0_61], %174 {strides = array<i32>} : memref<16x256xf32, #tpu.memory_space<vmem>>, vector<16x256xf32>,
    %c0_i32_62 = arith.constant 0 : i32
    %176 = arith.cmpi eq, %arg2, %c0_i32_62 : i32
    %177 = arith.extui %176 : i1 to i32
    %c0_i32_63 = arith.constant 0 : i32
    %178 = arith.cmpi ne, %177, %c0_i32_63 : i32
    scf.if %178 {
      %c0_64 = arith.constant 0 : index
      %c0_65 = arith.constant 0 : index
      %179 = vector.load %arg9[%c0_64, %c0_65] : memref<16x256xf32, #tpu.memory_space<vmem>>, vector<16x256xf32>
      %c0_66 = arith.constant 0 : index
      %c0_67 = arith.constant 0 : index
      %180 = vector.load %arg7[%c0_66, %c0_67] : memref<1x256xf32, #tpu.memory_space<vmem>>, vector<1x256xf32>
      %181 = vector.broadcast %180 : vector<1x256xf32> to vector<16x256xf32>
      %182 = arith.addf %179, %181 : vector<16x256xf32>
      %c0_68 = arith.constant 0 : index
      %c0_69 = arith.constant 0 : index
      %183 = vector.load %arg8[%c0_68, %c0_69] : memref<16x256xf32, #tpu.memory_space<vmem>>, vector<16x256xf32>
      tpu.vector_store %arg8[%c0_68, %c0_69], %182 {strides = array<i32>} : memref<16x256xf32, #tpu.memory_space<vmem>>, vector<16x256xf32>,
    } else {
    }
    return
  }
  func.func @transform_0(%arg0: i32, %arg1: i32, %arg2: i32) -> (i32, i32) {
    %c0_i32 = arith.constant 0 : i32
    return %arg0, %arg2 : i32, i32
  }
  func.func @transform_1(%arg0: i32, %arg1: i32, %arg2: i32) -> (i32, i32) {
    %c0_i32 = arith.constant 0 : i32
    return %arg2, %arg1 : i32, i32
  }
  func.func @transform_2(%arg0: i32, %arg1: i32, %arg2: i32) -> (i32, i32) {
    %c0_i32 = arith.constant 0 : i32
    return %arg2, %arg1 : i32, i32
  }
  func.func @transform_3(%arg0: i32, %arg1: i32, %arg2: i32) -> (i32, i32) {
    %c0_i32 = arith.constant 0 : i32
    return %arg2, %arg1 : i32, i32
  }
  func.func @transform_4(%arg0: i32, %arg1: i32, %arg2: i32) -> (i32, i32) {
    %c0_i32 = arith.constant 0 : i32
    %c0_i32_0 = arith.constant 0 : i32
    return %c0_i32, %arg1 : i32, i32
  }
  func.func @transform_5(%arg0: i32, %arg1: i32, %arg2: i32) -> (i32, i32) {
    %c0_i32 = arith.constant 0 : i32
    return %arg0, %arg1 : i32, i32
  }
}

module attributes {stable_mosaic.version = 11 : i64} {
  func.func @_awq_gemm_kernel(%arg0: i32, %arg1: i32, %arg2: i32, %arg3: memref<16x256xf32, #tpu.memory_space<vmem>>, %arg4: memref<32x256xi32, #tpu.memory_space<vmem>>, %arg5: memref<2x256xf32, #tpu.memory_space<vmem>>, %arg6: memref<2x256xf32, #tpu.memory_space<vmem>>, %arg7: memref<1x256xf32, #tpu.memory_space<vmem>>, %arg8: memref<16x256xf32, #tpu.memory_space<vmem>>, %arg9: memref<16x256xf32, #tpu.memory_space<vmem>>, %arg10: memref<256x256xbf16, #tpu.memory_space<vmem>>) attributes {dimension_semantics = [#tpu.dimension_semantics<parallel>, #tpu.dimension_semantics<parallel>, #tpu.dimension_semantics<arbitrary>], iteration_bounds = array<i64: 1, 2, 1>, scalar_prefetch = 0 : i64, scratch_operands = 2 : i64, tpu.core_type = #tpu.core_type<tc>, window_params = [{transform_indices = @transform_0, window_bounds = array<i64: 16, 256>}, {transform_indices = @transform_1, window_bounds = array<i64: 32, 256>}, {transform_indices = @transform_2, window_bounds = array<i64: 2, 256>}, {transform_indices = @transform_3, window_bounds = array<i64: 2, 256>}, {transform_indices = @transform_4, window_bounds = array<i64: 1, 256>}, {transform_indices = @transform_5, window_bounds = array<i64: 16, 256>}]} {
    %c0_i32 = arith.constant 0 : i32
    %0 = arith.cmpi eq, %arg2, %c0_i32 : i32
    %1 = arith.extui %0 : i1 to i32
    %c0_i32_0 = arith.constant 0 : i32
    %2 = arith.cmpi ne, %1, %c0_i32_0 : i32
    scf.if %2 {
      %cst_64 = arith.constant 0.000000e+00 : f32
      %179 = vector.broadcast %cst_64 : f32 to vector<16x256xf32>
      %c0_65 = arith.constant 0 : index
      %c0_66 = arith.constant 0 : index
      %180 = vector.load %arg9[%c0_65, %c0_66] : memref<16x256xf32, #tpu.memory_space<vmem>>, vector<16x256xf32>
      tpu.vector_store %arg9[%c0_65, %c0_66], %179 {strides = array<i32>} : memref<16x256xf32, #tpu.memory_space<vmem>>, vector<16x256xf32>,
    } else {
    }
    %c0 = arith.constant 0 : index
    %c0_1 = arith.constant 0 : index
    %3 = vector.load %arg4[%c0, %c0_1] : memref<32x256xi32, #tpu.memory_space<vmem>>, vector<16x256xi32>
    %c0_2 = arith.constant 0 : index
    %c0_3 = arith.constant 0 : index
    %4 = vector.load %arg5[%c0_2, %c0_3] : memref<2x256xf32, #tpu.memory_space<vmem>>, vector<1x256xf32>
    %c0_i32_4 = arith.constant 0 : i32
    %5 = vector.broadcast %c0_i32_4 : i32 to vector<16x256xi32>
    %6 = arith.shrsi %3, %5 : vector<16x256xi32>
    %c15_i32 = arith.constant 15 : i32
    %7 = vector.broadcast %c15_i32 : i32 to vector<16x256xi32>
    %8 = arith.andi %6, %7 : vector<16x256xi32>
    %9 = arith.sitofp %8 : vector<16x256xi32> to vector<16x256xf32>
    %10 = vector.broadcast %4 : vector<1x256xf32> to vector<16x256xf32>
    %11 = arith.mulf %9, %10 : vector<16x256xf32>
    %12 = arith.truncf %11 : vector<16x256xf32> to vector<16x256xbf16>
    %c0_5 = arith.constant 0 : index
    %c0_6 = arith.constant 0 : index
    %13 = vector.load %arg10[%c0_5, %c0_6] : memref<256x256xbf16, #tpu.memory_space<vmem>>, vector<16x256xbf16>
    tpu.vector_store %arg10[%c0_5, %c0_6], %12 {strides = array<i32>} : memref<256x256xbf16, #tpu.memory_space<vmem>>, vector<16x256xbf16>,
    %c4_i32 = arith.constant 4 : i32
    %14 = vector.broadcast %c4_i32 : i32 to vector<16x256xi32>
    %15 = arith.shrsi %3, %14 : vector<16x256xi32>
    %c15_i32_7 = arith.constant 15 : i32
    %16 = vector.broadcast %c15_i32_7 : i32 to vector<16x256xi32>
    %17 = arith.andi %15, %16 : vector<16x256xi32>
    %18 = arith.sitofp %17 : vector<16x256xi32> to vector<16x256xf32>
    %19 = vector.broadcast %4 : vector<1x256xf32> to vector<16x256xf32>
    %20 = arith.mulf %18, %19 : vector<16x256xf32>
    %21 = arith.truncf %20 : vector<16x256xf32> to vector<16x256xbf16>
    %c16 = arith.constant 16 : index
    %c0_8 = arith.constant 0 : index
    %22 = vector.load %arg10[%c16, %c0_8] : memref<256x256xbf16, #tpu.memory_space<vmem>>, vector<16x256xbf16>
    tpu.vector_store %arg10[%c16, %c0_8], %21 {strides = array<i32>} : memref<256x256xbf16, #tpu.memory_space<vmem>>, vector<16x256xbf16>,
    %c8_i32 = arith.constant 8 : i32
    %23 = vector.broadcast %c8_i32 : i32 to vector<16x256xi32>
    %24 = arith.shrsi %3, %23 : vector<16x256xi32>
    %c15_i32_9 = arith.constant 15 : i32
    %25 = vector.broadcast %c15_i32_9 : i32 to vector<16x256xi32>
    %26 = arith.andi %24, %25 : vector<16x256xi32>
    %27 = arith.sitofp %26 : vector<16x256xi32> to vector<16x256xf32>
    %28 = vector.broadcast %4 : vector<1x256xf32> to vector<16x256xf32>
    %29 = arith.mulf %27, %28 : vector<16x256xf32>
    %30 = arith.truncf %29 : vector<16x256xf32> to vector<16x256xbf16>
    %c32 = arith.constant 32 : index
    %c0_10 = arith.constant 0 : index
    %31 = vector.load %arg10[%c32, %c0_10] : memref<256x256xbf16, #tpu.memory_space<vmem>>, vector<16x256xbf16>
    tpu.vector_store %arg10[%c32, %c0_10], %30 {strides = array<i32>} : memref<256x256xbf16, #tpu.memory_space<vmem>>, vector<16x256xbf16>,
    %c12_i32 = arith.constant 12 : i32
    %32 = vector.broadcast %c12_i32 : i32 to vector<16x256xi32>
    %33 = arith.shrsi %3, %32 : vector<16x256xi32>
    %c15_i32_11 = arith.constant 15 : i32
    %34 = vector.broadcast %c15_i32_11 : i32 to vector<16x256xi32>
    %35 = arith.andi %33, %34 : vector<16x256xi32>
    %36 = arith.sitofp %35 : vector<16x256xi32> to vector<16x256xf32>
    %37 = vector.broadcast %4 : vector<1x256xf32> to vector<16x256xf32>
    %38 = arith.mulf %36, %37 : vector<16x256xf32>
    %39 = arith.truncf %38 : vector<16x256xf32> to vector<16x256xbf16>
    %c48 = arith.constant 48 : index
    %c0_12 = arith.constant 0 : index
    %40 = vector.load %arg10[%c48, %c0_12] : memref<256x256xbf16, #tpu.memory_space<vmem>>, vector<16x256xbf16>
    tpu.vector_store %arg10[%c48, %c0_12], %39 {strides = array<i32>} : memref<256x256xbf16, #tpu.memory_space<vmem>>, vector<16x256xbf16>,
    %c16_i32 = arith.constant 16 : i32
    %41 = vector.broadcast %c16_i32 : i32 to vector<16x256xi32>
    %42 = arith.shrsi %3, %41 : vector<16x256xi32>
    %c15_i32_13 = arith.constant 15 : i32
    %43 = vector.broadcast %c15_i32_13 : i32 to vector<16x256xi32>
    %44 = arith.andi %42, %43 : vector<16x256xi32>
    %45 = arith.sitofp %44 : vector<16x256xi32> to vector<16x256xf32>
    %46 = vector.broadcast %4 : vector<1x256xf32> to vector<16x256xf32>
    %47 = arith.mulf %45, %46 : vector<16x256xf32>
    %48 = arith.truncf %47 : vector<16x256xf32> to vector<16x256xbf16>
    %c64 = arith.constant 64 : index
    %c0_14 = arith.constant 0 : index
    %49 = vector.load %arg10[%c64, %c0_14] : memref<256x256xbf16, #tpu.memory_space<vmem>>, vector<16x256xbf16>
    tpu.vector_store %arg10[%c64, %c0_14], %48 {strides = array<i32>} : memref<256x256xbf16, #tpu.memory_space<vmem>>, vector<16x256xbf16>,
    %c20_i32 = arith.constant 20 : i32
    %50 = vector.broadcast %c20_i32 : i32 to vector<16x256xi32>
    %51 = arith.shrsi %3, %50 : vector<16x256xi32>
    %c15_i32_15 = arith.constant 15 : i32
    %52 = vector.broadcast %c15_i32_15 : i32 to vector<16x256xi32>
    %53 = arith.andi %51, %52 : vector<16x256xi32>
    %54 = arith.sitofp %53 : vector<16x256xi32> to vector<16x256xf32>
    %55 = vector.broadcast %4 : vector<1x256xf32> to vector<16x256xf32>
    %56 = arith.mulf %54, %55 : vector<16x256xf32>
    %57 = arith.truncf %56 : vector<16x256xf32> to vector<16x256xbf16>
    %c80 = arith.constant 80 : index
    %c0_16 = arith.constant 0 : index
    %58 = vector.load %arg10[%c80, %c0_16] : memref<256x256xbf16, #tpu.memory_space<vmem>>, vector<16x256xbf16>
    tpu.vector_store %arg10[%c80, %c0_16], %57 {strides = array<i32>} : memref<256x256xbf16, #tpu.memory_space<vmem>>, vector<16x256xbf16>,
    %c24_i32 = arith.constant 24 : i32
    %59 = vector.broadcast %c24_i32 : i32 to vector<16x256xi32>
    %60 = arith.shrsi %3, %59 : vector<16x256xi32>
    %c15_i32_17 = arith.constant 15 : i32
    %61 = vector.broadcast %c15_i32_17 : i32 to vector<16x256xi32>
    %62 = arith.andi %60, %61 : vector<16x256xi32>
    %63 = arith.sitofp %62 : vector<16x256xi32> to vector<16x256xf32>
    %64 = vector.broadcast %4 : vector<1x256xf32> to vector<16x256xf32>
    %65 = arith.mulf %63, %64 : vector<16x256xf32>
    %66 = arith.truncf %65 : vector<16x256xf32> to vector<16x256xbf16>
    %c96 = arith.constant 96 : index
    %c0_18 = arith.constant 0 : index
    %67 = vector.load %arg10[%c96, %c0_18] : memref<256x256xbf16, #tpu.memory_space<vmem>>, vector<16x256xbf16>
    tpu.vector_store %arg10[%c96, %c0_18], %66 {strides = array<i32>} : memref<256x256xbf16, #tpu.memory_space<vmem>>, vector<16x256xbf16>,
    %c28_i32 = arith.constant 28 : i32
    %68 = vector.broadcast %c28_i32 : i32 to vector<16x256xi32>
    %69 = arith.shrsi %3, %68 : vector<16x256xi32>
    %c15_i32_19 = arith.constant 15 : i32
    %70 = vector.broadcast %c15_i32_19 : i32 to vector<16x256xi32>
    %71 = arith.andi %69, %70 : vector<16x256xi32>
    %72 = arith.sitofp %71 : vector<16x256xi32> to vector<16x256xf32>
    %73 = vector.broadcast %4 : vector<1x256xf32> to vector<16x256xf32>
    %74 = arith.mulf %72, %73 : vector<16x256xf32>
    %75 = arith.truncf %74 : vector<16x256xf32> to vector<16x256xbf16>
    %c112 = arith.constant 112 : index
    %c0_20 = arith.constant 0 : index
    %76 = vector.load %arg10[%c112, %c0_20] : memref<256x256xbf16, #tpu.memory_space<vmem>>, vector<16x256xbf16>
    tpu.vector_store %arg10[%c112, %c0_20], %75 {strides = array<i32>} : memref<256x256xbf16, #tpu.memory_space<vmem>>, vector<16x256xbf16>,
    %c16_21 = arith.constant 16 : index
    %c0_22 = arith.constant 0 : index
    %77 = vector.load %arg4[%c16_21, %c0_22] : memref<32x256xi32, #tpu.memory_space<vmem>>, vector<16x256xi32>
    %c1 = arith.constant 1 : index
    %c0_23 = arith.constant 0 : index
    %78 = vector.load %arg5[%c1, %c0_23] : memref<2x256xf32, #tpu.memory_space<vmem>>, vector<1x256xf32>
    %c0_i32_24 = arith.constant 0 : i32
    %79 = vector.broadcast %c0_i32_24 : i32 to vector<16x256xi32>
    %80 = arith.shrsi %77, %79 : vector<16x256xi32>
    %c15_i32_25 = arith.constant 15 : i32
    %81 = vector.broadcast %c15_i32_25 : i32 to vector<16x256xi32>
    %82 = arith.andi %80, %81 : vector<16x256xi32>
    %83 = arith.sitofp %82 : vector<16x256xi32> to vector<16x256xf32>
    %84 = vector.broadcast %78 : vector<1x256xf32> to vector<16x256xf32>
    %85 = arith.mulf %83, %84 : vector<16x256xf32>
    %86 = arith.truncf %85 : vector<16x256xf32> to vector<16x256xbf16>
    %c128 = arith.constant 128 : index
    %c0_26 = arith.constant 0 : index
    %87 = vector.load %arg10[%c128, %c0_26] : memref<256x256xbf16, #tpu.memory_space<vmem>>, vector<16x256xbf16>
    tpu.vector_store %arg10[%c128, %c0_26], %86 {strides = array<i32>} : memref<256x256xbf16, #tpu.memory_space<vmem>>, vector<16x256xbf16>,
    %c4_i32_27 = arith.constant 4 : i32
    %88 = vector.broadcast %c4_i32_27 : i32 to vector<16x256xi32>
    %89 = arith.shrsi %77, %88 : vector<16x256xi32>
    %c15_i32_28 = arith.constant 15 : i32
    %90 = vector.broadcast %c15_i32_28 : i32 to vector<16x256xi32>
    %91 = arith.andi %89, %90 : vector<16x256xi32>
    %92 = arith.sitofp %91 : vector<16x256xi32> to vector<16x256xf32>
    %93 = vector.broadcast %78 : vector<1x256xf32> to vector<16x256xf32>
    %94 = arith.mulf %92, %93 : vector<16x256xf32>
    %95 = arith.truncf %94 : vector<16x256xf32> to vector<16x256xbf16>
    %c144 = arith.constant 144 : index
    %c0_29 = arith.constant 0 : index
    %96 = vector.load %arg10[%c144, %c0_29] : memref<256x256xbf16, #tpu.memory_space<vmem>>, vector<16x256xbf16>
    tpu.vector_store %arg10[%c144, %c0_29], %95 {strides = array<i32>} : memref<256x256xbf16, #tpu.memory_space<vmem>>, vector<16x256xbf16>,
    %c8_i32_30 = arith.constant 8 : i32
    %97 = vector.broadcast %c8_i32_30 : i32 to vector<16x256xi32>
    %98 = arith.shrsi %77, %97 : vector<16x256xi32>
    %c15_i32_31 = arith.constant 15 : i32
    %99 = vector.broadcast %c15_i32_31 : i32 to vector<16x256xi32>
    %100 = arith.andi %98, %99 : vector<16x256xi32>
    %101 = arith.sitofp %100 : vector<16x256xi32> to vector<16x256xf32>
    %102 = vector.broadcast %78 : vector<1x256xf32> to vector<16x256xf32>
    %103 = arith.mulf %101, %102 : vector<16x256xf32>
    %104 = arith.truncf %103 : vector<16x256xf32> to vector<16x256xbf16>
    %c160 = arith.constant 160 : index
    %c0_32 = arith.constant 0 : index
    %105 = vector.load %arg10[%c160, %c0_32] : memref<256x256xbf16, #tpu.memory_space<vmem>>, vector<16x256xbf16>
    tpu.vector_store %arg10[%c160, %c0_32], %104 {strides = array<i32>} : memref<256x256xbf16, #tpu.memory_space<vmem>>, vector<16x256xbf16>,
    %c12_i32_33 = arith.constant 12 : i32
    %106 = vector.broadcast %c12_i32_33 : i32 to vector<16x256xi32>
    %107 = arith.shrsi %77, %106 : vector<16x256xi32>
    %c15_i32_34 = arith.constant 15 : i32
    %108 = vector.broadcast %c15_i32_34 : i32 to vector<16x256xi32>
    %109 = arith.andi %107, %108 : vector<16x256xi32>
    %110 = arith.sitofp %109 : vector<16x256xi32> to vector<16x256xf32>
    %111 = vector.broadcast %78 : vector<1x256xf32> to vector<16x256xf32>
    %112 = arith.mulf %110, %111 : vector<16x256xf32>
    %113 = arith.truncf %112 : vector<16x256xf32> to vector<16x256xbf16>
    %c176 = arith.constant 176 : index
    %c0_35 = arith.constant 0 : index
    %114 = vector.load %arg10[%c176, %c0_35] : memref<256x256xbf16, #tpu.memory_space<vmem>>, vector<16x256xbf16>
    tpu.vector_store %arg10[%c176, %c0_35], %113 {strides = array<i32>} : memref<256x256xbf16, #tpu.memory_space<vmem>>, vector<16x256xbf16>,
    %c16_i32_36 = arith.constant 16 : i32
    %115 = vector.broadcast %c16_i32_36 : i32 to vector<16x256xi32>
    %116 = arith.shrsi %77, %115 : vector<16x256xi32>
    %c15_i32_37 = arith.constant 15 : i32
    %117 = vector.broadcast %c15_i32_37 : i32 to vector<16x256xi32>
    %118 = arith.andi %116, %117 : vector<16x256xi32>
    %119 = arith.sitofp %118 : vector<16x256xi32> to vector<16x256xf32>
    %120 = vector.broadcast %78 : vector<1x256xf32> to vector<16x256xf32>
    %121 = arith.mulf %119, %120 : vector<16x256xf32>
    %122 = arith.truncf %121 : vector<16x256xf32> to vector<16x256xbf16>
    %c192 = arith.constant 192 : index
    %c0_38 = arith.constant 0 : index
    %123 = vector.load %arg10[%c192, %c0_38] : memref<256x256xbf16, #tpu.memory_space<vmem>>, vector<16x256xbf16>
    tpu.vector_store %arg10[%c192, %c0_38], %122 {strides = array<i32>} : memref<256x256xbf16, #tpu.memory_space<vmem>>, vector<16x256xbf16>,
    %c20_i32_39 = arith.constant 20 : i32
    %124 = vector.broadcast %c20_i32_39 : i32 to vector<16x256xi32>
    %125 = arith.shrsi %77, %124 : vector<16x256xi32>
    %c15_i32_40 = arith.constant 15 : i32
    %126 = vector.broadcast %c15_i32_40 : i32 to vector<16x256xi32>
    %127 = arith.andi %125, %126 : vector<16x256xi32>
    %128 = arith.sitofp %127 : vector<16x256xi32> to vector<16x256xf32>
    %129 = vector.broadcast %78 : vector<1x256xf32> to vector<16x256xf32>
    %130 = arith.mulf %128, %129 : vector<16x256xf32>
    %131 = arith.truncf %130 : vector<16x256xf32> to vector<16x256xbf16>
    %c208 = arith.constant 208 : index
    %c0_41 = arith.constant 0 : index
    %132 = vector.load %arg10[%c208, %c0_41] : memref<256x256xbf16, #tpu.memory_space<vmem>>, vector<16x256xbf16>
    tpu.vector_store %arg10[%c208, %c0_41], %131 {strides = array<i32>} : memref<256x256xbf16, #tpu.memory_space<vmem>>, vector<16x256xbf16>,
    %c24_i32_42 = arith.constant 24 : i32
    %133 = vector.broadcast %c24_i32_42 : i32 to vector<16x256xi32>
    %134 = arith.shrsi %77, %133 : vector<16x256xi32>
    %c15_i32_43 = arith.constant 15 : i32
    %135 = vector.broadcast %c15_i32_43 : i32 to vector<16x256xi32>
    %136 = arith.andi %134, %135 : vector<16x256xi32>
    %137 = arith.sitofp %136 : vector<16x256xi32> to vector<16x256xf32>
    %138 = vector.broadcast %78 : vector<1x256xf32> to vector<16x256xf32>
    %139 = arith.mulf %137, %138 : vector<16x256xf32>
    %140 = arith.truncf %139 : vector<16x256xf32> to vector<16x256xbf16>
    %c224 = arith.constant 224 : index
    %c0_44 = arith.constant 0 : index
    %141 = vector.load %arg10[%c224, %c0_44] : memref<256x256xbf16, #tpu.memory_space<vmem>>, vector<16x256xbf16>
    tpu.vector_store %arg10[%c224, %c0_44], %140 {strides = array<i32>} : memref<256x256xbf16, #tpu.memory_space<vmem>>, vector<16x256xbf16>,
    %c28_i32_45 = arith.constant 28 : i32
    %142 = vector.broadcast %c28_i32_45 : i32 to vector<16x256xi32>
    %143 = arith.shrsi %77, %142 : vector<16x256xi32>
    %c15_i32_46 = arith.constant 15 : i32
    %144 = vector.broadcast %c15_i32_46 : i32 to vector<16x256xi32>
    %145 = arith.andi %143, %144 : vector<16x256xi32>
    %146 = arith.sitofp %145 : vector<16x256xi32> to vector<16x256xf32>
    %147 = vector.broadcast %78 : vector<1x256xf32> to vector<16x256xf32>
    %148 = arith.mulf %146, %147 : vector<16x256xf32>
    %149 = arith.truncf %148 : vector<16x256xf32> to vector<16x256xbf16>
    %c240 = arith.constant 240 : index
    %c0_47 = arith.constant 0 : index
    %150 = vector.load %arg10[%c240, %c0_47] : memref<256x256xbf16, #tpu.memory_space<vmem>>, vector<16x256xbf16>
    tpu.vector_store %arg10[%c240, %c0_47], %149 {strides = array<i32>} : memref<256x256xbf16, #tpu.memory_space<vmem>>, vector<16x256xbf16>,
    %c0_48 = arith.constant 0 : index
    %c0_49 = arith.constant 0 : index
    %151 = vector.load %arg3[%c0_48, %c0_49] : memref<16x256xf32, #tpu.memory_space<vmem>>, vector<16x256xf32>
    %152 = arith.truncf %151 : vector<16x256xf32> to vector<16x256xbf16>
    %c0_50 = arith.constant 0 : index
    %c0_51 = arith.constant 0 : index
    %153 = vector.load %arg10[%c0_50, %c0_51] : memref<256x256xbf16, #tpu.memory_space<vmem>>, vector<256x256xbf16>
    %cst = arith.constant dense<0.000000e+00> : vector<16x256xf32>
    %154 = tpu.matmul %152, %153, %cst {dimension_numbers = #tpu.dot_dimension_numbers<[1], [0], [0], [1], [0, 0, 1, 1], [], []>} : vector<16x256xbf16>, vector<256x256xbf16>, vector<16x256xf32> -> vector<16x256xf32>
    %155 = vector.extract_strided_slice %152 {offsets = [0, 0], sizes = [16, 128], strides = [1, 1]} : vector<16x256xbf16> to vector<16x128xbf16>
    %156 = arith.extf %155 : vector<16x128xbf16> to vector<16x128xf32>
    %cst_52 = arith.constant dense<0.000000e+00> : vector<16xf32>
    %157 = vector.multi_reduction <add>, %156, %cst_52 [1] : vector<16x128xf32> to vector<16xf32>
    %158 = vector.shape_cast %157 : vector<16xf32> to vector<16x1xf32>
    %c0_53 = arith.constant 0 : index
    %c0_54 = arith.constant 0 : index
    %159 = vector.load %arg6[%c0_53, %c0_54] : memref<2x256xf32, #tpu.memory_space<vmem>>, vector<1x256xf32>
    %160 = vector.broadcast %158 : vector<16x1xf32> to vector<16x256xf32>
    %161 = vector.broadcast %159 : vector<1x256xf32> to vector<16x256xf32>
    %162 = arith.mulf %160, %161 : vector<16x256xf32>
    %163 = vector.extract_strided_slice %152 {offsets = [0, 128], sizes = [16, 128], strides = [1, 1]} : vector<16x256xbf16> to vector<16x128xbf16>
    %164 = arith.extf %163 : vector<16x128xbf16> to vector<16x128xf32>
    %cst_55 = arith.constant dense<0.000000e+00> : vector<16xf32>
    %165 = vector.multi_reduction <add>, %164, %cst_55 [1] : vector<16x128xf32> to vector<16xf32>
    %166 = vector.shape_cast %165 : vector<16xf32> to vector<16x1xf32>
    %c1_56 = arith.constant 1 : index
    %c0_57 = arith.constant 0 : index
    %167 = vector.load %arg6[%c1_56, %c0_57] : memref<2x256xf32, #tpu.memory_space<vmem>>, vector<1x256xf32>
    %168 = vector.broadcast %166 : vector<16x1xf32> to vector<16x256xf32>
    %169 = vector.broadcast %167 : vector<1x256xf32> to vector<16x256xf32>
    %170 = arith.mulf %168, %169 : vector<16x256xf32>
    %171 = arith.addf %162, %170 : vector<16x256xf32>
    %c0_58 = arith.constant 0 : index
    %c0_59 = arith.constant 0 : index
    %172 = vector.load %arg9[%c0_58, %c0_59] : memref<16x256xf32, #tpu.memory_space<vmem>>, vector<16x256xf32>
    %173 = arith.subf %154, %171 : vector<16x256xf32>
    %174 = arith.addf %172, %173 : vector<16x256xf32>
    %c0_60 = arith.constant 0 : index
    %c0_61 = arith.constant 0 : index
    %175 = vector.load %arg9[%c0_60, %c0_61] : memref<16x256xf32, #tpu.memory_space<vmem>>, vector<16x256xf32>
    tpu.vector_store %arg9[%c0_60, %c0_61], %174 {strides = array<i32>} : memref<16x256xf32, #tpu.memory_space<vmem>>, vector<16x256xf32>,
    %c0_i32_62 = arith.constant 0 : i32
    %176 = arith.cmpi eq, %arg2, %c0_i32_62 : i32
    %177 = arith.extui %176 : i1 to i32
    %c0_i32_63 = arith.constant 0 : i32
    %178 = arith.cmpi ne, %177, %c0_i32_63 : i32
    scf.if %178 {
      %c0_64 = arith.constant 0 : index
      %c0_65 = arith.constant 0 : index
      %179 = vector.load %arg9[%c0_64, %c0_65] : memref<16x256xf32, #tpu.memory_space<vmem>>, vector<16x256xf32>
      %c0_66 = arith.constant 0 : index
      %c0_67 = arith.constant 0 : index
      %180 = vector.load %arg7[%c0_66, %c0_67] : memref<1x256xf32, #tpu.memory_space<vmem>>, vector<1x256xf32>
      %181 = vector.broadcast %180 : vector<1x256xf32> to vector<16x256xf32>
      %182 = arith.addf %179, %181 : vector<16x256xf32>
      %c0_68 = arith.constant 0 : index
      %c0_69 = arith.constant 0 : index
      %183 = vector.load %arg8[%c0_68, %c0_69] : memref<16x256xf32, #tpu.memory_space<vmem>>, vector<16x256xf32>
      tpu.vector_store %arg8[%c0_68, %c0_69], %182 {strides = array<i32>} : memref<16x256xf32, #tpu.memory_space<vmem>>, vector<16x256xf32>,
    } else {
    }
    return
  }
  func.func @transform_0(%arg0: i32, %arg1: i32, %arg2: i32) -> (i32, i32) {
    %c0_i32 = arith.constant 0 : i32
    return %arg0, %arg2 : i32, i32
  }
  func.func @transform_1(%arg0: i32, %arg1: i32, %arg2: i32) -> (i32, i32) {
    %c0_i32 = arith.constant 0 : i32
    return %arg2, %arg1 : i32, i32
  }
  func.func @transform_2(%arg0: i32, %arg1: i32, %arg2: i32) -> (i32, i32) {
    %c0_i32 = arith.constant 0 : i32
    return %arg2, %arg1 : i32, i32
  }
  func.func @transform_3(%arg0: i32, %arg1: i32, %arg2: i32) -> (i32, i32) {
    %c0_i32 = arith.constant 0 : i32
    return %arg2, %arg1 : i32, i32
  }
  func.func @transform_4(%arg0: i32, %arg1: i32, %arg2: i32) -> (i32, i32) {
    %c0_i32 = arith.constant 0 : i32
    %c0_i32_0 = arith.constant 0 : i32
    return %c0_i32, %arg1 : i32, i32
  }
  func.func @transform_5(%arg0: i32, %arg1: i32, %arg2: i32) -> (i32, i32) {
    %c0_i32 = arith.constant 0 : i32
    return %arg0, %arg1 : i32, i32
  }
}

module attributes {stable_mosaic.version = 11 : i64} {
  func.func @_awq_gemm_kernel(%arg0: i32, %arg1: i32, %arg2: i32, %arg3: memref<16x256xf32, #tpu.memory_space<vmem>>, %arg4: memref<32x128xi32, #tpu.memory_space<vmem>>, %arg5: memref<2x128xf32, #tpu.memory_space<vmem>>, %arg6: memref<2x128xf32, #tpu.memory_space<vmem>>, %arg7: memref<1x128xf32, #tpu.memory_space<vmem>>, %arg8: memref<16x128xf32, #tpu.memory_space<vmem>>, %arg9: memref<16x128xf32, #tpu.memory_space<vmem>>, %arg10: memref<256x128xbf16, #tpu.memory_space<vmem>>) attributes {dimension_semantics = [#tpu.dimension_semantics<parallel>, #tpu.dimension_semantics<parallel>, #tpu.dimension_semantics<arbitrary>], iteration_bounds = array<i64: 1, 2, 1>, scalar_prefetch = 0 : i64, scratch_operands = 2 : i64, tpu.core_type = #tpu.core_type<tc>, window_params = [{transform_indices = @transform_0, window_bounds = array<i64: 16, 256>}, {transform_indices = @transform_1, window_bounds = array<i64: 32, 128>}, {transform_indices = @transform_2, window_bounds = array<i64: 2, 128>}, {transform_indices = @transform_3, window_bounds = array<i64: 2, 128>}, {transform_indices = @transform_4, window_bounds = array<i64: 1, 128>}, {transform_indices = @transform_5, window_bounds = array<i64: 16, 128>}]} {
    %c0_i32 = arith.constant 0 : i32
    %0 = arith.cmpi eq, %arg2, %c0_i32 : i32
    %1 = arith.extui %0 : i1 to i32
    %c0_i32_0 = arith.constant 0 : i32
    %2 = arith.cmpi ne, %1, %c0_i32_0 : i32
    scf.if %2 {
      %cst_64 = arith.constant 0.000000e+00 : f32
      %179 = vector.broadcast %cst_64 : f32 to vector<16x128xf32>
      %c0_65 = arith.constant 0 : index
      %c0_66 = arith.constant 0 : index
      %180 = vector.load %arg9[%c0_65, %c0_66] : memref<16x128xf32, #tpu.memory_space<vmem>>, vector<16x128xf32>
      tpu.vector_store %arg9[%c0_65, %c0_66], %179 {strides = array<i32>} : memref<16x128xf32, #tpu.memory_space<vmem>>, vector<16x128xf32>,
    } else {
    }
    %c0 = arith.constant 0 : index
    %c0_1 = arith.constant 0 : index
    %3 = vector.load %arg4[%c0, %c0_1] : memref<32x128xi32, #tpu.memory_space<vmem>>, vector<16x128xi32>
    %c0_2 = arith.constant 0 : index
    %c0_3 = arith.constant 0 : index
    %4 = vector.load %arg5[%c0_2, %c0_3] : memref<2x128xf32, #tpu.memory_space<vmem>>, vector<1x128xf32>
    %c0_i32_4 = arith.constant 0 : i32
    %5 = vector.broadcast %c0_i32_4 : i32 to vector<16x128xi32>
    %6 = arith.shrsi %3, %5 : vector<16x128xi32>
    %c15_i32 = arith.constant 15 : i32
    %7 = vector.broadcast %c15_i32 : i32 to vector<16x128xi32>
    %8 = arith.andi %6, %7 : vector<16x128xi32>
    %9 = arith.sitofp %8 : vector<16x128xi32> to vector<16x128xf32>
    %10 = vector.broadcast %4 : vector<1x128xf32> to vector<16x128xf32>
    %11 = arith.mulf %9, %10 : vector<16x128xf32>
    %12 = arith.truncf %11 : vector<16x128xf32> to vector<16x128xbf16>
    %c0_5 = arith.constant 0 : index
    %c0_6 = arith.constant 0 : index
    %13 = vector.load %arg10[%c0_5, %c0_6] : memref<256x128xbf16, #tpu.memory_space<vmem>>, vector<16x128xbf16>
    tpu.vector_store %arg10[%c0_5, %c0_6], %12 {strides = array<i32>} : memref<256x128xbf16, #tpu.memory_space<vmem>>, vector<16x128xbf16>,
    %c4_i32 = arith.constant 4 : i32
    %14 = vector.broadcast %c4_i32 : i32 to vector<16x128xi32>
    %15 = arith.shrsi %3, %14 : vector<16x128xi32>
    %c15_i32_7 = arith.constant 15 : i32
    %16 = vector.broadcast %c15_i32_7 : i32 to vector<16x128xi32>
    %17 = arith.andi %15, %16 : vector<16x128xi32>
    %18 = arith.sitofp %17 : vector<16x128xi32> to vector<16x128xf32>
    %19 = vector.broadcast %4 : vector<1x128xf32> to vector<16x128xf32>
    %20 = arith.mulf %18, %19 : vector<16x128xf32>
    %21 = arith.truncf %20 : vector<16x128xf32> to vector<16x128xbf16>
    %c16 = arith.constant 16 : index
    %c0_8 = arith.constant 0 : index
    %22 = vector.load %arg10[%c16, %c0_8] : memref<256x128xbf16, #tpu.memory_space<vmem>>, vector<16x128xbf16>
    tpu.vector_store %arg10[%c16, %c0_8], %21 {strides = array<i32>} : memref<256x128xbf16, #tpu.memory_space<vmem>>, vector<16x128xbf16>,
    %c8_i32 = arith.constant 8 : i32
    %23 = vector.broadcast %c8_i32 : i32 to vector<16x128xi32>
    %24 = arith.shrsi %3, %23 : vector<16x128xi32>
    %c15_i32_9 = arith.constant 15 : i32
    %25 = vector.broadcast %c15_i32_9 : i32 to vector<16x128xi32>
    %26 = arith.andi %24, %25 : vector<16x128xi32>
    %27 = arith.sitofp %26 : vector<16x128xi32> to vector<16x128xf32>
    %28 = vector.broadcast %4 : vector<1x128xf32> to vector<16x128xf32>
    %29 = arith.mulf %27, %28 : vector<16x128xf32>
    %30 = arith.truncf %29 : vector<16x128xf32> to vector<16x128xbf16>
    %c32 = arith.constant 32 : index
    %c0_10 = arith.constant 0 : index
    %31 = vector.load %arg10[%c32, %c0_10] : memref<256x128xbf16, #tpu.memory_space<vmem>>, vector<16x128xbf16>
    tpu.vector_store %arg10[%c32, %c0_10], %30 {strides = array<i32>} : memref<256x128xbf16, #tpu.memory_space<vmem>>, vector<16x128xbf16>,
    %c12_i32 = arith.constant 12 : i32
    %32 = vector.broadcast %c12_i32 : i32 to vector<16x128xi32>
    %33 = arith.shrsi %3, %32 : vector<16x128xi32>
    %c15_i32_11 = arith.constant 15 : i32
    %34 = vector.broadcast %c15_i32_11 : i32 to vector<16x128xi32>
    %35 = arith.andi %33, %34 : vector<16x128xi32>
    %36 = arith.sitofp %35 : vector<16x128xi32> to vector<16x128xf32>
    %37 = vector.broadcast %4 : vector<1x128xf32> to vector<16x128xf32>
    %38 = arith.mulf %36, %37 : vector<16x128xf32>
    %39 = arith.truncf %38 : vector<16x128xf32> to vector<16x128xbf16>
    %c48 = arith.constant 48 : index
    %c0_12 = arith.constant 0 : index
    %40 = vector.load %arg10[%c48, %c0_12] : memref<256x128xbf16, #tpu.memory_space<vmem>>, vector<16x128xbf16>
    tpu.vector_store %arg10[%c48, %c0_12], %39 {strides = array<i32>} : memref<256x128xbf16, #tpu.memory_space<vmem>>, vector<16x128xbf16>,
    %c16_i32 = arith.constant 16 : i32
    %41 = vector.broadcast %c16_i32 : i32 to vector<16x128xi32>
    %42 = arith.shrsi %3, %41 : vector<16x128xi32>
    %c15_i32_13 = arith.constant 15 : i32
    %43 = vector.broadcast %c15_i32_13 : i32 to vector<16x128xi32>
    %44 = arith.andi %42, %43 : vector<16x128xi32>
    %45 = arith.sitofp %44 : vector<16x128xi32> to vector<16x128xf32>
    %46 = vector.broadcast %4 : vector<1x128xf32> to vector<16x128xf32>
    %47 = arith.mulf %45, %46 : vector<16x128xf32>
    %48 = arith.truncf %47 : vector<16x128xf32> to vector<16x128xbf16>
    %c64 = arith.constant 64 : index
    %c0_14 = arith.constant 0 : index
    %49 = vector.load %arg10[%c64, %c0_14] : memref<256x128xbf16, #tpu.memory_space<vmem>>, vector<16x128xbf16>
    tpu.vector_store %arg10[%c64, %c0_14], %48 {strides = array<i32>} : memref<256x128xbf16, #tpu.memory_space<vmem>>, vector<16x128xbf16>,
    %c20_i32 = arith.constant 20 : i32
    %50 = vector.broadcast %c20_i32 : i32 to vector<16x128xi32>
    %51 = arith.shrsi %3, %50 : vector<16x128xi32>
    %c15_i32_15 = arith.constant 15 : i32
    %52 = vector.broadcast %c15_i32_15 : i32 to vector<16x128xi32>
    %53 = arith.andi %51, %52 : vector<16x128xi32>
    %54 = arith.sitofp %53 : vector<16x128xi32> to vector<16x128xf32>
    %55 = vector.broadcast %4 : vector<1x128xf32> to vector<16x128xf32>
    %56 = arith.mulf %54, %55 : vector<16x128xf32>
    %57 = arith.truncf %56 : vector<16x128xf32> to vector<16x128xbf16>
    %c80 = arith.constant 80 : index
    %c0_16 = arith.constant 0 : index
    %58 = vector.load %arg10[%c80, %c0_16] : memref<256x128xbf16, #tpu.memory_space<vmem>>, vector<16x128xbf16>
    tpu.vector_store %arg10[%c80, %c0_16], %57 {strides = array<i32>} : memref<256x128xbf16, #tpu.memory_space<vmem>>, vector<16x128xbf16>,
    %c24_i32 = arith.constant 24 : i32
    %59 = vector.broadcast %c24_i32 : i32 to vector<16x128xi32>
    %60 = arith.shrsi %3, %59 : vector<16x128xi32>
    %c15_i32_17 = arith.constant 15 : i32
    %61 = vector.broadcast %c15_i32_17 : i32 to vector<16x128xi32>
    %62 = arith.andi %60, %61 : vector<16x128xi32>
    %63 = arith.sitofp %62 : vector<16x128xi32> to vector<16x128xf32>
    %64 = vector.broadcast %4 : vector<1x128xf32> to vector<16x128xf32>
    %65 = arith.mulf %63, %64 : vector<16x128xf32>
    %66 = arith.truncf %65 : vector<16x128xf32> to vector<16x128xbf16>
    %c96 = arith.constant 96 : index
    %c0_18 = arith.constant 0 : index
    %67 = vector.load %arg10[%c96, %c0_18] : memref<256x128xbf16, #tpu.memory_space<vmem>>, vector<16x128xbf16>
    tpu.vector_store %arg10[%c96, %c0_18], %66 {strides = array<i32>} : memref<256x128xbf16, #tpu.memory_space<vmem>>, vector<16x128xbf16>,
    %c28_i32 = arith.constant 28 : i32
    %68 = vector.broadcast %c28_i32 : i32 to vector<16x128xi32>
    %69 = arith.shrsi %3, %68 : vector<16x128xi32>
    %c15_i32_19 = arith.constant 15 : i32
    %70 = vector.broadcast %c15_i32_19 : i32 to vector<16x128xi32>
    %71 = arith.andi %69, %70 : vector<16x128xi32>
    %72 = arith.sitofp %71 : vector<16x128xi32> to vector<16x128xf32>
    %73 = vector.broadcast %4 : vector<1x128xf32> to vector<16x128xf32>
    %74 = arith.mulf %72, %73 : vector<16x128xf32>
    %75 = arith.truncf %74 : vector<16x128xf32> to vector<16x128xbf16>
    %c112 = arith.constant 112 : index
    %c0_20 = arith.constant 0 : index
    %76 = vector.load %arg10[%c112, %c0_20] : memref<256x128xbf16, #tpu.memory_space<vmem>>, vector<16x128xbf16>
    tpu.vector_store %arg10[%c112, %c0_20], %75 {strides = array<i32>} : memref<256x128xbf16, #tpu.memory_space<vmem>>, vector<16x128xbf16>,
    %c16_21 = arith.constant 16 : index
    %c0_22 = arith.constant 0 : index
    %77 = vector.load %arg4[%c16_21, %c0_22] : memref<32x128xi32, #tpu.memory_space<vmem>>, vector<16x128xi32>
    %c1 = arith.constant 1 : index
    %c0_23 = arith.constant 0 : index
    %78 = vector.load %arg5[%c1, %c0_23] : memref<2x128xf32, #tpu.memory_space<vmem>>, vector<1x128xf32>
    %c0_i32_24 = arith.constant 0 : i32
    %79 = vector.broadcast %c0_i32_24 : i32 to vector<16x128xi32>
    %80 = arith.shrsi %77, %79 : vector<16x128xi32>
    %c15_i32_25 = arith.constant 15 : i32
    %81 = vector.broadcast %c15_i32_25 : i32 to vector<16x128xi32>
    %82 = arith.andi %80, %81 : vector<16x128xi32>
    %83 = arith.sitofp %82 : vector<16x128xi32> to vector<16x128xf32>
    %84 = vector.broadcast %78 : vector<1x128xf32> to vector<16x128xf32>
    %85 = arith.mulf %83, %84 : vector<16x128xf32>
    %86 = arith.truncf %85 : vector<16x128xf32> to vector<16x128xbf16>
    %c128 = arith.constant 128 : index
    %c0_26 = arith.constant 0 : index
    %87 = vector.load %arg10[%c128, %c0_26] : memref<256x128xbf16, #tpu.memory_space<vmem>>, vector<16x128xbf16>
    tpu.vector_store %arg10[%c128, %c0_26], %86 {strides = array<i32>} : memref<256x128xbf16, #tpu.memory_space<vmem>>, vector<16x128xbf16>,
    %c4_i32_27 = arith.constant 4 : i32
    %88 = vector.broadcast %c4_i32_27 : i32 to vector<16x128xi32>
    %89 = arith.shrsi %77, %88 : vector<16x128xi32>
    %c15_i32_28 = arith.constant 15 : i32
    %90 = vector.broadcast %c15_i32_28 : i32 to vector<16x128xi32>
    %91 = arith.andi %89, %90 : vector<16x128xi32>
    %92 = arith.sitofp %91 : vector<16x128xi32> to vector<16x128xf32>
    %93 = vector.broadcast %78 : vector<1x128xf32> to vector<16x128xf32>
    %94 = arith.mulf %92, %93 : vector<16x128xf32>
    %95 = arith.truncf %94 : vector<16x128xf32> to vector<16x128xbf16>
    %c144 = arith.constant 144 : index
    %c0_29 = arith.constant 0 : index
    %96 = vector.load %arg10[%c144, %c0_29] : memref<256x128xbf16, #tpu.memory_space<vmem>>, vector<16x128xbf16>
    tpu.vector_store %arg10[%c144, %c0_29], %95 {strides = array<i32>} : memref<256x128xbf16, #tpu.memory_space<vmem>>, vector<16x128xbf16>,
    %c8_i32_30 = arith.constant 8 : i32
    %97 = vector.broadcast %c8_i32_30 : i32 to vector<16x128xi32>
    %98 = arith.shrsi %77, %97 : vector<16x128xi32>
    %c15_i32_31 = arith.constant 15 : i32
    %99 = vector.broadcast %c15_i32_31 : i32 to vector<16x128xi32>
    %100 = arith.andi %98, %99 : vector<16x128xi32>
    %101 = arith.sitofp %100 : vector<16x128xi32> to vector<16x128xf32>
    %102 = vector.broadcast %78 : vector<1x128xf32> to vector<16x128xf32>
    %103 = arith.mulf %101, %102 : vector<16x128xf32>
    %104 = arith.truncf %103 : vector<16x128xf32> to vector<16x128xbf16>
    %c160 = arith.constant 160 : index
    %c0_32 = arith.constant 0 : index
    %105 = vector.load %arg10[%c160, %c0_32] : memref<256x128xbf16, #tpu.memory_space<vmem>>, vector<16x128xbf16>
    tpu.vector_store %arg10[%c160, %c0_32], %104 {strides = array<i32>} : memref<256x128xbf16, #tpu.memory_space<vmem>>, vector<16x128xbf16>,
    %c12_i32_33 = arith.constant 12 : i32
    %106 = vector.broadcast %c12_i32_33 : i32 to vector<16x128xi32>
    %107 = arith.shrsi %77, %106 : vector<16x128xi32>
    %c15_i32_34 = arith.constant 15 : i32
    %108 = vector.broadcast %c15_i32_34 : i32 to vector<16x128xi32>
    %109 = arith.andi %107, %108 : vector<16x128xi32>
    %110 = arith.sitofp %109 : vector<16x128xi32> to vector<16x128xf32>
    %111 = vector.broadcast %78 : vector<1x128xf32> to vector<16x128xf32>
    %112 = arith.mulf %110, %111 : vector<16x128xf32>
    %113 = arith.truncf %112 : vector<16x128xf32> to vector<16x128xbf16>
    %c176 = arith.constant 176 : index
    %c0_35 = arith.constant 0 : index
    %114 = vector.load %arg10[%c176, %c0_35] : memref<256x128xbf16, #tpu.memory_space<vmem>>, vector<16x128xbf16>
    tpu.vector_store %arg10[%c176, %c0_35], %113 {strides = array<i32>} : memref<256x128xbf16, #tpu.memory_space<vmem>>, vector<16x128xbf16>,
    %c16_i32_36 = arith.constant 16 : i32
    %115 = vector.broadcast %c16_i32_36 : i32 to vector<16x128xi32>
    %116 = arith.shrsi %77, %115 : vector<16x128xi32>
    %c15_i32_37 = arith.constant 15 : i32
    %117 = vector.broadcast %c15_i32_37 : i32 to vector<16x128xi32>
    %118 = arith.andi %116, %117 : vector<16x128xi32>
    %119 = arith.sitofp %118 : vector<16x128xi32> to vector<16x128xf32>
    %120 = vector.broadcast %78 : vector<1x128xf32> to vector<16x128xf32>
    %121 = arith.mulf %119, %120 : vector<16x128xf32>
    %122 = arith.truncf %121 : vector<16x128xf32> to vector<16x128xbf16>
    %c192 = arith.constant 192 : index
    %c0_38 = arith.constant 0 : index
    %123 = vector.load %arg10[%c192, %c0_38] : memref<256x128xbf16, #tpu.memory_space<vmem>>, vector<16x128xbf16>
    tpu.vector_store %arg10[%c192, %c0_38], %122 {strides = array<i32>} : memref<256x128xbf16, #tpu.memory_space<vmem>>, vector<16x128xbf16>,
    %c20_i32_39 = arith.constant 20 : i32
    %124 = vector.broadcast %c20_i32_39 : i32 to vector<16x128xi32>
    %125 = arith.shrsi %77, %124 : vector<16x128xi32>
    %c15_i32_40 = arith.constant 15 : i32
    %126 = vector.broadcast %c15_i32_40 : i32 to vector<16x128xi32>
    %127 = arith.andi %125, %126 : vector<16x128xi32>
    %128 = arith.sitofp %127 : vector<16x128xi32> to vector<16x128xf32>
    %129 = vector.broadcast %78 : vector<1x128xf32> to vector<16x128xf32>
    %130 = arith.mulf %128, %129 : vector<16x128xf32>
    %131 = arith.truncf %130 : vector<16x128xf32> to vector<16x128xbf16>
    %c208 = arith.constant 208 : index
    %c0_41 = arith.constant 0 : index
    %132 = vector.load %arg10[%c208, %c0_41] : memref<256x128xbf16, #tpu.memory_space<vmem>>, vector<16x128xbf16>
    tpu.vector_store %arg10[%c208, %c0_41], %131 {strides = array<i32>} : memref<256x128xbf16, #tpu.memory_space<vmem>>, vector<16x128xbf16>,
    %c24_i32_42 = arith.constant 24 : i32
    %133 = vector.broadcast %c24_i32_42 : i32 to vector<16x128xi32>
    %134 = arith.shrsi %77, %133 : vector<16x128xi32>
    %c15_i32_43 = arith.constant 15 : i32
    %135 = vector.broadcast %c15_i32_43 : i32 to vector<16x128xi32>
    %136 = arith.andi %134, %135 : vector<16x128xi32>
    %137 = arith.sitofp %136 : vector<16x128xi32> to vector<16x128xf32>
    %138 = vector.broadcast %78 : vector<1x128xf32> to vector<16x128xf32>
    %139 = arith.mulf %137, %138 : vector<16x128xf32>
    %140 = arith.truncf %139 : vector<16x128xf32> to vector<16x128xbf16>
    %c224 = arith.constant 224 : index
    %c0_44 = arith.constant 0 : index
    %141 = vector.load %arg10[%c224, %c0_44] : memref<256x128xbf16, #tpu.memory_space<vmem>>, vector<16x128xbf16>
    tpu.vector_store %arg10[%c224, %c0_44], %140 {strides = array<i32>} : memref<256x128xbf16, #tpu.memory_space<vmem>>, vector<16x128xbf16>,
    %c28_i32_45 = arith.constant 28 : i32
    %142 = vector.broadcast %c28_i32_45 : i32 to vector<16x128xi32>
    %143 = arith.shrsi %77, %142 : vector<16x128xi32>
    %c15_i32_46 = arith.constant 15 : i32
    %144 = vector.broadcast %c15_i32_46 : i32 to vector<16x128xi32>
    %145 = arith.andi %143, %144 : vector<16x128xi32>
    %146 = arith.sitofp %145 : vector<16x128xi32> to vector<16x128xf32>
    %147 = vector.broadcast %78 : vector<1x128xf32> to vector<16x128xf32>
    %148 = arith.mulf %146, %147 : vector<16x128xf32>
    %149 = arith.truncf %148 : vector<16x128xf32> to vector<16x128xbf16>
    %c240 = arith.constant 240 : index
    %c0_47 = arith.constant 0 : index
    %150 = vector.load %arg10[%c240, %c0_47] : memref<256x128xbf16, #tpu.memory_space<vmem>>, vector<16x128xbf16>
    tpu.vector_store %arg10[%c240, %c0_47], %149 {strides = array<i32>} : memref<256x128xbf16, #tpu.memory_space<vmem>>, vector<16x128xbf16>,
    %c0_48 = arith.constant 0 : index
    %c0_49 = arith.constant 0 : index
    %151 = vector.load %arg3[%c0_48, %c0_49] : memref<16x256xf32, #tpu.memory_space<vmem>>, vector<16x256xf32>
    %152 = arith.truncf %151 : vector<16x256xf32> to vector<16x256xbf16>
    %c0_50 = arith.constant 0 : index
    %c0_51 = arith.constant 0 : index
    %153 = vector.load %arg10[%c0_50, %c0_51] : memref<256x128xbf16, #tpu.memory_space<vmem>>, vector<256x128xbf16>
    %cst = arith.constant dense<0.000000e+00> : vector<16x128xf32>
    %154 = tpu.matmul %152, %153, %cst {dimension_numbers = #tpu.dot_dimension_numbers<[1], [0], [0], [1], [0, 0, 1, 1], [], []>} : vector<16x256xbf16>, vector<256x128xbf16>, vector<16x128xf32> -> vector<16x128xf32>
    %155 = vector.extract_strided_slice %152 {offsets = [0, 0], sizes = [16, 128], strides = [1, 1]} : vector<16x256xbf16> to vector<16x128xbf16>
    %156 = arith.extf %155 : vector<16x128xbf16> to vector<16x128xf32>
    %cst_52 = arith.constant dense<0.000000e+00> : vector<16xf32>
    %157 = vector.multi_reduction <add>, %156, %cst_52 [1] : vector<16x128xf32> to vector<16xf32>
    %158 = vector.shape_cast %157 : vector<16xf32> to vector<16x1xf32>
    %c0_53 = arith.constant 0 : index
    %c0_54 = arith.constant 0 : index
    %159 = vector.load %arg6[%c0_53, %c0_54] : memref<2x128xf32, #tpu.memory_space<vmem>>, vector<1x128xf32>
    %160 = vector.broadcast %158 : vector<16x1xf32> to vector<16x128xf32>
    %161 = vector.broadcast %159 : vector<1x128xf32> to vector<16x128xf32>
    %162 = arith.mulf %160, %161 : vector<16x128xf32>
    %163 = vector.extract_strided_slice %152 {offsets = [0, 128], sizes = [16, 128], strides = [1, 1]} : vector<16x256xbf16> to vector<16x128xbf16>
    %164 = arith.extf %163 : vector<16x128xbf16> to vector<16x128xf32>
    %cst_55 = arith.constant dense<0.000000e+00> : vector<16xf32>
    %165 = vector.multi_reduction <add>, %164, %cst_55 [1] : vector<16x128xf32> to vector<16xf32>
    %166 = vector.shape_cast %165 : vector<16xf32> to vector<16x1xf32>
    %c1_56 = arith.constant 1 : index
    %c0_57 = arith.constant 0 : index
    %167 = vector.load %arg6[%c1_56, %c0_57] : memref<2x128xf32, #tpu.memory_space<vmem>>, vector<1x128xf32>
    %168 = vector.broadcast %166 : vector<16x1xf32> to vector<16x128xf32>
    %169 = vector.broadcast %167 : vector<1x128xf32> to vector<16x128xf32>
    %170 = arith.mulf %168, %169 : vector<16x128xf32>
    %171 = arith.addf %162, %170 : vector<16x128xf32>
    %c0_58 = arith.constant 0 : index
    %c0_59 = arith.constant 0 : index
    %172 = vector.load %arg9[%c0_58, %c0_59] : memref<16x128xf32, #tpu.memory_space<vmem>>, vector<16x128xf32>
    %173 = arith.subf %154, %171 : vector<16x128xf32>
    %174 = arith.addf %172, %173 : vector<16x128xf32>
    %c0_60 = arith.constant 0 : index
    %c0_61 = arith.constant 0 : index
    %175 = vector.load %arg9[%c0_60, %c0_61] : memref<16x128xf32, #tpu.memory_space<vmem>>, vector<16x128xf32>
    tpu.vector_store %arg9[%c0_60, %c0_61], %174 {strides = array<i32>} : memref<16x128xf32, #tpu.memory_space<vmem>>, vector<16x128xf32>,
    %c0_i32_62 = arith.constant 0 : i32
    %176 = arith.cmpi eq, %arg2, %c0_i32_62 : i32
    %177 = arith.extui %176 : i1 to i32
    %c0_i32_63 = arith.constant 0 : i32
    %178 = arith.cmpi ne, %177, %c0_i32_63 : i32
    scf.if %178 {
      %c0_64 = arith.constant 0 : index
      %c0_65 = arith.constant 0 : index
      %179 = vector.load %arg9[%c0_64, %c0_65] : memref<16x128xf32, #tpu.memory_space<vmem>>, vector<16x128xf32>
      %c0_66 = arith.constant 0 : index
      %c0_67 = arith.constant 0 : index
      %180 = vector.load %arg7[%c0_66, %c0_67] : memref<1x128xf32, #tpu.memory_space<vmem>>, vector<1x128xf32>
      %181 = vector.broadcast %180 : vector<1x128xf32> to vector<16x128xf32>
      %182 = arith.addf %179, %181 : vector<16x128xf32>
      %c0_68 = arith.constant 0 : index
      %c0_69 = arith.constant 0 : index
      %183 = vector.load %arg8[%c0_68, %c0_69] : memref<16x128xf32, #tpu.memory_space<vmem>>, vector<16x128xf32>
      tpu.vector_store %arg8[%c0_68, %c0_69], %182 {strides = array<i32>} : memref<16x128xf32, #tpu.memory_space<vmem>>, vector<16x128xf32>,
    } else {
    }
    return
  }
  func.func @transform_0(%arg0: i32, %arg1: i32, %arg2: i32) -> (i32, i32) {
    %c0_i32 = arith.constant 0 : i32
    return %arg0, %arg2 : i32, i32
  }
  func.func @transform_1(%arg0: i32, %arg1: i32, %arg2: i32) -> (i32, i32) {
    %c0_i32 = arith.constant 0 : i32
    return %arg2, %arg1 : i32, i32
  }
  func.func @transform_2(%arg0: i32, %arg1: i32, %arg2: i32) -> (i32, i32) {
    %c0_i32 = arith.constant 0 : i32
    return %arg2, %arg1 : i32, i32
  }
  func.func @transform_3(%arg0: i32, %arg1: i32, %arg2: i32) -> (i32, i32) {
    %c0_i32 = arith.constant 0 : i32
    return %arg2, %arg1 : i32, i32
  }
  func.func @transform_4(%arg0: i32, %arg1: i32, %arg2: i32) -> (i32, i32) {
    %c0_i32 = arith.constant 0 : i32
    %c0_i32_0 = arith.constant 0 : i32
    return %c0_i32, %arg1 : i32, i32
  }
  func.func @transform_5(%arg0: i32, %arg1: i32, %arg2: i32) -> (i32, i32) {
    %c0_i32 = arith.constant 0 : i32
    return %arg0, %arg1 : i32, i32
  }
}

</mosaic_0001>

<bundles_post_ra>
// kernel: _lambda_.6
= control target key start
LH: loop header
LB: loop body
LE: loop exit
PB: predicated region body
PF: predicated region fallthrough
CT: control target
= control target key end

     0   :  { %s1045_s18 = smov 0   ;;  %s1047_s19 = smov 0   ;;  %s1233_s0 = inlined_call_operand.vmem [shape: f32[16,256], index: 0, kind: input, shape index: {}]   ;;  %s1234_s1 = inlined_call_operand.vmem [shape: s32[32,256], index: 1, kind: input, shape index: {}]   ;;  %s1235_s2 = inlined_call_operand.vmem [shape: f32[2,256], index: 2, kind: input, shape index: {}]   ;;  %s1236_s3 = inlined_call_operand.vmem [shape: f32[2,256], index: 3, kind: input, shape index: {}]   ;;  %s1237_s4 = inlined_call_operand.vmem [shape: f32[1,256], index: 4, kind: input, shape index: {}]   ;;  %s1238_s5 = inlined_call_operand.vmem [shape: f32[16,256], index: 5, kind: output, shape index: {}]  }
   0x1   :  { %s1049_s20 = smov 0   ;;  %s1051_s21 = smov 0  }
   0x2   :  { %s1053_s22 = smov 0  }
   0x3 LB: > { %s30_s23 = sadd.s32 1, %s1009_s21  ;;  %s888_s24 = sadd.s32 4294967295, %s1013_s22   ;;  %s1013_s22 = sphi %s1053_s22, %s15_s22   ;;  %s1009_s21 = sphi %s1051_s21, %s1243_s21   ;;  %s1005_s20 = sphi %s1049_s20, %s1242_s20   ;;  %s1001_s19 = sphi %s1047_s19, %s1241_s19   ;;  %s997_s18 = sphi %s1045_s18, %s1240_s18  }
   0x4   : > { %p32_p0 = scmp.ge.s32.totalorder %s30_s23, 2  ;;  %p78_p1 = scmp.ne.s32.totalorder %s1001_s19, %s997_s18 }
   0x5   : > { %p79_p2 = scmp.eq.s32.totalorder %s1013_s22, 0  ;;  %p192_p4 = scmp.eq.s32.totalorder %s888_s24, 1 }
   0x6   : > { %s1245_s23 = smov (%p32_p0, %s30_s23), 0  ;;  %s71_s26 = sadd.s32 1, %s1001_s19 }
   0x7   : > { %p80_p3 = por %p79_p2, %p78_p1  ;;  %s67_s25 = ssub.s32 %s1009_s21, %s1245_s23 }
   0x8   : > { %p69_p5 = scmp.eq.s32.totalorder %s67_s25, 0  ;;  %p1080_p6 = por %p192_p4, %p78_p1 }
   0x9   : > { %p892_p7 = scmp.ge.s32.totalorder %s1013_s22, 2 }
   0xa   : > { %s1085_s28 = scalar_select %p69_p5, %s1001_s19, %s71_s26  }
   0xb   : > { %229 = sbr.rel (%p892_p7) target bundleno = 25 (0x19), region = 20 }
  0x12   : > { %232 = sbr.rel (!%p80_p3) target bundleno = 25 (0x19), region = 24  ;;  %s234_s29 = sand.u32 (%p80_p3), 1, %s1001_s19  }
  0x13   : > { %s894_s30 = sshll.u32 (%p80_p3), %s1009_s21, 3  ;;  %s893_s6 = sshll.u32 (%p80_p3), %s234_s29, 5 }
  0x14   : > { %s241_s9 = scalar_lea.vmem (%p80_p3), %s1234_s1, %s894_s30  ;;  %s236_s10 = scalar_lea.vmem (%p80_p3), [#allocation4], %s893_s6 }
  0x15   : > { %v275_v0 = vld [vmem:[%s241_s9] sm:$0xff] (%p80_p3)  ;;  %v277_v1 = vld [vmem:[%s241_s9 + $0x10] sm:$0xff] (%p80_p3) }
  0x16   : > { %v279_v2 = vld [vmem:[%s241_s9 + $0x20] sm:$0xff] (%p80_p3)  ;;  %276 = vst [vmem:[%s236_s10] sm:$0xff] (%p80_p3), %v275_v0  ;;  %278 = vst [vmem:[%s236_s10 + $0x8] sm:$0xff] (%p80_p3), %v277_v1  ;;  %v281_v3 = vld [vmem:[%s241_s9 + $0x30] sm:$0xff] (%p80_p3) }
  0x17   : > { %280 = vst [vmem:[%s236_s10 + $0x10] sm:$0xff] (%p80_p3), %v279_v2  ;;  %282 = vst [vmem:[%s236_s10 + $0x18] sm:$0xff] (%p80_p3), %v281_v3 }
  0x19 PF: > { %p895_p8 = scmp.ge.s32.totalorder %s1013_s22, 1  ;;  %p315_p9 = scmp.lt.s32.totalorder %s1013_s22, 3 }
  0x1b   : > { %p316_p10 = pnand %p895_p8, %p315_p9 }
  0x1c   : > { %s322_s11 = sand.u32 (!%p316_p10), 1, %s997_s18   ;;  %p392_p11 = scmp.lt.s32.totalorder (!%p316_p10), %s1005_s20, 1  ;;  %v588_v4 = vld [vmem:[%s1233_s0 + $0x8] sm:$0xff] (!%p316_p10)  ;;  %v590_v5 = vld [vmem:[%s1233_s0 + $0x18] sm:$0xff] (!%p316_p10)  ;;  %v587_v6 = vld [vmem:[%s1233_s0] sm:$0xff] (!%p316_p10) }
  0x1d   : > { %319 = sbr.rel (%p316_p10) target bundleno = 307 (0x133), region = 74  ;;  %s896_s24 = sshll.u32 (!%p316_p10), %s322_s11, 5  ;;  %v592_v7 = vpack.c.bf16 (!%p316_p10), %v590_v5, %v588_v4  ;;  %v589_v8 = vld [vmem:[%s1233_s0 + $0x10] sm:$0xff] (!%p316_p10) }
  0x1e   : > { %s324_s30 = scalar_lea.vmem (!%p316_p10), [#allocation4], %s896_s24  ;;  %v1120_v12 = vpack.c.bf16 (!%p316_p10), %v589_v8, %v587_v6  ;;  %s897_s17 = sshll.u32 (!%p316_p10), %s322_s11, 4 }
  0x1f   : > { %v1114_v9 = vld [vmem:[%s324_s30 + $0x10] sm:$0xff] (!%p316_p10)  ;;  %v1116_v10 = vld [vmem:[%s324_s30 + $0x18] sm:$0xff] (!%p316_p10)  ;;  %v1118_v11 = vld [vmem:[%s324_s30] sm:$0xff] (!%p316_p10)  ;;  %641 = vmatprep.mubr.bf16.mxu0 (!%p316_p10), %v592_v7  ;;  %v663_v13 = vunpack.c.l.bf16 (!%p316_p10), %v592_v7  ;;  %v664_v14 = vunpack.c.h.bf16 (!%p316_p10), %v592_v7  ;;  %s376_s24 = scalar_lea.vmem (!%p316_p10), [#allocation5], %s897_s17 }
  0x20   : > { %v505_v15 = vand.u32 (!%p316_p10), 15, %v1114_v9  ;;  %v506_v16 = vand.u32 (!%p316_p10), 15, %v1116_v10  ;;  %v1124_v17 = vld [vmem:[%s324_s30 + $0x8] sm:$0xff] (!%p316_p10)  ;;  %v420_v18 = vand.u32 (!%p316_p10), 15, %v1118_v11  ;;  %v517_v19 = vshra.s32 (!%p316_p10), %v1114_v9, 4 }
  0x21   : > { %v421_v20 = vand.u32 (!%p316_p10), 15, %v1124_v17  ;;  %v518_v21 = vshra.s32 (!%p316_p10), %v1116_v10, 4  ;;  %v432_v22 = vshra.s32 (!%p316_p10), %v1118_v11, 4  ;;  %v433_v23 = vshra.s32 (!%p316_p10), %v1124_v17, 4  ;;  %665 = vadd.xlane.f32.xlu1 (!%p316_p10), %v663_v13 }
  0x22   : > { %v507_v24 = vcvt.s32.f32 (!%p316_p10), %v505_v15  ;;  %v508_v25 = vcvt.s32.f32 (!%p316_p10), %v506_v16  ;;  %v422_v26 = vcvt.s32.f32 (!%p316_p10), %v420_v18  ;;  %v519_v27 = vand.u32 (!%p316_p10), 15, %v517_v19 }
  0x23   : > { %v423_v30 = vcvt.s32.f32 (!%p316_p10), %v421_v20  ;;  %v520_v31 = vand.u32 (!%p316_p10), 15, %v518_v21  ;;  %v434_v32 = vand.u32 (!%p316_p10), 15, %v432_v22  ;;  %v650_v33 = vunpack.c.l.bf16 (!%p316_p10), %v1120_v12 }
  0x24   : > { %s1112_s29 = scalar_select %p392_p11, %s1005_s20, 1  ;;  %v521_v37 = vcvt.s32.f32 %v519_v27  ;;  %v435_v40 = vand.u32 15, %v433_v23  ;;  %v527_v44 = vshra.s32 %v1114_v9, 8  ;;  %v528_v45 = vshra.s32 %v1116_v10, 8 }
  0x25   : > { %v522_v39 = vcvt.s32.f32 %v520_v31  ;;  %v436_v41 = vcvt.s32.f32 %v434_v32  ;;  %652 = vadd.xlane.f32.xlu0 %v650_v33  ;;  %667 = vadd.xlane.f32.xlu1 %v664_v14  ;;  %v442_v52 = vshra.s32 %v1118_v11, 8  ;;  %v443_v53 = vshra.s32 %v1124_v17, 8  ;;  %s910_s25 = sshll.u32 (%p1080_p6), %s1005_s20, 3 }
  0x26   : > { %s898_s6 = sshll.u32 %s1112_s29, 1  ;;  %v437_v48 = vcvt.s32.f32 %v435_v40  ;;  %v529_v50 = vand.u32 15, %v527_v44  ;;  %v530_v51 = vand.u32 15, %v528_v45  ;;  %v537_v56 = vshra.s32 %v1114_v9, 12  ;;  %s408_s16 = scalar_lea.vmem %s1237_s4, %s1112_s29 }
  0x27   : > { %s397_s9 = scalar_lea.vmem %s1235_s2, %s898_s6  ;;  %v538_v57 = vshra.s32 %v1116_v10, 12  ;;  %v444_v60 = vand.u32 15, %v442_v52  ;;  %v445_v61 = vand.u32 15, %v443_v53  ;;  %v452_v1 = vshra.s32 %v1118_v11, 12  ;;  %s405_s13 = scalar_lea.vmem %s1236_s3, %s898_s6 }
  0x28   : > { %v1138_v28 = vld [vmem:[%s397_s9 + $0x1] ss:$0 sm:$0xff]  ;;  %v1140_v29 = vld [vmem:[%s397_s9] ss:$0 sm:$0xff]  ;;  %v531_v58 = vcvt.s32.f32 %v529_v50  ;;  %v532_v59 = vcvt.s32.f32 %v530_v51  ;;  %v539_v63 = vand.u32 15, %v537_v56  ;;  %v453_v8 = vshra.s32 %v1124_v17, 12  ;;  %s713_s26 = scalar_lea.vmem (%p1080_p6), %s1238_s5, %s910_s25 }
  0x29   : > { %v513_v34 = vmul.f32 %v1138_v28, %v507_v24  ;;  %v514_v35 = vmul.f32 %v1138_v28, %v508_v25  ;;  %v428_v36 = vmul.f32 %v1140_v29, %v422_v26  ;;  %v429_v38 = vmul.f32 %v1140_v29, %v423_v30 }
  0x2a   : > { %v523_v43 = vmul.f32 %v1138_v28, %v521_v37  ;;  %v524_v47 = vmul.f32 %v1138_v28, %v522_v39  ;;  %v438_v49 = vmul.f32 %v1140_v29, %v436_v41  ;;  %v439_v55 = vmul.f32 %v1140_v29, %v437_v48 }
  0x2b   : > { %v515_v42 = vpack.c.bf16 %v514_v35, %v513_v34  ;;  %v430_v46 = vpack.c.bf16 %v429_v38, %v428_v36  ;;  %v540_v0 = vand.u32 15, %v538_v57  ;;  %v533_v2 = vmul.f32 %v1138_v28, %v531_v58 }
  0x2c   : > { %v525_v54 = vpack.c.bf16 %v524_v47, %v523_v43  ;;  %v440_v62 = vpack.c.bf16 %v439_v55, %v438_v49  ;;  %v534_v3 = vmul.f32 %v1138_v28, %v532_v59  ;;  %v446_v4 = vcvt.s32.f32 %v444_v60 }
  0x2d   : > { %913 = vmatprep.subr.bf16.mxu0 %v515_v42  ;;  %v447_v5 = vcvt.s32.f32 %v445_v61  ;;  %v541_v6 = vcvt.s32.f32 %v539_v63  ;;  %v542_v7 = vcvt.s32.f32 %v540_v0  ;;  %v454_v13 = vand.u32 15, %v452_v1 }
  0x2e   : > { %914 = vmatpush3.bf16.msra.mxu0 %v430_v46  ;;  %v535_v14 = vpack.c.bf16 %v534_v3, %v533_v2  ;;  %v448_v15 = vmul.f32 %v1140_v29, %v446_v4  ;;  %v547_v18 = vshra.s32 %v1114_v9, 16  ;;  %v455_v21 = vand.u32 15, %v453_v8 }
  0x2f   : > { %915 = vmatprep.subr.bf16.mxu0 %v525_v54  ;;  %v449_v16 = vmul.f32 %v1140_v29, %v447_v5  ;;  %v543_v19 = vmul.f32 %v1138_v28, %v541_v6  ;;  %v544_v20 = vmul.f32 %v1138_v28, %v542_v7  ;;  %v456_v22 = vcvt.s32.f32 %v454_v13 }
  0x30   : > { %v548_v24 = vshra.s32 %v1116_v10, 16  ;;  %v549_v25 = vand.u32 15, %v547_v18  ;;  %v462_v26 = vshra.s32 %v1118_v11, 16  ;;  %v457_v30 = vcvt.s32.f32 %v455_v21 }
  0x31   : > { %v450_v23 = vpack.c.bf16 %v449_v16, %v448_v15  ;;  %v545_v27 = vpack.c.bf16 %v544_v20, %v543_v19  ;;  %v458_v31 = vmul.f32 %v1140_v29, %v456_v22  ;;  %v463_v32 = vshra.s32 %v1124_v17, 16 }
  0x32   : > { %916 = vmatpush3.bf16.msra.mxu0 %v440_v62  ;;  %v550_v33 = vand.u32 15, %v548_v24  ;;  %v551_v34 = vcvt.s32.f32 %v549_v25  ;;  %v464_v35 = vand.u32 15, %v462_v26  ;;  %v557_v36 = vshra.s32 %v1114_v9, 20 }
  0x33   : > { %917 = vmatprep.subr.bf16.mxu0 %v535_v14  ;;  %v459_v37 = vmul.f32 %v1140_v29, %v457_v30  ;;  %v465_v38 = vand.u32 15, %v463_v32  ;;  %v558_v39 = vshra.s32 %v1116_v10, 20  ;;  %v472_v40 = vshra.s32 %v1118_v11, 20 }
  0x34   : > { %v552_v41 = vcvt.s32.f32 %v550_v33  ;;  %v553_v42 = vmul.f32 %v1138_v28, %v551_v34  ;;  %v466_v43 = vcvt.s32.f32 %v464_v35  ;;  %v559_v44 = vand.u32 15, %v557_v36 }
  0x35   : > { %v460_v45 = vpack.c.bf16 %v459_v37, %v458_v31  ;;  %v467_v46 = vcvt.s32.f32 %v465_v38  ;;  %v560_v47 = vand.u32 15, %v558_v39  ;;  %v473_v48 = vshra.s32 %v1124_v17, 20 }
  0x36   : > { %918 = vmatpush3.bf16.msra.mxu0 %v450_v23  ;;  %v554_v49 = vmul.f32 %v1138_v28, %v552_v41  ;;  %v468_v50 = vmul.f32 %v1140_v29, %v466_v43  ;;  %v561_v51 = vcvt.s32.f32 %v559_v44  ;;  %v474_v52 = vand.u32 15, %v472_v40  ;;  %v906_v40 = vld [vmem:[%s405_s13] ss:$0 sm:$0xff] }
  0x37   : > { %919 = vmatprep.subr.bf16.mxu0 %v545_v27  ;;  %v469_v53 = vmul.f32 %v1140_v29, %v467_v46  ;;  %v562_v54 = vcvt.s32.f32 %v560_v47  ;;  %v475_v55 = vand.u32 15, %v473_v48  ;;  %v567_v56 = vshra.s32 %v1114_v9, 24 }
  0x38   : > { %v555_v57 = vpack.c.bf16 %v554_v49, %v553_v42  ;;  %v563_v58 = vmul.f32 %v1138_v28, %v561_v51  ;;  %v476_v59 = vcvt.s32.f32 %v474_v52  ;;  %v568_v60 = vshra.s32 %v1116_v10, 24  ;;  %v908_v51 = vld [vmem:[%s408_s16] ss:$0 sm:$0xff] }
  0x39   : > { %v470_v61 = vpack.c.bf16 %v469_v53, %v468_v50  ;;  %v564_v62 = vmul.f32 %v1138_v28, %v562_v54  ;;  %v477_v63 = vcvt.s32.f32 %v475_v55  ;;  %v569_v0 = vand.u32 15, %v567_v56 }
  0x3a   : > { %920 = vmatpush3.bf16.msra.mxu0 %v460_v45  ;;  %v478_v1 = vmul.f32 %v1140_v29, %v476_v59  ;;  %v570_v2 = vand.u32 15, %v568_v60  ;;  %v482_v3 = vshra.s32 %v1118_v11, 24  ;;  %v483_v4 = vshra.s32 %v1124_v17, 24 }
  0x3b   : > { %921 = vmatprep.subr.bf16.mxu0 %v555_v57  ;;  %v565_v5 = vpack.c.bf16 %v564_v62, %v563_v58  ;;  %v479_v6 = vmul.f32 %v1140_v29, %v477_v63  ;;  %v571_v7 = vcvt.s32.f32 %v569_v0  ;;  %v904_v8 = vshrl.u32 %v1114_v9, 28 }
  0x3c   : > { %v572_v13 = vcvt.s32.f32 %v570_v2  ;;  %v484_v14 = vand.u32 15, %v482_v3  ;;  %v485_v15 = vand.u32 15, %v483_v4  ;;  %v905_v16 = vshrl.u32 %v1116_v10, 28 }
  0x3d   : > { %v480_v18 = vpack.c.bf16 %v479_v6, %v478_v1  ;;  %v573_v19 = vmul.f32 %v1138_v28, %v571_v7  ;;  %v581_v20 = vcvt.s32.f32 %v904_v8  ;;  %v901_v21 = vshrl.u32 %v1118_v11, 28 }
  0x3e   : > { %922 = vmatpush3.bf16.msra.mxu0 %v470_v61  ;;  %v574_v22 = vmul.f32 %v1138_v28, %v572_v13  ;;  %v486_v23 = vcvt.s32.f32 %v484_v14  ;;  %v487_v24 = vcvt.s32.f32 %v485_v15  ;;  %v582_v25 = vcvt.s32.f32 %v905_v16 }
  0x3f   : > { %923 = vmatprep.subr.bf16.mxu0 %v565_v5  ;;  %v583_v9 = vmul.f32 %v1138_v28, %v581_v20  ;;  %v902_v26 = vshrl.u32 %v1124_v17, 28  ;;  %v496_v27 = vcvt.s32.f32 %v901_v21  ;;  %v651_v10 = vunpack.c.h.bf16 %v1120_v12 }
  0x40   : > { %v575_v30 = vpack.c.bf16 %v574_v22, %v573_v19  ;;  %v488_v31 = vmul.f32 %v1140_v29, %v486_v23  ;;  %v489_v32 = vmul.f32 %v1140_v29, %v487_v24  ;;  %v584_v11 = vmul.f32 %v1138_v28, %v582_v25  ;;  %v907_v28 = vld [vmem:[%s405_s13 + $0x1] ss:$0 sm:$0xff] }
  0x41   : > { %v497_v33 = vcvt.s32.f32 %v902_v26  ;;  %v498_v34 = vmul.f32 %v1140_v29, %v496_v27  ;;  %654 = vadd.xlane.f32.xlu0 %v651_v10 }
  0x42   : > { %924 = vmatpush3.bf16.msra.mxu0 %v480_v18  ;;  %v490_v35 = vpack.c.bf16 %v489_v32, %v488_v31  ;;  %v585_v36 = vpack.c.bf16 %v584_v11, %v583_v9 }
  0x43   : > { %925 = vmatprep.subr.bf16.mxu0 %v575_v30  ;;  %v499_v17 = vmul.f32 %v1140_v29, %v497_v33 }
  0x45   : > { %v500_v37 = vpack.c.bf16 %v499_v17, %v498_v34 }
  0x46   : > { %926 = vmatpush3.bf16.msra.mxu0 %v490_v35 }
  0x47   : > { %927 = vmatprep.subr.bf16.mxu0 %v585_v36 }
  0x4a   : > { %928 = vmatpush3.bf16.msra.mxu0 %v500_v37 }
  0x4d   : > { %642 = vmatmul.mubr.bf16.vlgmr.msra.gmra.mrb[0].mxu0 %v1120_v12 }
  0xae   : > { %v666_v38 = vpop.xlane.xlu1 %665 }
  0xaf   : > { %v674_v29 = vmul.f32 %v907_v28, %v666_v38 }
  0xb2   : > { %v653_v39 = vpop.xlane.xlu0 %652  ;;  %v668_v41 = vpop.xlane.xlu1 %667 }
  0xb3   : > { %v661_v43 = vmul.f32 %v906_v40, %v653_v39  ;;  %v675_v44 = vmul.f32 %v907_v28, %v668_v41 }
  0xb5   : > { %v676_v47 = vadd.f32 %v674_v29, %v661_v43 }
  0xce   : > { %v655_v42 = vpop.xlane.xlu0 %654 }
  0xcf   : > { %v662_v45 = vmul.f32 %v906_v40, %v655_v42 }
  0xd1   : > { %v677_v48 = vadd.f32 %v675_v44, %v662_v45 }
 0x120   : > { %v929_v46 = vpop.f32.mrb[0].mxu0 }
 0x121   : > { %v930_v12 = vpop.f32.mrb[1].mxu0 }
 0x122   : > { %v931_v49 = vadd.f32 %v930_v12, %v929_v46  ;;  %v932_v50 = vpop.f32.mrb[2].mxu0 }
 0x123   : > { %v933_v52 = vpop.f32.mrb[3].mxu0 }
 0x124   : > { %v680_v53 = vsub.f32 %v931_v49, %v676_v47  ;;  %v934_v54 = vadd.f32 %v933_v52, %v932_v50  ;;  %708 = sbr.rel (!%p1080_p6) target bundleno = 307 (0x133), region = 90 }
 0x126   : > { %v698_v55 = vadd.f32 %v908_v51, %v680_v53  ;;  %v681_v56 = vsub.f32 %v934_v54, %v677_v48 }
 0x128   : > { %700 = vst [vmem:[%s376_s24] sm:$0xff] %v698_v55  ;;  %v699_v57 = vadd.f32 %v908_v51, %v681_v56 }
 0x12a   : > { %701 = vst [vmem:[%s376_s24 + $0x8] sm:$0xff] %v699_v57 }
 0x12f   : > { %v743_v58 = vld [vmem:[%s376_s24] sm:$0xff] }
 0x130   : > { %744 = vst [vmem:[%s713_s26] sm:$0xff] %v743_v58 }
 0x131   : > { %v745_v59 = vld [vmem:[%s376_s24 + $0x8] sm:$0xff] }
 0x132   : > { %746 = vst [vmem:[%s713_s26 + $0x10] sm:$0xff] %v745_v59 }
 0x133 PF: > { %s15_s22 = sadd.s32 1, %s1013_s22   ;;  %s1240_s18 = smov %s1001_s19 }
 0x134   : > { %p12_p12 = scmp.ge.s32.totalorder %s15_s22, 4   ;;  %s1241_s19 = smov %s1085_s28 }
 0x135   : > { %s1242_s20 = smov %s1009_s21  ;;  %s1243_s21 = smov %s1245_s23 }
 0x136   :  { %14 = sbr.rel (!%p12_p12) target bundleno = 3 (0x3), region = 171 }

// kernel: _lambda_.5
= control target key start
LH: loop header
LB: loop body
LE: loop exit
PB: predicated region body
PF: predicated region fallthrough
CT: control target
= control target key end

     0   :  { %s1260_s18 = smov 0   ;;  %s1262_s19 = smov 0   ;;  %s1551_s0 = inlined_call_operand.vmem [shape: f32[16,256], index: 0, kind: input, shape index: {}]   ;;  %s1552_s1 = inlined_call_operand.vmem [shape: s32[32,768], index: 1, kind: input, shape index: {}]   ;;  %s1553_s2 = inlined_call_operand.vmem [shape: f32[2,768], index: 2, kind: input, shape index: {}]   ;;  %s1554_s3 = inlined_call_operand.vmem [shape: f32[2,768], index: 3, kind: input, shape index: {}]   ;;  %s1555_s4 = inlined_call_operand.vmem [shape: f32[1,768], index: 4, kind: input, shape index: {}]   ;;  %s1556_s5 = inlined_call_operand.vmem [shape: f32[16,768], index: 5, kind: output, shape index: {}]  }
   0x1   :  { %s1264_s20 = smov 0   ;;  %s1266_s21 = smov 0  }
   0x2   :  { %s1268_s22 = smov 0  }
   0x3 LB: > { %s30_s23 = sadd.s32 1, %s1224_s21  ;;  %s1117_s24 = sadd.s32 4294967295, %s1228_s22   ;;  %s1228_s22 = sphi %s1268_s22, %s15_s22   ;;  %s1224_s21 = sphi %s1266_s21, %s1561_s21   ;;  %s1220_s20 = sphi %s1264_s20, %s1560_s20   ;;  %s1216_s19 = sphi %s1262_s19, %s1559_s19   ;;  %s1212_s18 = sphi %s1260_s18, %s1558_s18  }
   0x4   : > { %p32_p0 = scmp.ge.s32.totalorder %s30_s23, 3  ;;  %p78_p1 = scmp.ne.s32.totalorder %s1216_s19, %s1212_s18 }
   0x5   : > { %p79_p2 = scmp.eq.s32.totalorder %s1228_s22, 0  ;;  %p192_p4 = scmp.eq.s32.totalorder %s1117_s24, 2 }
   0x6   : > { %s1563_s23 = smov (%p32_p0, %s30_s23), 0  ;;  %s71_s26 = sadd.s32 1, %s1216_s19 }
   0x7   : > { %p80_p3 = por %p79_p2, %p78_p1  ;;  %s67_s25 = ssub.s32 %s1224_s21, %s1563_s23 }
   0x8   : > { %p69_p5 = scmp.eq.s32.totalorder %s67_s25, 0  ;;  %p1295_p6 = por %p192_p4, %p78_p1 }
   0x9   : > { %p1121_p7 = scmp.ge.s32.totalorder %s1228_s22, 3 }
   0xa   : > { %s1300_s28 = scalar_select %p69_p5, %s1216_s19, %s71_s26  }
   0xb   : > { %229 = sbr.rel (%p1121_p7) target bundleno = 26 (0x1a), region = 20 }
  0x12   : > { %232 = sbr.rel (!%p80_p3) target bundleno = 26 (0x1a), region = 24  ;;  %s234_s29 = sand.u32 (%p80_p3), 1, %s1216_s19  }
  0x13   : > { %s1148_s30 = sshll.u32 (%p80_p3), %s1224_s21, 4  ;;  %s1122_s6 = sshll.u32 (%p80_p3), %s234_s29, 6 }
  0x14   : > { %s242_s9 = scalar_lea.vmem (%p80_p3), %s1552_s1, %s1148_s30  ;;  %s236_s10 = scalar_lea.vmem (%p80_p3), [#allocation4], %s1122_s6 }
  0x15   : > { %v255_v0 = vld [vmem:[%s242_s9] sm:$0xff] (%p80_p3)  ;;  %v257_v1 = vld [vmem:[%s242_s9 + $0x8] sm:$0xff] (%p80_p3)  ;;  %v259_v2 = vld [vmem:[%s242_s9 + $0x30] sm:$0xff] (%p80_p3) }
  0x16   : > { %256 = vst [vmem:[%s236_s10] sm:$0xff] (%p80_p3), %v255_v0  ;;  %258 = vst [vmem:[%s236_s10 + $0x8] sm:$0xff] (%p80_p3), %v257_v1  ;;  %v261_v3 = vld [vmem:[%s242_s9 + $0x38] sm:$0xff] (%p80_p3)  ;;  %v263_v4 = vld [vmem:[%s242_s9 + $0x60] sm:$0xff] (%p80_p3) }
  0x17   : > { %260 = vst [vmem:[%s236_s10 + $0x10] sm:$0xff] (%p80_p3), %v259_v2  ;;  %v265_v5 = vld [vmem:[%s242_s9 + $0x68] sm:$0xff] (%p80_p3)  ;;  %262 = vst [vmem:[%s236_s10 + $0x18] sm:$0xff] (%p80_p3), %v261_v3  ;;  %v267_v6 = vld [vmem:[%s242_s9 + $0x90] sm:$0xff] (%p80_p3) }
  0x18   : > { %264 = vst [vmem:[%s236_s10 + $0x20] sm:$0xff] (%p80_p3), %v263_v4  ;;  %266 = vst [vmem:[%s236_s10 + $0x28] sm:$0xff] (%p80_p3), %v265_v5  ;;  %v269_v7 = vld [vmem:[%s242_s9 + $0x98] sm:$0xff] (%p80_p3) }
  0x19   : > { %268 = vst [vmem:[%s236_s10 + $0x30] sm:$0xff] %v267_v6  ;;  %270 = vst [vmem:[%s236_s10 + $0x38] sm:$0xff] %v269_v7 }
  0x1a PF: > { %p1125_p8 = scmp.ge.s32.totalorder %s1228_s22, 1  ;;  %p309_p9 = scmp.lt.s32.totalorder %s1228_s22, 4 }
  0x1c   : > { %p310_p10 = pnand %p1125_p8, %p309_p9 }
  0x1d   : > { %s316_s11 = sand.u32 (!%p310_p10), 1, %s1212_s18   ;;  %s1128_s12 = sshll.u32 (!%p310_p10), %s1220_s20, 1  ;;  %v437_v8 = vlaneseq (!%p310_p10)  ;;  %v769_v9 = vld [vmem:[%s1551_s0 + $0x8] sm:$0xff] (!%p310_p10)  ;;  %v771_v10 = vld [vmem:[%s1551_s0 + $0x18] sm:$0xff] (!%p310_p10)  ;;  %v768_v11 = vld [vmem:[%s1551_s0] sm:$0xff] (!%p310_p10) }
  0x1e   : > { %313 = sbr.rel (%p310_p10) target bundleno = 340 (0x154), region = 59  ;;  %s1126_s25 = sshll.u32 (!%p310_p10), %s316_s11, 6  ;;  %v773_v12 = vpack.c.bf16 (!%p310_p10), %v771_v10, %v769_v9  ;;  %v770_v13 = vld [vmem:[%s1551_s0 + $0x10] sm:$0xff] (!%p310_p10) }
  0x1f   : > { %p391_p11 = scmp.lt.s32.totalorder (!%p310_p10), %s1128_s12, 5  ;;  %v438_v14 = vshrl.u32 (!%p310_p10), %v437_v8, 7  ;;  %s1328_s30 = scalar_lea.vmem (!%p310_p10), [#allocation4], %s1126_s25  ;;  %v1339_v18 = vpack.c.bf16 (!%p310_p10), %v770_v13, %v768_v11 }
  0x20   : > { %v1331_v15 = vld [vmem:[%s1328_s30 + $0x8] sm:$0xff] (!%p310_p10)  ;;  %v1334_v16 = vld [vmem:[%s1328_s30 + $0x18] sm:$0xff] (!%p310_p10)  ;;  %v1337_v17 = vld [vmem:[%s1328_s30] sm:$0xff] (!%p310_p10)  ;;  %838 = vmatprep.mubr.bf16.mxu0 (!%p310_p10), %v773_v12  ;;  %v871_v19 = vunpack.c.l.bf16 (!%p310_p10), %v773_v12  ;;  %v872_v20 = vunpack.c.h.bf16 (!%p310_p10), %v773_v12  ;;  %s1127_s24 = sshll.u32 (!%p310_p10), %s316_s11, 5 }
  0x21   : > { %v429_v21 = vand.u32 (!%p310_p10), 15, %v1331_v15  ;;  %v431_v22 = vand.u32 (!%p310_p10), 15, %v1334_v16  ;;  %v1343_v23 = vsub.s32 (!%p310_p10), 1, %v438_v14  ;;  %v1346_v24 = vld [vmem:[%s1328_s30 + $0x10] sm:$0xff] (!%p310_p10)  ;;  %v428_v25 = vand.u32 (!%p310_p10), 15, %v1337_v17 }
  0x22   : > { %v430_v26 = vand.u32 (!%p310_p10), 15, %v1346_v24  ;;  %v1351_v27 = vsub.s32 (!%p310_p10), 0, %v438_v14  ;;  %v456_v28 = vshra.s32 (!%p310_p10), %v1331_v15, 4  ;;  %v458_v29 = vshra.s32 (!%p310_p10), %v1334_v16, 4  ;;  %873 = vadd.xlane.f32.xlu1 (!%p310_p10), %v871_v19 }
  0x23   : > { %v433_v30 = vcvt.s32.f32 (!%p310_p10), %v429_v21  ;;  %v435_v31 = vcvt.s32.f32 (!%p310_p10), %v431_v22  ;;  %v432_v32 = vcvt.s32.f32 (!%p310_p10), %v428_v25  ;;  %v455_v33 = vshra.s32 (!%p310_p10), %v1337_v17, 4 }
  0x24   : > { %v434_v35 = vcvt.s32.f32 (!%p310_p10), %v430_v26  ;;  %v849_v36 = vunpack.c.l.bf16 (!%p310_p10), %v1339_v18  ;;  %v850_v37 = vunpack.c.h.bf16 (!%p310_p10), %v1339_v18  ;;  %v460_v40 = vand.u32 (!%p310_p10), 15, %v456_v28 }
  0x25   : > { %s1565_s12 = smov (!%p391_p11, %s1128_s12), 5  ;;  %v462_v41 = vand.u32 15, %v458_v29  ;;  %v457_v42 = vshra.s32 %v1346_v24, 4  ;;  %v459_v43 = vand.u32 15, %v455_v33  ;;  %v476_v44 = vshra.s32 %v1331_v15, 8  ;;  %s1149_s18 = sshll.u32 (%p1295_p6), %s1220_s20, 4 }
  0x26   : > { %s1129_s6 = sshll.u32 %s1565_s12, 1  ;;  %v478_v45 = vshra.s32 %v1334_v16, 8  ;;  %851 = vadd.xlane.f32.xlu0 %v849_v36  ;;  %875 = vadd.xlane.f32.xlu1 %v872_v20  ;;  %v464_v50 = vcvt.s32.f32 %v460_v40  ;;  %v475_v0 = vshra.s32 %v1337_v17, 8  ;;  %v477_v1 = vshra.s32 %v1346_v24, 8  ;;  %s411_s17 = scalar_lea.vmem %s1555_s4, %s1565_s12 }
  0x27   : > { %s1360_s9 = scalar_lea.vmem %s1553_s2, %s1129_s6  ;;  %v466_v51 = vcvt.s32.f32 %v462_v41  ;;  %v461_v52 = vand.u32 15, %v457_v42  ;;  %v463_v53 = vcvt.s32.f32 %v459_v43  ;;  %v480_v56 = vand.u32 15, %v476_v44  ;;  %s406_s14 = scalar_lea.vmem %s1554_s3, %s1129_s6 }
  0x28   : > { %v427_v34 = vld [vmem:[%s1360_s9] ss:$2 sm:$0x3]  ;;  %v482_v57 = vand.u32 15, %v478_v45  ;;  %v496_v4 = vshra.s32 %v1331_v15, 12  ;;  %v498_v5 = vshra.s32 %v1334_v16, 12  ;;  %s953_s26 = scalar_lea.vmem (%p1295_p6), %s1556_s5, %s1149_s18 }
  0x29   : > { %v1367_v38 = vrot.slane %v427_v34, %v1343_v23  ;;  %v1370_v39 = vrot.slane %v427_v34, %v1351_v27  ;;  %v465_v60 = vcvt.s32.f32 %v461_v52  ;;  %v484_v62 = vcvt.s32.f32 %v480_v56  ;;  %s373_s12 = scalar_lea.vmem [#allocation5], %s1127_s24 }
  0x2a   : > { %853 = vadd.xlane.f32.xlu0 %v850_v37  ;;  %v486_v63 = vcvt.s32.f32 %v482_v57  ;;  %v479_v8 = vand.u32 15, %v475_v0  ;;  %v481_v9 = vand.u32 15, %v477_v1  ;;  %v500_v11 = vand.u32 15, %v496_v4 }
  0x2b   : > { %v448_v46 = vmul.f32 %v1367_v38, %v433_v30  ;;  %v450_v47 = vmul.f32 %v1367_v38, %v435_v31  ;;  %v447_v48 = vmul.f32 %v1370_v39, %v432_v32  ;;  %v449_v49 = vmul.f32 %v1370_v39, %v434_v35 }
  0x2c   : > { %v468_v58 = vmul.f32 %v464_v50, %v1367_v38  ;;  %v470_v59 = vmul.f32 %v466_v51, %v1367_v38  ;;  %v467_v61 = vmul.f32 %v463_v53, %v1370_v39  ;;  %v469_v3 = vmul.f32 %v465_v60, %v1370_v39 }
  0x2d   : > { %v452_v54 = vpack.c.bf16 %v450_v47, %v448_v46  ;;  %v451_v55 = vpack.c.bf16 %v449_v49, %v447_v48  ;;  %v488_v6 = vmul.f32 %v484_v62, %v1367_v38  ;;  %v490_v7 = vmul.f32 %v486_v63, %v1367_v38 }
  0x2e   : > { %v472_v2 = vpack.c.bf16 %v470_v59, %v468_v58  ;;  %v471_v10 = vpack.c.bf16 %v469_v3, %v467_v61  ;;  %v502_v12 = vand.u32 15, %v498_v5  ;;  %v495_v13 = vshra.s32 %v1337_v17, 12 }
  0x2f   : > { %806 = vmatprep.subr.bf16.mxu0 %v452_v54  ;;  %v492_v14 = vpack.c.bf16 %v490_v7, %v488_v6  ;;  %v483_v19 = vcvt.s32.f32 %v479_v8  ;;  %v485_v20 = vcvt.s32.f32 %v481_v9  ;;  %v497_v21 = vshra.s32 %v1346_v24, 12 }
  0x30   : > { %807 = vmatpush1.bf16.msra.mxu0 %v451_v55  ;;  %v504_v22 = vcvt.s32.f32 %v500_v11  ;;  %v506_v25 = vcvt.s32.f32 %v502_v12  ;;  %v499_v26 = vand.u32 15, %v495_v13  ;;  %v516_v28 = vshra.s32 %v1331_v15, 16 }
  0x31   : > { %808 = vmatprep.subr.bf16.mxu0 %v472_v2  ;;  %v487_v29 = vmul.f32 %v483_v19, %v1370_v39  ;;  %v489_v30 = vmul.f32 %v485_v20, %v1370_v39  ;;  %v501_v31 = vand.u32 15, %v497_v21  ;;  %v518_v32 = vshra.s32 %v1334_v16, 16 }
  0x32   : > { %v508_v33 = vmul.f32 %v504_v22, %v1367_v38  ;;  %v510_v34 = vmul.f32 %v506_v25, %v1367_v38  ;;  %v503_v35 = vcvt.s32.f32 %v499_v26  ;;  %v520_v36 = vand.u32 15, %v516_v28 }
  0x33   : > { %v491_v37 = vpack.c.bf16 %v489_v30, %v487_v29  ;;  %v505_v40 = vcvt.s32.f32 %v501_v31  ;;  %v522_v41 = vand.u32 15, %v518_v32  ;;  %v515_v42 = vshra.s32 %v1337_v17, 16 }
  0x34   : > { %809 = vmatpush1.bf16.msra.mxu0 %v471_v10  ;;  %v512_v43 = vpack.c.bf16 %v510_v34, %v508_v33  ;;  %v507_v44 = vmul.f32 %v503_v35, %v1370_v39  ;;  %v524_v45 = vcvt.s32.f32 %v520_v36  ;;  %v517_v46 = vshra.s32 %v1346_v24, 16  ;;  %v1421_v34 = vld [vmem:[%s1328_s30 + $0x28] sm:$0xff] }
  0x35   : > { %810 = vmatprep.subr.bf16.mxu0 %v492_v14  ;;  %v509_v47 = vmul.f32 %v505_v40, %v1370_v39  ;;  %v526_v48 = vcvt.s32.f32 %v522_v41  ;;  %v519_v49 = vand.u32 15, %v515_v42  ;;  %v536_v50 = vshra.s32 %v1331_v15, 20  ;;  %v1425_v41 = vld [vmem:[%s1328_s30 + $0x38] sm:$0xff] }
  0x36   : > { %v528_v51 = vmul.f32 %v524_v45, %v1367_v38  ;;  %v521_v52 = vand.u32 15, %v517_v46  ;;  %v538_v53 = vshra.s32 %v1334_v16, 20  ;;  %v535_v54 = vshra.s32 %v1337_v17, 20 }
  0x37   : > { %v511_v55 = vpack.c.bf16 %v509_v47, %v507_v44  ;;  %v530_v56 = vmul.f32 %v526_v48, %v1367_v38  ;;  %v523_v57 = vcvt.s32.f32 %v519_v49  ;;  %v540_v58 = vand.u32 15, %v536_v50 }
  0x38   : > { %811 = vmatpush1.bf16.msra.mxu0 %v491_v37  ;;  %v525_v59 = vcvt.s32.f32 %v521_v52  ;;  %v542_v60 = vand.u32 15, %v538_v53  ;;  %v537_v61 = vshra.s32 %v1346_v24, 20  ;;  %v539_v62 = vand.u32 15, %v535_v54  ;;  %v1440_v53 = vld [vmem:[%s1328_s30 + $0x30] sm:$0xff] }
  0x39   : > { %812 = vmatprep.subr.bf16.mxu0 %v512_v43  ;;  %v532_v63 = vpack.c.bf16 %v530_v56, %v528_v51  ;;  %v527_v0 = vmul.f32 %v523_v57, %v1370_v39  ;;  %v544_v1 = vcvt.s32.f32 %v540_v58  ;;  %v556_v2 = vshra.s32 %v1331_v15, 24 }
  0x3a   : > { %v529_v3 = vmul.f32 %v525_v59, %v1370_v39  ;;  %v546_v4 = vcvt.s32.f32 %v542_v60  ;;  %v541_v5 = vand.u32 15, %v537_v61  ;;  %v543_v6 = vcvt.s32.f32 %v539_v62 }
  0x3b   : > { %v548_v7 = vmul.f32 %v544_v1, %v1367_v38  ;;  %v558_v8 = vshra.s32 %v1334_v16, 24  ;;  %v560_v9 = vand.u32 15, %v556_v2  ;;  %v555_v10 = vshra.s32 %v1337_v17, 24 }
  0x3c   : > { %813 = vmatpush1.bf16.msra.mxu0 %v511_v55  ;;  %v531_v11 = vpack.c.bf16 %v529_v3, %v527_v0  ;;  %v550_v12 = vmul.f32 %v546_v4, %v1367_v38  ;;  %v545_v13 = vcvt.s32.f32 %v541_v5  ;;  %v547_v14 = vmul.f32 %v543_v6, %v1370_v39 }
  0x3d   : > { %814 = vmatprep.subr.bf16.mxu0 %v532_v63  ;;  %v562_v19 = vand.u32 15, %v558_v8  ;;  %v564_v20 = vcvt.s32.f32 %v560_v9  ;;  %v557_v21 = vshra.s32 %v1346_v24, 24  ;;  %v559_v22 = vand.u32 15, %v555_v10 }
  0x3e   : > { %v552_v25 = vpack.c.bf16 %v550_v12, %v548_v7  ;;  %v549_v26 = vmul.f32 %v545_v13, %v1370_v39  ;;  %v1134_v28 = vshrl.u32 %v1331_v15, 28  ;;  %v1136_v29 = vshrl.u32 %v1334_v16, 28  ;;  %v1137_v15 = vld [vmem:[%s1360_s9 + $0x1] ss:$2 sm:$0x3] }
  0x3f   : > { %v566_v30 = vcvt.s32.f32 %v562_v19  ;;  %v568_v31 = vmul.f32 %v564_v20, %v1367_v38  ;;  %v561_v32 = vand.u32 15, %v557_v21  ;;  %v563_v33 = vcvt.s32.f32 %v559_v22 }
  0x40   : > { %815 = vmatpush1.bf16.msra.mxu0 %v531_v11  ;;  %v551_v35 = vpack.c.bf16 %v549_v26, %v547_v14  ;;  %v584_v36 = vcvt.s32.f32 %v1134_v28  ;;  %v586_v37 = vcvt.s32.f32 %v1136_v29  ;;  %v1133_v40 = vshrl.u32 %v1337_v17, 28  ;;  %v1435_v17 = vld [vmem:[%s1328_s30 + $0x20] sm:$0xff] }
  0x41   : > { %816 = vmatprep.subr.bf16.mxu0 %v552_v25  ;;  %v570_v16 = vmul.f32 %v566_v30, %v1367_v38  ;;  %v565_v42 = vcvt.s32.f32 %v561_v32  ;;  %v567_v43 = vmul.f32 %v563_v33, %v1370_v39  ;;  %v1135_v44 = vshrl.u32 %v1346_v24, 28 }
  0x42   : > { %v588_v45 = vmul.f32 %v584_v36, %v1367_v38  ;;  %v590_v46 = vmul.f32 %v586_v37, %v1367_v38  ;;  %v583_v47 = vcvt.s32.f32 %v1133_v40  ;;  %v602_v48 = vand.u32 15, %v1421_v34 }
  0x43   : > { %v572_v49 = vpack.c.bf16 %v570_v16, %v568_v31  ;;  %v569_v50 = vmul.f32 %v565_v42, %v1370_v39  ;;  %v585_v51 = vcvt.s32.f32 %v1135_v44  ;;  %v604_v52 = vand.u32 15, %v1425_v41 }
  0x44   : > { %817 = vmatpush1.bf16.msra.mxu0 %v551_v35  ;;  %v592_v54 = vpack.c.bf16 %v590_v46, %v588_v45  ;;  %v587_v24 = vmul.f32 %v583_v47, %v1370_v39  ;;  %v606_v55 = vcvt.s32.f32 %v602_v48  ;;  %v1444_v56 = vrot.slane %v1137_v15, %v1343_v23 }
  0x45   : > { %818 = vmatprep.subr.bf16.mxu0 %v572_v49  ;;  %v571_v38 = vpack.c.bf16 %v569_v50, %v567_v43  ;;  %v589_v57 = vmul.f32 %v585_v51, %v1370_v39  ;;  %v608_v58 = vcvt.s32.f32 %v604_v52  ;;  %v601_v59 = vand.u32 15, %v1435_v17 }
  0x46   : > { %v621_v60 = vmul.f32 %v1444_v56, %v606_v55  ;;  %v603_v61 = vand.u32 15, %v1440_v53  ;;  %v1451_v62 = vrot.slane %v1137_v15, %v1351_v27  ;;  %v629_v63 = vshra.s32 %v1421_v34, 4 }
  0x47   : > { %v591_v0 = vpack.c.bf16 %v589_v57, %v587_v24  ;;  %v623_v1 = vmul.f32 %v1444_v56, %v608_v58  ;;  %v605_v2 = vcvt.s32.f32 %v601_v59  ;;  %v631_v3 = vshra.s32 %v1425_v41, 4 }
  0x48   : > { %819 = vmatpush1.bf16.msra.mxu0 %v571_v38  ;;  %v607_v39 = vcvt.s32.f32 %v603_v61  ;;  %v633_v4 = vand.u32 15, %v629_v63  ;;  %v628_v5 = vshra.s32 %v1435_v17, 4  ;;  %v630_v6 = vshra.s32 %v1440_v53, 4 }
  0x49   : > { %820 = vmatprep.subr.bf16.mxu0 %v592_v54  ;;  %v625_v7 = vpack.c.bf16 %v623_v1, %v621_v60  ;;  %v620_v8 = vmul.f32 %v1451_v62, %v605_v2  ;;  %v635_v9 = vand.u32 15, %v631_v3  ;;  %v649_v10 = vshra.s32 %v1421_v34, 8 }
  0x4a   : > { %v622_v11 = vmul.f32 %v1451_v62, %v607_v39  ;;  %v637_v12 = vcvt.s32.f32 %v633_v4  ;;  %v632_v13 = vand.u32 15, %v628_v5  ;;  %v634_v14 = vand.u32 15, %v630_v6 }
  0x4b   : > { %v639_v19 = vcvt.s32.f32 %v635_v9  ;;  %v651_v20 = vshra.s32 %v1425_v41, 8  ;;  %v653_v21 = vand.u32 15, %v649_v10  ;;  %v648_v22 = vshra.s32 %v1435_v17, 8 }
  0x4c   : > { %821 = vmatpush1.bf16.msra.mxu0 %v591_v0  ;;  %v624_v25 = vpack.c.bf16 %v622_v11, %v620_v8  ;;  %v641_v26 = vmul.f32 %v637_v12, %v1444_v56  ;;  %v636_v28 = vcvt.s32.f32 %v632_v13  ;;  %v638_v29 = vcvt.s32.f32 %v634_v14 }
  0x4d   : > { %822 = vmatprep.subr.bf16.mxu0 %v625_v7  ;;  %v643_v30 = vmul.f32 %v639_v19, %v1444_v56  ;;  %v655_v31 = vand.u32 15, %v651_v20  ;;  %v657_v32 = vcvt.s32.f32 %v653_v21  ;;  %v650_v33 = vshra.s32 %v1440_v53, 8 }
  0x4e   : > { %v640_v35 = vmul.f32 %v636_v28, %v1451_v62  ;;  %v642_v36 = vmul.f32 %v638_v29, %v1451_v62  ;;  %v652_v37 = vand.u32 15, %v648_v22  ;;  %v669_v40 = vshra.s32 %v1421_v34, 12 }
  0x4f   : > { %v645_v15 = vpack.c.bf16 %v643_v30, %v641_v26  ;;  %v659_v16 = vcvt.s32.f32 %v655_v31  ;;  %v661_v42 = vmul.f32 %v657_v32, %v1444_v56  ;;  %v654_v43 = vand.u32 15, %v650_v33 }
  0x50   : > { %823 = vmatpush1.bf16.msra.mxu0 %v624_v25  ;;  %v644_v44 = vpack.c.bf16 %v642_v36, %v640_v35  ;;  %v656_v45 = vcvt.s32.f32 %v652_v37  ;;  %v671_v46 = vshra.s32 %v1425_v41, 12  ;;  %v673_v47 = vand.u32 15, %v669_v40 }
  0x51   : > { %824 = vmatprep.subr.bf16.mxu0 %v645_v15  ;;  %v663_v48 = vmul.f32 %v659_v16, %v1444_v56  ;;  %v658_v49 = vcvt.s32.f32 %v654_v43  ;;  %v668_v50 = vshra.s32 %v1435_v17, 12  ;;  %v670_v51 = vshra.s32 %v1440_v53, 12 }
  0x52   : > { %v660_v52 = vmul.f32 %v656_v45, %v1451_v62  ;;  %v675_v54 = vand.u32 15, %v671_v46  ;;  %v677_v24 = vcvt.s32.f32 %v673_v47  ;;  %v689_v55 = vshra.s32 %v1421_v34, 16 }
  0x53   : > { %v665_v38 = vpack.c.bf16 %v663_v48, %v661_v42  ;;  %v662_v57 = vmul.f32 %v658_v49, %v1451_v62  ;;  %v672_v58 = vand.u32 15, %v668_v50  ;;  %v674_v59 = vand.u32 15, %v670_v51 }
  0x54   : > { %825 = vmatpush1.bf16.msra.mxu0 %v644_v44  ;;  %v679_v60 = vcvt.s32.f32 %v675_v54  ;;  %v681_v61 = vmul.f32 %v677_v24, %v1444_v56  ;;  %v691_v63 = vshra.s32 %v1425_v41, 16  ;;  %v693_v0 = vand.u32 15, %v689_v55 }
  0x55   : > { %826 = vmatprep.subr.bf16.mxu0 %v665_v38  ;;  %v664_v1 = vpack.c.bf16 %v662_v57, %v660_v52  ;;  %v676_v2 = vcvt.s32.f32 %v672_v58  ;;  %v678_v3 = vcvt.s32.f32 %v674_v59  ;;  %v688_v39 = vshra.s32 %v1435_v17, 16 }
  0x56   : > { %v683_v4 = vmul.f32 %v679_v60, %v1444_v56  ;;  %v695_v5 = vand.u32 15, %v691_v63  ;;  %v697_v6 = vcvt.s32.f32 %v693_v0  ;;  %v690_v7 = vshra.s32 %v1440_v53, 16 }
  0x57   : > { %v680_v8 = vmul.f32 %v676_v2, %v1451_v62  ;;  %v682_v9 = vmul.f32 %v678_v3, %v1451_v62  ;;  %v692_v10 = vand.u32 15, %v688_v39  ;;  %v709_v11 = vshra.s32 %v1421_v34, 20 }
  0x58   : > { %827 = vmatpush1.bf16.msra.mxu0 %v664_v1  ;;  %v685_v12 = vpack.c.bf16 %v683_v4, %v681_v61  ;;  %v699_v13 = vcvt.s32.f32 %v695_v5  ;;  %v701_v14 = vmul.f32 %v697_v6, %v1444_v56  ;;  %v694_v19 = vand.u32 15, %v690_v7 }
  0x59   : > { %v684_v20 = vpack.c.bf16 %v682_v9, %v680_v8  ;;  %v696_v21 = vcvt.s32.f32 %v692_v10  ;;  %v711_v22 = vshra.s32 %v1425_v41, 20  ;;  %v713_v25 = vand.u32 15, %v709_v11 }
  0x5a   : > { %828 = vmatprep.subr.bf16.mxu0 %v685_v12  ;;  %v703_v26 = vmul.f32 %v699_v13, %v1444_v56  ;;  %v698_v28 = vcvt.s32.f32 %v694_v19  ;;  %v708_v29 = vshra.s32 %v1435_v17, 20  ;;  %v710_v30 = vshra.s32 %v1440_v53, 20 }
  0x5b   : > { %v700_v31 = vmul.f32 %v696_v21, %v1451_v62  ;;  %v715_v32 = vand.u32 15, %v711_v22  ;;  %v717_v33 = vcvt.s32.f32 %v713_v25  ;;  %v729_v35 = vshra.s32 %v1421_v34, 24 }
  0x5c   : > { %829 = vmatpush1.bf16.msra.mxu0 %v684_v20  ;;  %v705_v36 = vpack.c.bf16 %v703_v26, %v701_v14  ;;  %v702_v37 = vmul.f32 %v698_v28, %v1451_v62  ;;  %v712_v40 = vand.u32 15, %v708_v29  ;;  %v714_v15 = vand.u32 15, %v710_v30  ;;  %v1142_v14 = vld [vmem:[%s406_s14 + $0x1] ss:$2 sm:$0x3] }
  0x5d   : > { %v719_v16 = vcvt.s32.f32 %v715_v32  ;;  %v721_v42 = vmul.f32 %v717_v33, %v1444_v56  ;;  %v731_v43 = vshra.s32 %v1425_v41, 24  ;;  %v733_v44 = vand.u32 15, %v729_v35  ;;  %v855_v20 = vld [vmem:[%s406_s14] ss:$2 sm:$0x3] }
  0x5e   : > { %830 = vmatprep.subr.bf16.mxu0 %v705_v36  ;;  %v704_v45 = vpack.c.bf16 %v702_v37, %v700_v31  ;;  %v716_v46 = vcvt.s32.f32 %v712_v40  ;;  %v718_v47 = vcvt.s32.f32 %v714_v15  ;;  %v728_v48 = vshra.s32 %v1435_v17, 24  ;;  %v921_v37 = vld [vmem:[%s411_s17] sm:$0x3] }
  0x5f   : > { %v723_v49 = vmul.f32 %v719_v16, %v1444_v56  ;;  %v735_v50 = vand.u32 15, %v731_v43  ;;  %v737_v51 = vcvt.s32.f32 %v733_v44  ;;  %v730_v52 = vshra.s32 %v1440_v53, 24 }
  0x60   : > { %831 = vmatpush1.bf16.msra.mxu0 %v704_v45  ;;  %v720_v54 = vmul.f32 %v716_v46, %v1451_v62  ;;  %v722_v24 = vmul.f32 %v718_v47, %v1451_v62  ;;  %v732_v55 = vand.u32 15, %v728_v48  ;;  %v1139_v38 = vshrl.u32 %v1421_v34, 28 }
  0x61   : > { %v725_v57 = vpack.c.bf16 %v723_v49, %v721_v42  ;;  %v739_v58 = vcvt.s32.f32 %v735_v50  ;;  %v741_v59 = vmul.f32 %v737_v51, %v1444_v56  ;;  %v734_v60 = vand.u32 15, %v730_v52 }
  0x62   : > { %v724_v61 = vpack.c.bf16 %v722_v24, %v720_v54  ;;  %v736_v63 = vcvt.s32.f32 %v732_v55  ;;  %v1141_v0 = vshrl.u32 %v1425_v41, 28  ;;  %v757_v1 = vcvt.s32.f32 %v1139_v38 }
  0x63   : > { %832 = vmatprep.subr.bf16.mxu0 %v725_v57  ;;  %v743_v2 = vmul.f32 %v739_v58, %v1444_v56  ;;  %v738_v3 = vcvt.s32.f32 %v734_v60  ;;  %v1138_v39 = vshrl.u32 %v1435_v17, 28  ;;  %v1140_v4 = vshrl.u32 %v1440_v53, 28 }
  0x64   : > { %833 = vmatpush1.bf16.msra.mxu0 %v724_v61  ;;  %v740_v34 = vmul.f32 %v736_v63, %v1451_v62  ;;  %v759_v5 = vcvt.s32.f32 %v1141_v0  ;;  %v761_v6 = vmul.f32 %v757_v1, %v1444_v56  ;;  %v883_v21 = vrot.slane %v1142_v14, %v1351_v27 }
  0x65   : > { %v745_v7 = vpack.c.bf16 %v743_v2, %v741_v59  ;;  %v742_v8 = vmul.f32 %v738_v3, %v1451_v62  ;;  %v756_v41 = vcvt.s32.f32 %v1138_v39  ;;  %v758_v9 = vcvt.s32.f32 %v1140_v4 }
  0x66   : > { %v763_v10 = vmul.f32 %v759_v5, %v1444_v56  ;;  %v887_v22 = vrot.slane %v1142_v14, %v1343_v23  ;;  %v864_v25 = vrot.slane %v855_v20, %v1343_v23  ;;  %v926_v15 = vrot.slane %v921_v37, %v1351_v27 }
  0x67   : > { %834 = vmatprep.subr.bf16.mxu0 %v745_v7  ;;  %v744_v11 = vpack.c.bf16 %v742_v8, %v740_v34  ;;  %v760_v17 = vmul.f32 %v756_v41, %v1451_v62  ;;  %v762_v53 = vmul.f32 %v758_v9, %v1451_v62  ;;  %v860_v62 = vrot.slane %v855_v20, %v1351_v27 }
  0x68   : > { %v765_v12 = vpack.c.bf16 %v763_v10, %v761_v6  ;;  %v930_v44 = vrot.slane %v921_v37, %v1343_v23 }
  0x69   : > { %835 = vmatpush1.bf16.msra.mxu0 %v744_v11  ;;  %v764_v13 = vpack.c.bf16 %v762_v53, %v760_v17 }
  0x6a   : > { %836 = vmatprep.subr.bf16.mxu0 %v765_v12 }
  0x6d   : > { %837 = vmatpush1.bf16.msra.mxu0 %v764_v13 }
  0x70   : > { %839 = vmatmul.mubr.bf16.vlgmr.msra.gmra.mrb[0].mxu0 %v1339_v18 }
  0xaf   : > { %v874_v56 = vpop.xlane.xlu1 %873 }
  0xb0   : > { %v890_v28 = vmul.f32 %v883_v21, %v874_v56  ;;  %v891_v32 = vmul.f32 %v887_v22, %v874_v56 }
  0xb3   : > { %v852_v19 = vpop.xlane.xlu0 %851  ;;  %v876_v26 = vpop.xlane.xlu1 %875 }
  0xb4   : > { %v867_v29 = vmul.f32 %v860_v62, %v852_v19  ;;  %v892_v30 = vmul.f32 %v883_v21, %v876_v26  ;;  %v868_v33 = vmul.f32 %v864_v25, %v852_v19  ;;  %v893_v35 = vmul.f32 %v887_v22, %v876_v26 }
  0xb6   : > { %v894_v40 = vadd.f32 %v890_v28, %v867_v29  ;;  %v895_v43 = vadd.f32 %v891_v32, %v868_v33 }
  0xb7   : > { %v854_v18 = vpop.xlane.xlu0 %853 }
  0xb8   : > { %v869_v31 = vmul.f32 %v860_v62, %v854_v18  ;;  %v870_v36 = vmul.f32 %v864_v25, %v854_v18 }
  0xba   : > { %v896_v16 = vadd.f32 %v892_v30, %v869_v31  ;;  %v897_v45 = vadd.f32 %v893_v35, %v870_v36 }
 0x143   : > { %v840_v42 = vpop.f32.mrb[0].mxu0 }
 0x144   : > { %v902_v46 = vsub.f32 %v840_v42, %v894_v40  ;;  %v842_v47 = vpop.f32.mrb[1].mxu0 }
 0x145   : > { %v903_v48 = vsub.f32 %v842_v47, %v895_v43  ;;  %v844_v49 = vpop.f32.mrb[2].mxu0  ;;  %947 = sbr.rel (!%p1295_p6) target bundleno = 340 (0x154), region = 75 }
 0x146   : > { %v933_v50 = vadd.f32 %v926_v15, %v902_v46  ;;  %v904_v51 = vsub.f32 %v844_v49, %v896_v16  ;;  %v846_v52 = vpop.f32.mrb[3].mxu0 }
 0x147   : > { %v934_v54 = vadd.f32 %v930_v44, %v903_v48  ;;  %v905_v24 = vsub.f32 %v846_v52, %v897_v45 }
 0x148   : > { %937 = vst [vmem:[%s373_s12] sm:$0xff] %v933_v50  ;;  %v935_v55 = vadd.f32 %v926_v15, %v904_v51 }
 0x149   : > { %938 = vst [vmem:[%s373_s12 + $0x8] sm:$0xff] %v934_v54  ;;  %v936_v27 = vadd.f32 %v930_v44, %v905_v24 }
 0x14a   : > { %939 = vst [vmem:[%s373_s12 + $0x10] sm:$0xff] %v935_v55 }
 0x14b   : > { %940 = vst [vmem:[%s373_s12 + $0x18] sm:$0xff] %v936_v27 }
 0x14f   : > { %v966_v23 = vld [vmem:[%s373_s12] sm:$0xff] }
 0x150   : > { %v968_v38 = vld [vmem:[%s373_s12 + $0x8] sm:$0xff]  ;;  %967 = vst [vmem:[%s953_s26] sm:$0xff] %v966_v23 }
 0x151   : > { %v970_v57 = vld [vmem:[%s373_s12 + $0x10] sm:$0xff]  ;;  %969 = vst [vmem:[%s953_s26 + $0x8] sm:$0xff] %v968_v38 }
 0x152   : > { %v972_v58 = vld [vmem:[%s373_s12 + $0x18] sm:$0xff]  ;;  %971 = vst [vmem:[%s953_s26 + $0x30] sm:$0xff] %v970_v57 }
 0x153   : > { %973 = vst [vmem:[%s953_s26 + $0x38] sm:$0xff] %v972_v58 }
 0x154 PF: > { %s15_s22 = sadd.s32 1, %s1228_s22   ;;  %s1558_s18 = smov %s1216_s19 }
 0x155   : > { %p12_p12 = scmp.ge.s32.totalorder %s15_s22, 5   ;;  %s1559_s19 = smov %s1300_s28 }
 0x156   : > { %s1560_s20 = smov %s1224_s21  ;;  %s1561_s21 = smov %s1563_s23 }
 0x157   :  { %14 = sbr.rel (!%p12_p12) target bundleno = 3 (0x3), region = 143 }

// kernel: _lambda_.9
= control target key start
LH: loop header
LB: loop body
LE: loop exit
PB: predicated region body
PF: predicated region fallthrough
CT: control target
= control target key end

     0   :  { %10 = vsyncpa [#allocation6], 0  ;;  %s1326_s0 = inlined_call_operand.vmem [shape: f32[16,256], index: 0, kind: input, shape index: {}]   ;;  %s1327_s1 = inlined_call_operand.vmem [shape: s32[32,256], index: 1, kind: input, shape index: {}]   ;;  %s1328_s2 = inlined_call_operand.vmem [shape: f32[2,256], index: 2, kind: input, shape index: {}]   ;;  %s1329_s3 = inlined_call_operand.vmem [shape: f32[2,256], index: 3, kind: input, shape index: {}]   ;;  %s1330_s4 = inlined_call_operand.vmem [shape: f32[1,256], index: 4, kind: input, shape index: {}]   ;;  %s1331_s5 = inlined_call_operand.hbm [shape: f32[16,256], index: 5, kind: output, shape index: {}]  }
   0x1   :  { %12 = vsyncpa [#allocation6 + $0x1], 0  ;;  %s1090_s18 = smov 0   ;;  %s1092_s19 = smov 0  }
   0x2   :  { %s1094_s20 = smov 0   ;;  %s1096_s21 = smov 0  }
   0x3   :  { %s1098_s22 = smov 0   ;;  %s1100_s23 = smov 0  }
   0x4 LB: > { %s871_s24 = sadd.s32 4294967295, %s1054_s23   ;;  %s872_s25 = sadd.s32 4294967294, %s1054_s23   ;;  %s1054_s23 = sphi %s1100_s23, %s18_s23   ;;  %s1050_s22 = sphi %s1098_s22, %s1338_s22   ;;  %s1046_s21 = sphi %s1096_s21, %s1337_s21   ;;  %s1042_s20 = sphi %s1094_s20, %s1336_s20   ;;  %s1038_s19 = sphi %s1092_s19, %s1335_s19   ;;  %s1034_s18 = sphi %s1090_s18, %s1334_s18  }
   0x5   : > { %s33_s26 = sadd.s32 1, %s1050_s22  ;;  %s74_s27 = sadd.s32 1, %s1042_s20 }
   0x6   : > { %p35_p0 = scmp.ge.s32.totalorder %s33_s26, 2  ;;  %p81_p1 = scmp.ne.s32.totalorder %s1042_s20, %s1038_s19 }
   0x7   : > { %p82_p2 = scmp.eq.s32.totalorder %s1054_s23, 0  ;;  %p195_p3 = scmp.eq.s32.totalorder %s871_s24, 1 }
   0x8   : > { %s1340_s26 = smov (%p35_p0, %s33_s26), 0  ;;  %p200_p6 = scmp.ne.s32.totalorder %s1038_s19, %s1034_s18 }
   0x9   : > { %p83_p4 = por %p82_p2, %p81_p1  ;;  %p1129_p5 = por %p195_p3, %p81_p1 }
   0xa   : > { %s70_s29 = ssub.s32 %s1050_s22, %s1340_s26  ;;  %p201_p8 = scmp.eq.s32.totalorder %s872_s25, 1 }
   0xb   : > { %p72_p7 = scmp.eq.s32.totalorder %s70_s29, 0  ;;  %p875_p10 = scmp.ge.s32.totalorder %s1054_s23, 2 }
   0xc   : > { %p1140_p9 = por %p201_p8, %p200_p6 }
   0xd   : > { %s1138_s30 = scalar_select %p72_p7, %s1042_s20, %s74_s27  }
   0xe   : > { %232 = sbr.rel (%p875_p10) target bundleno = 28 (0x1c), region = 20 }
  0x15   : > { %235 = sbr.rel (!%p83_p4) target bundleno = 28 (0x1c), region = 24  ;;  %s237_s7 = sand.u32 (%p83_p4), 1, %s1042_s20  }
  0x16   : > { %s877_s8 = sshll.u32 (%p83_p4), %s1050_s22, 3  ;;  %s876_s9 = sshll.u32 (%p83_p4), %s237_s7, 5 }
  0x17   : > { %s244_s12 = scalar_lea.vmem (%p83_p4), %s1327_s1, %s877_s8  ;;  %s239_s13 = scalar_lea.vmem (%p83_p4), [#allocation4], %s876_s9 }
  0x18   : > { %v278_v0 = vld [vmem:[%s244_s12] sm:$0xff] (%p83_p4)  ;;  %v280_v1 = vld [vmem:[%s244_s12 + $0x10] sm:$0xff] (%p83_p4) }
  0x19   : > { %v282_v2 = vld [vmem:[%s244_s12 + $0x20] sm:$0xff] (%p83_p4)  ;;  %279 = vst [vmem:[%s239_s13] sm:$0xff] (%p83_p4), %v278_v0  ;;  %281 = vst [vmem:[%s239_s13 + $0x8] sm:$0xff] (%p83_p4), %v280_v1  ;;  %v284_v3 = vld [vmem:[%s244_s12 + $0x30] sm:$0xff] (%p83_p4) }
  0x1a   : > { %283 = vst [vmem:[%s239_s13 + $0x10] sm:$0xff] (%p83_p4), %v282_v2  ;;  %285 = vst [vmem:[%s239_s13 + $0x18] sm:$0xff] (%p83_p4), %v284_v3 }
  0x1c PF: > { %p878_p11 = scmp.ge.s32.totalorder %s1054_s23, 1  ;;  %p318_p12 = scmp.lt.s32.totalorder %s1054_s23, 3 }
  0x1e   : > { %p319_p13 = pnand %p878_p11, %p318_p12 }
  0x1f   : > { %s1155_s14 = sand.u32 (!%p319_p13), 1, %s1038_s19   ;;  %p396_p0 = scmp.lt.s32.totalorder (!%p319_p13), %s1046_s21, 1  ;;  %v592_v4 = vld [vmem:[%s1326_s0 + $0x8] sm:$0xff] (!%p319_p13)  ;;  %v594_v5 = vld [vmem:[%s1326_s0 + $0x18] sm:$0xff] (!%p319_p13)  ;;  %v591_v6 = vld [vmem:[%s1326_s0] sm:$0xff] (!%p319_p13) }
  0x20   : > { %322 = sbr.rel (%p319_p13) target bundleno = 317 (0x13d), region = 74  ;;  %s879_s29 = sshll.u32 (!%p319_p13), %s1155_s14, 5  ;;  %v596_v7 = vpack.c.bf16 (!%p319_p13), %v594_v5, %v592_v4  ;;  %v593_v8 = vld [vmem:[%s1326_s0 + $0x10] sm:$0xff] (!%p319_p13) }
  0x21   : > { %s327_s10 = scalar_lea.vmem (!%p319_p13), [#allocation4], %s879_s29  ;;  %v1180_v12 = vpack.c.bf16 (!%p319_p13), %v593_v8, %v591_v6  ;;  %s880_s25 = sshll.u32 (!%p319_p13), %s1155_s14, 4 }
  0x22   : > { %v1174_v9 = vld [vmem:[%s327_s10 + $0x10] sm:$0xff] (!%p319_p13)  ;;  %v1176_v10 = vld [vmem:[%s327_s10 + $0x18] sm:$0xff] (!%p319_p13)  ;;  %v1178_v11 = vld [vmem:[%s327_s10] sm:$0xff] (!%p319_p13)  ;;  %645 = vmatprep.mubr.bf16.mxu0 (!%p319_p13), %v596_v7  ;;  %v667_v13 = vunpack.c.l.bf16 (!%p319_p13), %v596_v7  ;;  %v668_v14 = vunpack.c.h.bf16 (!%p319_p13), %v596_v7  ;;  %s380_s8 = scalar_lea.vmem (!%p319_p13), [#allocation5], %s880_s25 }
  0x23   : > { %v509_v15 = vand.u32 (!%p319_p13), 15, %v1174_v9  ;;  %v510_v16 = vand.u32 (!%p319_p13), 15, %v1176_v10  ;;  %v1184_v17 = vld [vmem:[%s327_s10 + $0x8] sm:$0xff] (!%p319_p13)  ;;  %v424_v18 = vand.u32 (!%p319_p13), 15, %v1178_v11  ;;  %v521_v19 = vshra.s32 (!%p319_p13), %v1174_v9, 4  ;;  %s722_s10 = sshll.u32 (!%p319_p13), %s380_s8, 4  ;;  %s1272_s10 = int_to_ptr.vmem [resolvable:$true] %s722_s10 }
  0x24   : > { %v425_v20 = vand.u32 (!%p319_p13), 15, %v1184_v17  ;;  %v522_v21 = vshra.s32 (!%p319_p13), %v1176_v10, 4  ;;  %v436_v22 = vshra.s32 (!%p319_p13), %v1178_v11, 4  ;;  %v437_v23 = vshra.s32 (!%p319_p13), %v1184_v17, 4  ;;  %669 = vadd.xlane.f32.xlu1 (!%p319_p13), %v667_v13  ;;  %s976_s16 = scalar_lea.vmem (!%p319_p13), %s1272_s10, 256 }
  0x25   : > { %v511_v24 = vcvt.s32.f32 (!%p319_p13), %v509_v15  ;;  %v512_v25 = vcvt.s32.f32 (!%p319_p13), %v510_v16  ;;  %v426_v26 = vcvt.s32.f32 (!%p319_p13), %v424_v18  ;;  %v523_v27 = vand.u32 (!%p319_p13), 15, %v521_v19  ;;  %p977_p1 = scmp.ne.s32.totalorder (!%p319_p13), %s1272_s10, %s976_s16 }
  0x26   : > { %v427_v30 = vcvt.s32.f32 (!%p319_p13), %v425_v20  ;;  %v524_v31 = vand.u32 (!%p319_p13), 15, %v522_v21  ;;  %v438_v32 = vand.u32 (!%p319_p13), 15, %v436_v22  ;;  %v654_v33 = vunpack.c.l.bf16 (!%p319_p13), %v1180_v12 }
  0x27   : > { %s1172_s9 = scalar_select %p396_p0, %s1046_s21, 1  ;;  %v525_v37 = vcvt.s32.f32 %v523_v27  ;;  %v439_v40 = vand.u32 15, %v437_v23  ;;  %v531_v44 = vshra.s32 %v1174_v9, 8  ;;  %v532_v45 = vshra.s32 %v1176_v10, 8 }
  0x28   : > { %v526_v39 = vcvt.s32.f32 %v524_v31  ;;  %v440_v41 = vcvt.s32.f32 %v438_v32  ;;  %656 = vadd.xlane.f32.xlu0 %v654_v33  ;;  %671 = vadd.xlane.f32.xlu1 %v668_v14  ;;  %v446_v52 = vshra.s32 %v1178_v11, 8  ;;  %v447_v53 = vshra.s32 %v1184_v17, 8  ;;  %p978_p2 = pnand %p977_p1, %p1129_p5 }
  0x29   : > { %s881_s11 = sshll.u32 %s1172_s9, 1  ;;  %v441_v48 = vcvt.s32.f32 %v439_v40  ;;  %v533_v50 = vand.u32 15, %v531_v44  ;;  %v534_v51 = vand.u32 15, %v532_v45  ;;  %v541_v56 = vshra.s32 %v1174_v9, 12  ;;  %s412_s7 = scalar_lea.vmem %s1330_s4, %s1172_s9 }
  0x2a   : > { %s401_s15 = scalar_lea.vmem %s1328_s2, %s881_s11  ;;  %v542_v57 = vshra.s32 %v1176_v10, 12  ;;  %v448_v60 = vand.u32 15, %v446_v52  ;;  %v449_v61 = vand.u32 15, %v447_v53  ;;  %v456_v1 = vshra.s32 %v1178_v11, 12  ;;  %s409_s24 = scalar_lea.vmem %s1329_s3, %s881_s11 }
  0x2b   : > { %v1198_v28 = vld [vmem:[%s401_s15 + $0x1] ss:$0 sm:$0xff]  ;;  %v1200_v29 = vld [vmem:[%s401_s15] ss:$0 sm:$0xff]  ;;  %v535_v58 = vcvt.s32.f32 %v533_v50  ;;  %v536_v59 = vcvt.s32.f32 %v534_v51  ;;  %v543_v63 = vand.u32 15, %v541_v56  ;;  %v457_v8 = vshra.s32 %v1184_v17, 12  ;;  %p979_p3 = pneg %p978_p2 }
  0x2c   : > { %v517_v34 = vmul.f32 %v1198_v28, %v511_v24  ;;  %v518_v35 = vmul.f32 %v1198_v28, %v512_v25  ;;  %v432_v36 = vmul.f32 %v1200_v29, %v426_v26  ;;  %v433_v38 = vmul.f32 %v1200_v29, %v427_v30  ;;  %s893_s11 = sshll.u32 %s1046_s21, 7  ;;  %s707_s15 = scalar_lea.sflag [#allocation6], %s1155_s14 }
  0x2d   : > { %v527_v43 = vmul.f32 %v1198_v28, %v525_v37  ;;  %v528_v47 = vmul.f32 %v1198_v28, %v526_v39  ;;  %v442_v49 = vmul.f32 %v1200_v29, %v440_v41  ;;  %v443_v55 = vmul.f32 %v1200_v29, %v441_v48  ;;  %s1277_s13 = scalar_lea.hbm %s1331_s5, %s893_s11  ;;  %s1056_s21 = smov [#allocation5]  }
  0x2e   : > { %v519_v42 = vpack.c.bf16 %v518_v35, %v517_v34  ;;  %v434_v46 = vpack.c.bf16 %v433_v38, %v432_v36  ;;  %v544_v0 = vand.u32 15, %v542_v57  ;;  %v537_v2 = vmul.f32 %v1198_v28, %v535_v58  ;;  %s980_s17 = sshll.u32 %s1056_s21, 4  ;;  %s981_s17 = int_to_ptr.vmem [resolvable:$false] %s980_s17 }
  0x2f   : > { %v529_v54 = vpack.c.bf16 %v528_v47, %v527_v43  ;;  %v444_v62 = vpack.c.bf16 %v443_v55, %v442_v49  ;;  %v538_v3 = vmul.f32 %v1198_v28, %v536_v59  ;;  %v450_v4 = vcvt.s32.f32 %v448_v60  ;;  %p983_p4 = scmp.lt.s32.totalorder %s1272_s10, %s981_s17 }
  0x30   : > { %896 = vmatprep.subr.bf16.mxu0 %v519_v42  ;;  %v451_v5 = vcvt.s32.f32 %v449_v61  ;;  %v545_v6 = vcvt.s32.f32 %v543_v63  ;;  %v546_v7 = vcvt.s32.f32 %v544_v0  ;;  %v458_v13 = vand.u32 15, %v456_v1 }
  0x31   : > { %897 = vmatpush3.bf16.msra.mxu0 %v434_v46  ;;  %v539_v14 = vpack.c.bf16 %v538_v3, %v537_v2  ;;  %v452_v15 = vmul.f32 %v1200_v29, %v450_v4  ;;  %v551_v18 = vshra.s32 %v1174_v9, 16  ;;  %v459_v21 = vand.u32 15, %v457_v8 }
  0x32   : > { %898 = vmatprep.subr.bf16.mxu0 %v529_v54  ;;  %v453_v16 = vmul.f32 %v1200_v29, %v451_v5  ;;  %v547_v19 = vmul.f32 %v1198_v28, %v545_v6  ;;  %v548_v20 = vmul.f32 %v1198_v28, %v546_v7  ;;  %v460_v22 = vcvt.s32.f32 %v458_v13 }
  0x33   : > { %v552_v24 = vshra.s32 %v1176_v10, 16  ;;  %v553_v25 = vand.u32 15, %v551_v18  ;;  %v466_v26 = vshra.s32 %v1178_v11, 16  ;;  %v461_v30 = vcvt.s32.f32 %v459_v21 }
  0x34   : > { %v454_v23 = vpack.c.bf16 %v453_v16, %v452_v15  ;;  %v549_v27 = vpack.c.bf16 %v548_v20, %v547_v19  ;;  %v462_v31 = vmul.f32 %v1200_v29, %v460_v22  ;;  %v467_v32 = vshra.s32 %v1184_v17, 16 }
  0x35   : > { %899 = vmatpush3.bf16.msra.mxu0 %v444_v62  ;;  %v554_v33 = vand.u32 15, %v552_v24  ;;  %v555_v34 = vcvt.s32.f32 %v553_v25  ;;  %v468_v35 = vand.u32 15, %v466_v26  ;;  %v561_v36 = vshra.s32 %v1174_v9, 20 }
  0x36   : > { %900 = vmatprep.subr.bf16.mxu0 %v539_v14  ;;  %v463_v37 = vmul.f32 %v1200_v29, %v461_v30  ;;  %v469_v38 = vand.u32 15, %v467_v32  ;;  %v562_v39 = vshra.s32 %v1176_v10, 20  ;;  %v476_v40 = vshra.s32 %v1178_v11, 20 }
  0x37   : > { %v556_v41 = vcvt.s32.f32 %v554_v33  ;;  %v557_v42 = vmul.f32 %v1198_v28, %v555_v34  ;;  %v470_v43 = vcvt.s32.f32 %v468_v35  ;;  %v563_v44 = vand.u32 15, %v561_v36 }
  0x38   : > { %v464_v45 = vpack.c.bf16 %v463_v37, %v462_v31  ;;  %v471_v46 = vcvt.s32.f32 %v469_v38  ;;  %v564_v47 = vand.u32 15, %v562_v39  ;;  %v477_v48 = vshra.s32 %v1184_v17, 20 }
  0x39   : > { %901 = vmatpush3.bf16.msra.mxu0 %v454_v23  ;;  %v558_v49 = vmul.f32 %v1198_v28, %v556_v41  ;;  %v472_v50 = vmul.f32 %v1200_v29, %v470_v43  ;;  %v565_v51 = vcvt.s32.f32 %v563_v44  ;;  %v478_v52 = vand.u32 15, %v476_v40  ;;  %v889_v40 = vld [vmem:[%s409_s24] ss:$0 sm:$0xff] }
  0x3a   : > { %902 = vmatprep.subr.bf16.mxu0 %v549_v27  ;;  %v473_v53 = vmul.f32 %v1200_v29, %v471_v46  ;;  %v566_v54 = vcvt.s32.f32 %v564_v47  ;;  %v479_v55 = vand.u32 15, %v477_v48  ;;  %v571_v56 = vshra.s32 %v1174_v9, 24 }
  0x3b   : > { %v559_v57 = vpack.c.bf16 %v558_v49, %v557_v42  ;;  %v567_v58 = vmul.f32 %v1198_v28, %v565_v51  ;;  %v480_v59 = vcvt.s32.f32 %v478_v52  ;;  %v572_v60 = vshra.s32 %v1176_v10, 24  ;;  %v891_v51 = vld [vmem:[%s412_s7] ss:$0 sm:$0xff] }
  0x3c   : > { %v474_v61 = vpack.c.bf16 %v473_v53, %v472_v50  ;;  %v568_v62 = vmul.f32 %v1198_v28, %v566_v54  ;;  %v481_v63 = vcvt.s32.f32 %v479_v55  ;;  %v573_v0 = vand.u32 15, %v571_v56 }
  0x3d   : > { %903 = vmatpush3.bf16.msra.mxu0 %v464_v45  ;;  %v482_v1 = vmul.f32 %v1200_v29, %v480_v59  ;;  %v574_v2 = vand.u32 15, %v572_v60  ;;  %v486_v3 = vshra.s32 %v1178_v11, 24  ;;  %v487_v4 = vshra.s32 %v1184_v17, 24 }
  0x3e   : > { %904 = vmatprep.subr.bf16.mxu0 %v559_v57  ;;  %v569_v5 = vpack.c.bf16 %v568_v62, %v567_v58  ;;  %v483_v6 = vmul.f32 %v1200_v29, %v481_v63  ;;  %v575_v7 = vcvt.s32.f32 %v573_v0  ;;  %v887_v8 = vshrl.u32 %v1174_v9, 28 }
  0x3f   : > { %v576_v13 = vcvt.s32.f32 %v574_v2  ;;  %v488_v14 = vand.u32 15, %v486_v3  ;;  %v489_v15 = vand.u32 15, %v487_v4  ;;  %v888_v16 = vshrl.u32 %v1176_v10, 28 }
  0x40   : > { %v484_v18 = vpack.c.bf16 %v483_v6, %v482_v1  ;;  %v577_v19 = vmul.f32 %v1198_v28, %v575_v7  ;;  %v585_v20 = vcvt.s32.f32 %v887_v8  ;;  %v884_v21 = vshrl.u32 %v1178_v11, 28 }
  0x41   : > { %905 = vmatpush3.bf16.msra.mxu0 %v474_v61  ;;  %v578_v22 = vmul.f32 %v1198_v28, %v576_v13  ;;  %v490_v23 = vcvt.s32.f32 %v488_v14  ;;  %v491_v24 = vcvt.s32.f32 %v489_v15  ;;  %v586_v25 = vcvt.s32.f32 %v888_v16 }
  0x42   : > { %906 = vmatprep.subr.bf16.mxu0 %v569_v5  ;;  %v587_v9 = vmul.f32 %v1198_v28, %v585_v20  ;;  %v885_v26 = vshrl.u32 %v1184_v17, 28  ;;  %v500_v27 = vcvt.s32.f32 %v884_v21  ;;  %v655_v10 = vunpack.c.h.bf16 %v1180_v12 }
  0x43   : > { %v579_v30 = vpack.c.bf16 %v578_v22, %v577_v19  ;;  %v492_v31 = vmul.f32 %v1200_v29, %v490_v23  ;;  %v493_v32 = vmul.f32 %v1200_v29, %v491_v24  ;;  %v588_v11 = vmul.f32 %v1198_v28, %v586_v25  ;;  %v890_v28 = vld [vmem:[%s409_s24 + $0x1] ss:$0 sm:$0xff]  ;;  %s982_s24 = scalar_lea.vmem %s981_s17, 512 }
  0x44   : > { %v501_v33 = vcvt.s32.f32 %v885_v26  ;;  %v502_v34 = vmul.f32 %v1200_v29, %v500_v27  ;;  %658 = vadd.xlane.f32.xlu0 %v655_v10  ;;  %p984_p6 = scmp.lt.s32.totalorder %s982_s24, %s976_s16 }
  0x45   : > { %907 = vmatpush3.bf16.msra.mxu0 %v484_v18  ;;  %v494_v35 = vpack.c.bf16 %v493_v32, %v492_v31  ;;  %v589_v36 = vpack.c.bf16 %v588_v11, %v587_v9 }
  0x46   : > { %908 = vmatprep.subr.bf16.mxu0 %v579_v30  ;;  %v503_v17 = vmul.f32 %v1200_v29, %v501_v33  ;;  %p985_p7 = por %p984_p6, %p983_p4 }
  0x48   : > { %v504_v37 = vpack.c.bf16 %v503_v17, %v502_v34  ;;  %p986_p8 = pnand %p985_p7, %p979_p3 }
  0x49   : > { %909 = vmatpush3.bf16.msra.mxu0 %v494_v35 }
  0x4a   : > { %910 = vmatprep.subr.bf16.mxu0 %v589_v36 }
  0x4d   : > { %911 = vmatpush3.bf16.msra.mxu0 %v504_v37 }
  0x50   : > { %646 = vmatmul.mubr.bf16.vlgmr.msra.gmra.mrb[0].mxu0 %v1180_v12 }
  0xb1   : > { %v670_v38 = vpop.xlane.xlu1 %669 }
  0xb2   : > { %v678_v29 = vmul.f32 %v890_v28, %v670_v38 }
  0xb5   : > { %v657_v39 = vpop.xlane.xlu0 %656  ;;  %v672_v41 = vpop.xlane.xlu1 %671 }
  0xb6   : > { %v665_v43 = vmul.f32 %v889_v40, %v657_v39  ;;  %v679_v44 = vmul.f32 %v890_v28, %v672_v41 }
  0xb8   : > { %v680_v47 = vadd.f32 %v678_v29, %v665_v43 }
  0xd1   : > { %v659_v42 = vpop.xlane.xlu0 %658 }
  0xd2   : > { %v666_v45 = vmul.f32 %v889_v40, %v659_v42 }
  0xd4   : > { %v681_v48 = vadd.f32 %v679_v44, %v666_v45 }
 0x123   : > { %v912_v46 = vpop.f32.mrb[0].mxu0 }
 0x124   : > { %v913_v12 = vpop.f32.mrb[1].mxu0 }
 0x125   : > { %v914_v49 = vadd.f32 %v913_v12, %v912_v46  ;;  %v915_v50 = vpop.f32.mrb[2].mxu0 }
 0x126   : > { %v916_v52 = vpop.f32.mrb[3].mxu0 }
 0x127   : > { %v684_v53 = vsub.f32 %v914_v49, %v680_v47  ;;  %v917_v54 = vadd.f32 %v916_v52, %v915_v50 }
 0x129   : > { %v702_v55 = vadd.f32 %v891_v51, %v684_v53  ;;  %v685_v56 = vsub.f32 %v917_v54, %v681_v48 }
 0x12b   : > { %704 = vst [vmem:[%s380_s8] sm:$0xff] %v702_v55  ;;  %v703_v57 = vadd.f32 %v891_v51, %v685_v56 }
 0x12d   : > { %705 = vst [vmem:[%s380_s8 + $0x8] sm:$0xff] %v703_v57 }
 0x12e   : > { %989 = shalt.err (!%p986_p8)
}
 0x12f   : > { %s990_s25 = scalar_lea.hbm %s1277_s13, 256  ;;  %s994_s7 = scalar_lea.hbm %s1331_s5, 512 }
 0x130   : > { %p991_p11 = scmp.ne.s32.totalorder %s1277_s13, %s990_s25  ;;  %p995_p0 = scmp.lt.u32.totalorder %s1277_s13, %s1331_s5 }
 0x131   : > { %p996_p1 = scmp.lt.u32.totalorder %s994_s7, %s990_s25  ;;  %p998_p3 = scmp.lt.u32.totalorder %s990_s25, %s1277_s13 }
 0x132   : > { %p992_p12 = pnand %p991_p11, %p1129_p5 }
 0x133   : > { %p997_p2 = por %p996_p1, %p995_p0 }
 0x134   : > { %p993_p13 = pneg %p992_p12 }
 0x135   : > { %p999_p4 = por %p998_p3, %p997_p2 }
 0x137   : > { %p1000_p6 = pnand %p999_p4, %p993_p13 }
 0x139   : > { %1003 = shalt.err (!%p1000_p6)
}
 0x13a   : > { %s1057_s9 = smov 128   ;;  %s1058_s12 = smov 256  }
 0x13b   : > { %s1059_s16 = smov 8  }
 0x13c   : > { %918 = dma.vmem_to_hbm [thread:$0]  (%p1129_p5), %s1272_s10, 256, %s1277_s13, %s707_s15, %s1057_s9, %s1058_s12, %s1059_s16  }
 0x13d PF: > { %s737_s21 = sand.u32 1, %s1034_s18   ;;  %p921_p7 = pnand %p875_p10, %p1140_p9 }
 0x13e   : > { %s738_s17 = scalar_lea.sflag [#allocation6], %s737_s21 }
 0x13f   : > { %1029 = dma.done.wait (!%p921_p7), %s738_s17, 256  }
 0x140   : > { %1031 = vsyncadd (!%p921_p7), %s738_s17, 4294967040  ;;  %s18_s23 = sadd.s32 1, %s1054_s23   ;;  %s1334_s18 = smov %s1038_s19 }
 0x141   : > { %p15_p8 = scmp.ge.s32.totalorder %s18_s23, 4   ;;  %s1335_s19 = smov %s1042_s20 }
 0x142   : > { %s1336_s20 = smov %s1138_s30  ;;  %s1337_s21 = smov %s1050_s22 }
 0x143   : > { %s1338_s22 = smov %s1340_s26  ;;  %17 = sbr.rel (!%p15_p8) target bundleno = 4 (0x4), region = 138 }
 0x14a   :  { %743 = vsyncpa [#allocation6], 1 }
 0x14b   :  { %745 = vsyncpa [#allocation6 + $0x1], 1 }

// kernel: _lambda_.7
= control target key start
LH: loop header
LB: loop body
LE: loop exit
PB: predicated region body
PF: predicated region fallthrough
CT: control target
= control target key end

     0   :  { %s1260_s18 = smov 0   ;;  %s1262_s19 = smov 0   ;;  %s1551_s0 = inlined_call_operand.vmem [shape: f32[16,256], index: 0, kind: input, shape index: {}]   ;;  %s1552_s1 = inlined_call_operand.vmem [shape: s32[32,512], index: 1, kind: input, shape index: {}]   ;;  %s1553_s2 = inlined_call_operand.vmem [shape: f32[2,512], index: 2, kind: input, shape index: {}]   ;;  %s1554_s3 = inlined_call_operand.vmem [shape: f32[2,512], index: 3, kind: input, shape index: {}]   ;;  %s1555_s4 = inlined_call_operand.vmem [shape: f32[1,512], index: 4, kind: input, shape index: {}]   ;;  %s1556_s5 = inlined_call_operand.vmem [shape: f32[16,512], index: 5, kind: output, shape index: {}]  }
   0x1   :  { %s1264_s20 = smov 0   ;;  %s1266_s21 = smov 0  }
   0x2   :  { %s1268_s22 = smov 0  }
   0x3 LB: > { %s30_s23 = sadd.s32 1, %s1224_s21  ;;  %s1117_s24 = sadd.s32 4294967295, %s1228_s22   ;;  %s1228_s22 = sphi %s1268_s22, %s15_s22   ;;  %s1224_s21 = sphi %s1266_s21, %s1561_s21   ;;  %s1220_s20 = sphi %s1264_s20, %s1560_s20   ;;  %s1216_s19 = sphi %s1262_s19, %s1559_s19   ;;  %s1212_s18 = sphi %s1260_s18, %s1558_s18  }
   0x4   : > { %p32_p0 = scmp.ge.s32.totalorder %s30_s23, 2  ;;  %p78_p1 = scmp.ne.s32.totalorder %s1216_s19, %s1212_s18 }
   0x5   : > { %p79_p2 = scmp.eq.s32.totalorder %s1228_s22, 0  ;;  %p192_p4 = scmp.eq.s32.totalorder %s1117_s24, 1 }
   0x6   : > { %s1563_s23 = smov (%p32_p0, %s30_s23), 0  ;;  %s71_s26 = sadd.s32 1, %s1216_s19 }
   0x7   : > { %p80_p3 = por %p79_p2, %p78_p1  ;;  %s67_s25 = ssub.s32 %s1224_s21, %s1563_s23 }
   0x8   : > { %p69_p5 = scmp.eq.s32.totalorder %s67_s25, 0  ;;  %p1295_p6 = por %p192_p4, %p78_p1 }
   0x9   : > { %p1121_p7 = scmp.ge.s32.totalorder %s1228_s22, 2 }
   0xa   : > { %s1300_s28 = scalar_select %p69_p5, %s1216_s19, %s71_s26  }
   0xb   : > { %229 = sbr.rel (%p1121_p7) target bundleno = 26 (0x1a), region = 20 }
  0x12   : > { %232 = sbr.rel (!%p80_p3) target bundleno = 26 (0x1a), region = 24  ;;  %s234_s29 = sand.u32 (%p80_p3), 1, %s1216_s19  }
  0x13   : > { %s1148_s30 = sshll.u32 (%p80_p3), %s1224_s21, 4  ;;  %s1122_s6 = sshll.u32 (%p80_p3), %s234_s29, 6 }
  0x14   : > { %s242_s9 = scalar_lea.vmem (%p80_p3), %s1552_s1, %s1148_s30  ;;  %s236_s10 = scalar_lea.vmem (%p80_p3), [#allocation4], %s1122_s6 }
  0x15   : > { %v255_v0 = vld [vmem:[%s242_s9] sm:$0xff] (%p80_p3)  ;;  %v257_v1 = vld [vmem:[%s242_s9 + $0x8] sm:$0xff] (%p80_p3) }
  0x16   : > { %v259_v2 = vld [vmem:[%s242_s9 + $0x20] sm:$0xff] (%p80_p3)  ;;  %256 = vst [vmem:[%s236_s10] sm:$0xff] (%p80_p3), %v255_v0  ;;  %258 = vst [vmem:[%s236_s10 + $0x8] sm:$0xff] (%p80_p3), %v257_v1  ;;  %v261_v3 = vld [vmem:[%s242_s9 + $0x28] sm:$0xff] (%p80_p3) }
  0x17   : > { %260 = vst [vmem:[%s236_s10 + $0x10] sm:$0xff] (%p80_p3), %v259_v2  ;;  %v263_v4 = vld [vmem:[%s242_s9 + $0x40] sm:$0xff] (%p80_p3)  ;;  %v265_v5 = vld [vmem:[%s242_s9 + $0x48] sm:$0xff] (%p80_p3)  ;;  %262 = vst [vmem:[%s236_s10 + $0x18] sm:$0xff] (%p80_p3), %v261_v3 }
  0x18   : > { %264 = vst [vmem:[%s236_s10 + $0x20] sm:$0xff] (%p80_p3), %v263_v4  ;;  %266 = vst [vmem:[%s236_s10 + $0x28] sm:$0xff] (%p80_p3), %v265_v5  ;;  %v267_v6 = vld [vmem:[%s242_s9 + $0x60] sm:$0xff] (%p80_p3)  ;;  %v269_v7 = vld [vmem:[%s242_s9 + $0x68] sm:$0xff] (%p80_p3) }
  0x19   : > { %268 = vst [vmem:[%s236_s10 + $0x30] sm:$0xff] %v267_v6  ;;  %270 = vst [vmem:[%s236_s10 + $0x38] sm:$0xff] %v269_v7 }
  0x1a PF: > { %p1125_p8 = scmp.ge.s32.totalorder %s1228_s22, 1  ;;  %p309_p9 = scmp.lt.s32.totalorder %s1228_s22, 3 }
  0x1c   : > { %p310_p10 = pnand %p1125_p8, %p309_p9 }
  0x1d   : > { %s316_s11 = sand.u32 (!%p310_p10), 1, %s1212_s18   ;;  %s1128_s12 = sshll.u32 (!%p310_p10), %s1220_s20, 1  ;;  %v437_v8 = vlaneseq (!%p310_p10)  ;;  %v769_v9 = vld [vmem:[%s1551_s0 + $0x8] sm:$0xff] (!%p310_p10)  ;;  %v771_v10 = vld [vmem:[%s1551_s0 + $0x18] sm:$0xff] (!%p310_p10)  ;;  %v768_v11 = vld [vmem:[%s1551_s0] sm:$0xff] (!%p310_p10) }
  0x1e   : > { %313 = sbr.rel (%p310_p10) target bundleno = 340 (0x154), region = 59  ;;  %s1126_s25 = sshll.u32 (!%p310_p10), %s316_s11, 6  ;;  %v773_v12 = vpack.c.bf16 (!%p310_p10), %v771_v10, %v769_v9  ;;  %v770_v13 = vld [vmem:[%s1551_s0 + $0x10] sm:$0xff] (!%p310_p10) }
  0x1f   : > { %p391_p11 = scmp.lt.s32.totalorder (!%p310_p10), %s1128_s12, 3  ;;  %v438_v14 = vshrl.u32 (!%p310_p10), %v437_v8, 7  ;;  %s1328_s30 = scalar_lea.vmem (!%p310_p10), [#allocation4], %s1126_s25  ;;  %v1339_v18 = vpack.c.bf16 (!%p310_p10), %v770_v13, %v768_v11 }
  0x20   : > { %v1331_v15 = vld [vmem:[%s1328_s30 + $0x8] sm:$0xff] (!%p310_p10)  ;;  %v1334_v16 = vld [vmem:[%s1328_s30 + $0x18] sm:$0xff] (!%p310_p10)  ;;  %v1337_v17 = vld [vmem:[%s1328_s30] sm:$0xff] (!%p310_p10)  ;;  %838 = vmatprep.mubr.bf16.mxu0 (!%p310_p10), %v773_v12  ;;  %v871_v19 = vunpack.c.l.bf16 (!%p310_p10), %v773_v12  ;;  %v872_v20 = vunpack.c.h.bf16 (!%p310_p10), %v773_v12  ;;  %s1127_s24 = sshll.u32 (!%p310_p10), %s316_s11, 5 }
  0x21   : > { %v429_v21 = vand.u32 (!%p310_p10), 15, %v1331_v15  ;;  %v431_v22 = vand.u32 (!%p310_p10), 15, %v1334_v16  ;;  %v1343_v23 = vsub.s32 (!%p310_p10), 1, %v438_v14  ;;  %v1346_v24 = vld [vmem:[%s1328_s30 + $0x10] sm:$0xff] (!%p310_p10)  ;;  %v428_v25 = vand.u32 (!%p310_p10), 15, %v1337_v17 }
  0x22   : > { %v430_v26 = vand.u32 (!%p310_p10), 15, %v1346_v24  ;;  %v1351_v27 = vsub.s32 (!%p310_p10), 0, %v438_v14  ;;  %v456_v28 = vshra.s32 (!%p310_p10), %v1331_v15, 4  ;;  %v458_v29 = vshra.s32 (!%p310_p10), %v1334_v16, 4  ;;  %873 = vadd.xlane.f32.xlu1 (!%p310_p10), %v871_v19 }
  0x23   : > { %v433_v30 = vcvt.s32.f32 (!%p310_p10), %v429_v21  ;;  %v435_v31 = vcvt.s32.f32 (!%p310_p10), %v431_v22  ;;  %v432_v32 = vcvt.s32.f32 (!%p310_p10), %v428_v25  ;;  %v455_v33 = vshra.s32 (!%p310_p10), %v1337_v17, 4 }
  0x24   : > { %v434_v35 = vcvt.s32.f32 (!%p310_p10), %v430_v26  ;;  %v849_v36 = vunpack.c.l.bf16 (!%p310_p10), %v1339_v18  ;;  %v850_v37 = vunpack.c.h.bf16 (!%p310_p10), %v1339_v18  ;;  %v460_v40 = vand.u32 (!%p310_p10), 15, %v456_v28 }
  0x25   : > { %s1565_s12 = smov (!%p391_p11, %s1128_s12), 3  ;;  %v462_v41 = vand.u32 15, %v458_v29  ;;  %v457_v42 = vshra.s32 %v1346_v24, 4  ;;  %v459_v43 = vand.u32 15, %v455_v33  ;;  %v476_v44 = vshra.s32 %v1331_v15, 8  ;;  %s1149_s18 = sshll.u32 (%p1295_p6), %s1220_s20, 4 }
  0x26   : > { %s1129_s6 = sshll.u32 %s1565_s12, 1  ;;  %v478_v45 = vshra.s32 %v1334_v16, 8  ;;  %851 = vadd.xlane.f32.xlu0 %v849_v36  ;;  %875 = vadd.xlane.f32.xlu1 %v872_v20  ;;  %v464_v50 = vcvt.s32.f32 %v460_v40  ;;  %v475_v0 = vshra.s32 %v1337_v17, 8  ;;  %v477_v1 = vshra.s32 %v1346_v24, 8  ;;  %s411_s17 = scalar_lea.vmem %s1555_s4, %s1565_s12 }
  0x27   : > { %s1360_s9 = scalar_lea.vmem %s1553_s2, %s1129_s6  ;;  %v466_v51 = vcvt.s32.f32 %v462_v41  ;;  %v461_v52 = vand.u32 15, %v457_v42  ;;  %v463_v53 = vcvt.s32.f32 %v459_v43  ;;  %v480_v56 = vand.u32 15, %v476_v44  ;;  %s406_s14 = scalar_lea.vmem %s1554_s3, %s1129_s6 }
  0x28   : > { %v427_v34 = vld [vmem:[%s1360_s9] ss:$2 sm:$0x3]  ;;  %v482_v57 = vand.u32 15, %v478_v45  ;;  %v496_v4 = vshra.s32 %v1331_v15, 12  ;;  %v498_v5 = vshra.s32 %v1334_v16, 12  ;;  %s953_s26 = scalar_lea.vmem (%p1295_p6), %s1556_s5, %s1149_s18 }
  0x29   : > { %v1367_v38 = vrot.slane %v427_v34, %v1343_v23  ;;  %v1370_v39 = vrot.slane %v427_v34, %v1351_v27  ;;  %v465_v60 = vcvt.s32.f32 %v461_v52  ;;  %v484_v62 = vcvt.s32.f32 %v480_v56  ;;  %s373_s12 = scalar_lea.vmem [#allocation5], %s1127_s24 }
  0x2a   : > { %853 = vadd.xlane.f32.xlu0 %v850_v37  ;;  %v486_v63 = vcvt.s32.f32 %v482_v57  ;;  %v479_v8 = vand.u32 15, %v475_v0  ;;  %v481_v9 = vand.u32 15, %v477_v1  ;;  %v500_v11 = vand.u32 15, %v496_v4 }
  0x2b   : > { %v448_v46 = vmul.f32 %v1367_v38, %v433_v30  ;;  %v450_v47 = vmul.f32 %v1367_v38, %v435_v31  ;;  %v447_v48 = vmul.f32 %v1370_v39, %v432_v32  ;;  %v449_v49 = vmul.f32 %v1370_v39, %v434_v35 }
  0x2c   : > { %v468_v58 = vmul.f32 %v464_v50, %v1367_v38  ;;  %v470_v59 = vmul.f32 %v466_v51, %v1367_v38  ;;  %v467_v61 = vmul.f32 %v463_v53, %v1370_v39  ;;  %v469_v3 = vmul.f32 %v465_v60, %v1370_v39 }
  0x2d   : > { %v452_v54 = vpack.c.bf16 %v450_v47, %v448_v46  ;;  %v451_v55 = vpack.c.bf16 %v449_v49, %v447_v48  ;;  %v488_v6 = vmul.f32 %v484_v62, %v1367_v38  ;;  %v490_v7 = vmul.f32 %v486_v63, %v1367_v38 }
  0x2e   : > { %v472_v2 = vpack.c.bf16 %v470_v59, %v468_v58  ;;  %v471_v10 = vpack.c.bf16 %v469_v3, %v467_v61  ;;  %v502_v12 = vand.u32 15, %v498_v5  ;;  %v495_v13 = vshra.s32 %v1337_v17, 12 }
  0x2f   : > { %806 = vmatprep.subr.bf16.mxu0 %v452_v54  ;;  %v492_v14 = vpack.c.bf16 %v490_v7, %v488_v6  ;;  %v483_v19 = vcvt.s32.f32 %v479_v8  ;;  %v485_v20 = vcvt.s32.f32 %v481_v9  ;;  %v497_v21 = vshra.s32 %v1346_v24, 12 }
  0x30   : > { %807 = vmatpush1.bf16.msra.mxu0 %v451_v55  ;;  %v504_v22 = vcvt.s32.f32 %v500_v11  ;;  %v506_v25 = vcvt.s32.f32 %v502_v12  ;;  %v499_v26 = vand.u32 15, %v495_v13  ;;  %v516_v28 = vshra.s32 %v1331_v15, 16 }
  0x31   : > { %808 = vmatprep.subr.bf16.mxu0 %v472_v2  ;;  %v487_v29 = vmul.f32 %v483_v19, %v1370_v39  ;;  %v489_v30 = vmul.f32 %v485_v20, %v1370_v39  ;;  %v501_v31 = vand.u32 15, %v497_v21  ;;  %v518_v32 = vshra.s32 %v1334_v16, 16 }
  0x32   : > { %v508_v33 = vmul.f32 %v504_v22, %v1367_v38  ;;  %v510_v34 = vmul.f32 %v506_v25, %v1367_v38  ;;  %v503_v35 = vcvt.s32.f32 %v499_v26  ;;  %v520_v36 = vand.u32 15, %v516_v28 }
  0x33   : > { %v491_v37 = vpack.c.bf16 %v489_v30, %v487_v29  ;;  %v505_v40 = vcvt.s32.f32 %v501_v31  ;;  %v522_v41 = vand.u32 15, %v518_v32  ;;  %v515_v42 = vshra.s32 %v1337_v17, 16 }
  0x34   : > { %809 = vmatpush1.bf16.msra.mxu0 %v471_v10  ;;  %v512_v43 = vpack.c.bf16 %v510_v34, %v508_v33  ;;  %v507_v44 = vmul.f32 %v503_v35, %v1370_v39  ;;  %v524_v45 = vcvt.s32.f32 %v520_v36  ;;  %v517_v46 = vshra.s32 %v1346_v24, 16  ;;  %v1421_v34 = vld [vmem:[%s1328_s30 + $0x28] sm:$0xff] }
  0x35   : > { %810 = vmatprep.subr.bf16.mxu0 %v492_v14  ;;  %v509_v47 = vmul.f32 %v505_v40, %v1370_v39  ;;  %v526_v48 = vcvt.s32.f32 %v522_v41  ;;  %v519_v49 = vand.u32 15, %v515_v42  ;;  %v536_v50 = vshra.s32 %v1331_v15, 20  ;;  %v1425_v41 = vld [vmem:[%s1328_s30 + $0x38] sm:$0xff] }
  0x36   : > { %v528_v51 = vmul.f32 %v524_v45, %v1367_v38  ;;  %v521_v52 = vand.u32 15, %v517_v46  ;;  %v538_v53 = vshra.s32 %v1334_v16, 20  ;;  %v535_v54 = vshra.s32 %v1337_v17, 20 }
  0x37   : > { %v511_v55 = vpack.c.bf16 %v509_v47, %v507_v44  ;;  %v530_v56 = vmul.f32 %v526_v48, %v1367_v38  ;;  %v523_v57 = vcvt.s32.f32 %v519_v49  ;;  %v540_v58 = vand.u32 15, %v536_v50 }
  0x38   : > { %811 = vmatpush1.bf16.msra.mxu0 %v491_v37  ;;  %v525_v59 = vcvt.s32.f32 %v521_v52  ;;  %v542_v60 = vand.u32 15, %v538_v53  ;;  %v537_v61 = vshra.s32 %v1346_v24, 20  ;;  %v539_v62 = vand.u32 15, %v535_v54  ;;  %v1440_v53 = vld [vmem:[%s1328_s30 + $0x30] sm:$0xff] }
  0x39   : > { %812 = vmatprep.subr.bf16.mxu0 %v512_v43  ;;  %v532_v63 = vpack.c.bf16 %v530_v56, %v528_v51  ;;  %v527_v0 = vmul.f32 %v523_v57, %v1370_v39  ;;  %v544_v1 = vcvt.s32.f32 %v540_v58  ;;  %v556_v2 = vshra.s32 %v1331_v15, 24 }
  0x3a   : > { %v529_v3 = vmul.f32 %v525_v59, %v1370_v39  ;;  %v546_v4 = vcvt.s32.f32 %v542_v60  ;;  %v541_v5 = vand.u32 15, %v537_v61  ;;  %v543_v6 = vcvt.s32.f32 %v539_v62 }
  0x3b   : > { %v548_v7 = vmul.f32 %v544_v1, %v1367_v38  ;;  %v558_v8 = vshra.s32 %v1334_v16, 24  ;;  %v560_v9 = vand.u32 15, %v556_v2  ;;  %v555_v10 = vshra.s32 %v1337_v17, 24 }
  0x3c   : > { %813 = vmatpush1.bf16.msra.mxu0 %v511_v55  ;;  %v531_v11 = vpack.c.bf16 %v529_v3, %v527_v0  ;;  %v550_v12 = vmul.f32 %v546_v4, %v1367_v38  ;;  %v545_v13 = vcvt.s32.f32 %v541_v5  ;;  %v547_v14 = vmul.f32 %v543_v6, %v1370_v39 }
  0x3d   : > { %814 = vmatprep.subr.bf16.mxu0 %v532_v63  ;;  %v562_v19 = vand.u32 15, %v558_v8  ;;  %v564_v20 = vcvt.s32.f32 %v560_v9  ;;  %v557_v21 = vshra.s32 %v1346_v24, 24  ;;  %v559_v22 = vand.u32 15, %v555_v10 }
  0x3e   : > { %v552_v25 = vpack.c.bf16 %v550_v12, %v548_v7  ;;  %v549_v26 = vmul.f32 %v545_v13, %v1370_v39  ;;  %v1134_v28 = vshrl.u32 %v1331_v15, 28  ;;  %v1136_v29 = vshrl.u32 %v1334_v16, 28  ;;  %v1137_v15 = vld [vmem:[%s1360_s9 + $0x1] ss:$2 sm:$0x3] }
  0x3f   : > { %v566_v30 = vcvt.s32.f32 %v562_v19  ;;  %v568_v31 = vmul.f32 %v564_v20, %v1367_v38  ;;  %v561_v32 = vand.u32 15, %v557_v21  ;;  %v563_v33 = vcvt.s32.f32 %v559_v22 }
  0x40   : > { %815 = vmatpush1.bf16.msra.mxu0 %v531_v11  ;;  %v551_v35 = vpack.c.bf16 %v549_v26, %v547_v14  ;;  %v584_v36 = vcvt.s32.f32 %v1134_v28  ;;  %v586_v37 = vcvt.s32.f32 %v1136_v29  ;;  %v1133_v40 = vshrl.u32 %v1337_v17, 28  ;;  %v1435_v17 = vld [vmem:[%s1328_s30 + $0x20] sm:$0xff] }
  0x41   : > { %816 = vmatprep.subr.bf16.mxu0 %v552_v25  ;;  %v570_v16 = vmul.f32 %v566_v30, %v1367_v38  ;;  %v565_v42 = vcvt.s32.f32 %v561_v32  ;;  %v567_v43 = vmul.f32 %v563_v33, %v1370_v39  ;;  %v1135_v44 = vshrl.u32 %v1346_v24, 28 }
  0x42   : > { %v588_v45 = vmul.f32 %v584_v36, %v1367_v38  ;;  %v590_v46 = vmul.f32 %v586_v37, %v1367_v38  ;;  %v583_v47 = vcvt.s32.f32 %v1133_v40  ;;  %v602_v48 = vand.u32 15, %v1421_v34 }
  0x43   : > { %v572_v49 = vpack.c.bf16 %v570_v16, %v568_v31  ;;  %v569_v50 = vmul.f32 %v565_v42, %v1370_v39  ;;  %v585_v51 = vcvt.s32.f32 %v1135_v44  ;;  %v604_v52 = vand.u32 15, %v1425_v41 }
  0x44   : > { %817 = vmatpush1.bf16.msra.mxu0 %v551_v35  ;;  %v592_v54 = vpack.c.bf16 %v590_v46, %v588_v45  ;;  %v587_v24 = vmul.f32 %v583_v47, %v1370_v39  ;;  %v606_v55 = vcvt.s32.f32 %v602_v48  ;;  %v1444_v56 = vrot.slane %v1137_v15, %v1343_v23 }
  0x45   : > { %818 = vmatprep.subr.bf16.mxu0 %v572_v49  ;;  %v571_v38 = vpack.c.bf16 %v569_v50, %v567_v43  ;;  %v589_v57 = vmul.f32 %v585_v51, %v1370_v39  ;;  %v608_v58 = vcvt.s32.f32 %v604_v52  ;;  %v601_v59 = vand.u32 15, %v1435_v17 }
  0x46   : > { %v621_v60 = vmul.f32 %v1444_v56, %v606_v55  ;;  %v603_v61 = vand.u32 15, %v1440_v53  ;;  %v1451_v62 = vrot.slane %v1137_v15, %v1351_v27  ;;  %v629_v63 = vshra.s32 %v1421_v34, 4 }
  0x47   : > { %v591_v0 = vpack.c.bf16 %v589_v57, %v587_v24  ;;  %v623_v1 = vmul.f32 %v1444_v56, %v608_v58  ;;  %v605_v2 = vcvt.s32.f32 %v601_v59  ;;  %v631_v3 = vshra.s32 %v1425_v41, 4 }
  0x48   : > { %819 = vmatpush1.bf16.msra.mxu0 %v571_v38  ;;  %v607_v39 = vcvt.s32.f32 %v603_v61  ;;  %v633_v4 = vand.u32 15, %v629_v63  ;;  %v628_v5 = vshra.s32 %v1435_v17, 4  ;;  %v630_v6 = vshra.s32 %v1440_v53, 4 }
  0x49   : > { %820 = vmatprep.subr.bf16.mxu0 %v592_v54  ;;  %v625_v7 = vpack.c.bf16 %v623_v1, %v621_v60  ;;  %v620_v8 = vmul.f32 %v1451_v62, %v605_v2  ;;  %v635_v9 = vand.u32 15, %v631_v3  ;;  %v649_v10 = vshra.s32 %v1421_v34, 8 }
  0x4a   : > { %v622_v11 = vmul.f32 %v1451_v62, %v607_v39  ;;  %v637_v12 = vcvt.s32.f32 %v633_v4  ;;  %v632_v13 = vand.u32 15, %v628_v5  ;;  %v634_v14 = vand.u32 15, %v630_v6 }
  0x4b   : > { %v639_v19 = vcvt.s32.f32 %v635_v9  ;;  %v651_v20 = vshra.s32 %v1425_v41, 8  ;;  %v653_v21 = vand.u32 15, %v649_v10  ;;  %v648_v22 = vshra.s32 %v1435_v17, 8 }
  0x4c   : > { %821 = vmatpush1.bf16.msra.mxu0 %v591_v0  ;;  %v624_v25 = vpack.c.bf16 %v622_v11, %v620_v8  ;;  %v641_v26 = vmul.f32 %v637_v12, %v1444_v56  ;;  %v636_v28 = vcvt.s32.f32 %v632_v13  ;;  %v638_v29 = vcvt.s32.f32 %v634_v14 }
  0x4d   : > { %822 = vmatprep.subr.bf16.mxu0 %v625_v7  ;;  %v643_v30 = vmul.f32 %v639_v19, %v1444_v56  ;;  %v655_v31 = vand.u32 15, %v651_v20  ;;  %v657_v32 = vcvt.s32.f32 %v653_v21  ;;  %v650_v33 = vshra.s32 %v1440_v53, 8 }
  0x4e   : > { %v640_v35 = vmul.f32 %v636_v28, %v1451_v62  ;;  %v642_v36 = vmul.f32 %v638_v29, %v1451_v62  ;;  %v652_v37 = vand.u32 15, %v648_v22  ;;  %v669_v40 = vshra.s32 %v1421_v34, 12 }
  0x4f   : > { %v645_v15 = vpack.c.bf16 %v643_v30, %v641_v26  ;;  %v659_v16 = vcvt.s32.f32 %v655_v31  ;;  %v661_v42 = vmul.f32 %v657_v32, %v1444_v56  ;;  %v654_v43 = vand.u32 15, %v650_v33 }
  0x50   : > { %823 = vmatpush1.bf16.msra.mxu0 %v624_v25  ;;  %v644_v44 = vpack.c.bf16 %v642_v36, %v640_v35  ;;  %v656_v45 = vcvt.s32.f32 %v652_v37  ;;  %v671_v46 = vshra.s32 %v1425_v41, 12  ;;  %v673_v47 = vand.u32 15, %v669_v40 }
  0x51   : > { %824 = vmatprep.subr.bf16.mxu0 %v645_v15  ;;  %v663_v48 = vmul.f32 %v659_v16, %v1444_v56  ;;  %v658_v49 = vcvt.s32.f32 %v654_v43  ;;  %v668_v50 = vshra.s32 %v1435_v17, 12  ;;  %v670_v51 = vshra.s32 %v1440_v53, 12 }
  0x52   : > { %v660_v52 = vmul.f32 %v656_v45, %v1451_v62  ;;  %v675_v54 = vand.u32 15, %v671_v46  ;;  %v677_v24 = vcvt.s32.f32 %v673_v47  ;;  %v689_v55 = vshra.s32 %v1421_v34, 16 }
  0x53   : > { %v665_v38 = vpack.c.bf16 %v663_v48, %v661_v42  ;;  %v662_v57 = vmul.f32 %v658_v49, %v1451_v62  ;;  %v672_v58 = vand.u32 15, %v668_v50  ;;  %v674_v59 = vand.u32 15, %v670_v51 }
  0x54   : > { %825 = vmatpush1.bf16.msra.mxu0 %v644_v44  ;;  %v679_v60 = vcvt.s32.f32 %v675_v54  ;;  %v681_v61 = vmul.f32 %v677_v24, %v1444_v56  ;;  %v691_v63 = vshra.s32 %v1425_v41, 16  ;;  %v693_v0 = vand.u32 15, %v689_v55 }
  0x55   : > { %826 = vmatprep.subr.bf16.mxu0 %v665_v38  ;;  %v664_v1 = vpack.c.bf16 %v662_v57, %v660_v52  ;;  %v676_v2 = vcvt.s32.f32 %v672_v58  ;;  %v678_v3 = vcvt.s32.f32 %v674_v59  ;;  %v688_v39 = vshra.s32 %v1435_v17, 16 }
  0x56   : > { %v683_v4 = vmul.f32 %v679_v60, %v1444_v56  ;;  %v695_v5 = vand.u32 15, %v691_v63  ;;  %v697_v6 = vcvt.s32.f32 %v693_v0  ;;  %v690_v7 = vshra.s32 %v1440_v53, 16 }
  0x57   : > { %v680_v8 = vmul.f32 %v676_v2, %v1451_v62  ;;  %v682_v9 = vmul.f32 %v678_v3, %v1451_v62  ;;  %v692_v10 = vand.u32 15, %v688_v39  ;;  %v709_v11 = vshra.s32 %v1421_v34, 20 }
  0x58   : > { %827 = vmatpush1.bf16.msra.mxu0 %v664_v1  ;;  %v685_v12 = vpack.c.bf16 %v683_v4, %v681_v61  ;;  %v699_v13 = vcvt.s32.f32 %v695_v5  ;;  %v701_v14 = vmul.f32 %v697_v6, %v1444_v56  ;;  %v694_v19 = vand.u32 15, %v690_v7 }
  0x59   : > { %v684_v20 = vpack.c.bf16 %v682_v9, %v680_v8  ;;  %v696_v21 = vcvt.s32.f32 %v692_v10  ;;  %v711_v22 = vshra.s32 %v1425_v41, 20  ;;  %v713_v25 = vand.u32 15, %v709_v11 }
  0x5a   : > { %828 = vmatprep.subr.bf16.mxu0 %v685_v12  ;;  %v703_v26 = vmul.f32 %v699_v13, %v1444_v56  ;;  %v698_v28 = vcvt.s32.f32 %v694_v19  ;;  %v708_v29 = vshra.s32 %v1435_v17, 20  ;;  %v710_v30 = vshra.s32 %v1440_v53, 20 }
  0x5b   : > { %v700_v31 = vmul.f32 %v696_v21, %v1451_v62  ;;  %v715_v32 = vand.u32 15, %v711_v22  ;;  %v717_v33 = vcvt.s32.f32 %v713_v25  ;;  %v729_v35 = vshra.s32 %v1421_v34, 24 }
  0x5c   : > { %829 = vmatpush1.bf16.msra.mxu0 %v684_v20  ;;  %v705_v36 = vpack.c.bf16 %v703_v26, %v701_v14  ;;  %v702_v37 = vmul.f32 %v698_v28, %v1451_v62  ;;  %v712_v40 = vand.u32 15, %v708_v29  ;;  %v714_v15 = vand.u32 15, %v710_v30  ;;  %v1142_v14 = vld [vmem:[%s406_s14 + $0x1] ss:$2 sm:$0x3] }
  0x5d   : > { %v719_v16 = vcvt.s32.f32 %v715_v32  ;;  %v721_v42 = vmul.f32 %v717_v33, %v1444_v56  ;;  %v731_v43 = vshra.s32 %v1425_v41, 24  ;;  %v733_v44 = vand.u32 15, %v729_v35  ;;  %v855_v20 = vld [vmem:[%s406_s14] ss:$2 sm:$0x3] }
  0x5e   : > { %830 = vmatprep.subr.bf16.mxu0 %v705_v36  ;;  %v704_v45 = vpack.c.bf16 %v702_v37, %v700_v31  ;;  %v716_v46 = vcvt.s32.f32 %v712_v40  ;;  %v718_v47 = vcvt.s32.f32 %v714_v15  ;;  %v728_v48 = vshra.s32 %v1435_v17, 24  ;;  %v921_v37 = vld [vmem:[%s411_s17] sm:$0x3] }
  0x5f   : > { %v723_v49 = vmul.f32 %v719_v16, %v1444_v56  ;;  %v735_v50 = vand.u32 15, %v731_v43  ;;  %v737_v51 = vcvt.s32.f32 %v733_v44  ;;  %v730_v52 = vshra.s32 %v1440_v53, 24 }
  0x60   : > { %831 = vmatpush1.bf16.msra.mxu0 %v704_v45  ;;  %v720_v54 = vmul.f32 %v716_v46, %v1451_v62  ;;  %v722_v24 = vmul.f32 %v718_v47, %v1451_v62  ;;  %v732_v55 = vand.u32 15, %v728_v48  ;;  %v1139_v38 = vshrl.u32 %v1421_v34, 28 }
  0x61   : > { %v725_v57 = vpack.c.bf16 %v723_v49, %v721_v42  ;;  %v739_v58 = vcvt.s32.f32 %v735_v50  ;;  %v741_v59 = vmul.f32 %v737_v51, %v1444_v56  ;;  %v734_v60 = vand.u32 15, %v730_v52 }
  0x62   : > { %v724_v61 = vpack.c.bf16 %v722_v24, %v720_v54  ;;  %v736_v63 = vcvt.s32.f32 %v732_v55  ;;  %v1141_v0 = vshrl.u32 %v1425_v41, 28  ;;  %v757_v1 = vcvt.s32.f32 %v1139_v38 }
  0x63   : > { %832 = vmatprep.subr.bf16.mxu0 %v725_v57  ;;  %v743_v2 = vmul.f32 %v739_v58, %v1444_v56  ;;  %v738_v3 = vcvt.s32.f32 %v734_v60  ;;  %v1138_v39 = vshrl.u32 %v1435_v17, 28  ;;  %v1140_v4 = vshrl.u32 %v1440_v53, 28 }
  0x64   : > { %833 = vmatpush1.bf16.msra.mxu0 %v724_v61  ;;  %v740_v34 = vmul.f32 %v736_v63, %v1451_v62  ;;  %v759_v5 = vcvt.s32.f32 %v1141_v0  ;;  %v761_v6 = vmul.f32 %v757_v1, %v1444_v56  ;;  %v883_v21 = vrot.slane %v1142_v14, %v1351_v27 }
  0x65   : > { %v745_v7 = vpack.c.bf16 %v743_v2, %v741_v59  ;;  %v742_v8 = vmul.f32 %v738_v3, %v1451_v62  ;;  %v756_v41 = vcvt.s32.f32 %v1138_v39  ;;  %v758_v9 = vcvt.s32.f32 %v1140_v4 }
  0x66   : > { %v763_v10 = vmul.f32 %v759_v5, %v1444_v56  ;;  %v887_v22 = vrot.slane %v1142_v14, %v1343_v23  ;;  %v864_v25 = vrot.slane %v855_v20, %v1343_v23  ;;  %v926_v15 = vrot.slane %v921_v37, %v1351_v27 }
  0x67   : > { %834 = vmatprep.subr.bf16.mxu0 %v745_v7  ;;  %v744_v11 = vpack.c.bf16 %v742_v8, %v740_v34  ;;  %v760_v17 = vmul.f32 %v756_v41, %v1451_v62  ;;  %v762_v53 = vmul.f32 %v758_v9, %v1451_v62  ;;  %v860_v62 = vrot.slane %v855_v20, %v1351_v27 }
  0x68   : > { %v765_v12 = vpack.c.bf16 %v763_v10, %v761_v6  ;;  %v930_v44 = vrot.slane %v921_v37, %v1343_v23 }
  0x69   : > { %835 = vmatpush1.bf16.msra.mxu0 %v744_v11  ;;  %v764_v13 = vpack.c.bf16 %v762_v53, %v760_v17 }
  0x6a   : > { %836 = vmatprep.subr.bf16.mxu0 %v765_v12 }
  0x6d   : > { %837 = vmatpush1.bf16.msra.mxu0 %v764_v13 }
  0x70   : > { %839 = vmatmul.mubr.bf16.vlgmr.msra.gmra.mrb[0].mxu0 %v1339_v18 }
  0xaf   : > { %v874_v56 = vpop.xlane.xlu1 %873 }
  0xb0   : > { %v890_v28 = vmul.f32 %v883_v21, %v874_v56  ;;  %v891_v32 = vmul.f32 %v887_v22, %v874_v56 }
  0xb3   : > { %v852_v19 = vpop.xlane.xlu0 %851  ;;  %v876_v26 = vpop.xlane.xlu1 %875 }
  0xb4   : > { %v867_v29 = vmul.f32 %v860_v62, %v852_v19  ;;  %v892_v30 = vmul.f32 %v883_v21, %v876_v26  ;;  %v868_v33 = vmul.f32 %v864_v25, %v852_v19  ;;  %v893_v35 = vmul.f32 %v887_v22, %v876_v26 }
  0xb6   : > { %v894_v40 = vadd.f32 %v890_v28, %v867_v29  ;;  %v895_v43 = vadd.f32 %v891_v32, %v868_v33 }
  0xb7   : > { %v854_v18 = vpop.xlane.xlu0 %853 }
  0xb8   : > { %v869_v31 = vmul.f32 %v860_v62, %v854_v18  ;;  %v870_v36 = vmul.f32 %v864_v25, %v854_v18 }
  0xba   : > { %v896_v16 = vadd.f32 %v892_v30, %v869_v31  ;;  %v897_v45 = vadd.f32 %v893_v35, %v870_v36 }
 0x143   : > { %v840_v42 = vpop.f32.mrb[0].mxu0 }
 0x144   : > { %v902_v46 = vsub.f32 %v840_v42, %v894_v40  ;;  %v842_v47 = vpop.f32.mrb[1].mxu0 }
 0x145   : > { %v903_v48 = vsub.f32 %v842_v47, %v895_v43  ;;  %v844_v49 = vpop.f32.mrb[2].mxu0  ;;  %947 = sbr.rel (!%p1295_p6) target bundleno = 340 (0x154), region = 75 }
 0x146   : > { %v933_v50 = vadd.f32 %v926_v15, %v902_v46  ;;  %v904_v51 = vsub.f32 %v844_v49, %v896_v16  ;;  %v846_v52 = vpop.f32.mrb[3].mxu0 }
 0x147   : > { %v934_v54 = vadd.f32 %v930_v44, %v903_v48  ;;  %v905_v24 = vsub.f32 %v846_v52, %v897_v45 }
 0x148   : > { %937 = vst [vmem:[%s373_s12] sm:$0xff] %v933_v50  ;;  %v935_v55 = vadd.f32 %v926_v15, %v904_v51 }
 0x149   : > { %938 = vst [vmem:[%s373_s12 + $0x8] sm:$0xff] %v934_v54  ;;  %v936_v27 = vadd.f32 %v930_v44, %v905_v24 }
 0x14a   : > { %939 = vst [vmem:[%s373_s12 + $0x10] sm:$0xff] %v935_v55 }
 0x14b   : > { %940 = vst [vmem:[%s373_s12 + $0x18] sm:$0xff] %v936_v27 }
 0x14f   : > { %v966_v23 = vld [vmem:[%s373_s12] sm:$0xff] }
 0x150   : > { %v968_v38 = vld [vmem:[%s373_s12 + $0x8] sm:$0xff]  ;;  %967 = vst [vmem:[%s953_s26] sm:$0xff] %v966_v23 }
 0x151   : > { %v970_v57 = vld [vmem:[%s373_s12 + $0x10] sm:$0xff]  ;;  %969 = vst [vmem:[%s953_s26 + $0x8] sm:$0xff] %v968_v38 }
 0x152   : > { %v972_v58 = vld [vmem:[%s373_s12 + $0x18] sm:$0xff]  ;;  %971 = vst [vmem:[%s953_s26 + $0x20] sm:$0xff] %v970_v57 }
 0x153   : > { %973 = vst [vmem:[%s953_s26 + $0x28] sm:$0xff] %v972_v58 }
 0x154 PF: > { %s15_s22 = sadd.s32 1, %s1228_s22   ;;  %s1558_s18 = smov %s1216_s19 }
 0x155   : > { %p12_p12 = scmp.ge.s32.totalorder %s15_s22, 4   ;;  %s1559_s19 = smov %s1300_s28 }
 0x156   : > { %s1560_s20 = smov %s1224_s21  ;;  %s1561_s21 = smov %s1563_s23 }
 0x157   :  { %14 = sbr.rel (!%p12_p12) target bundleno = 3 (0x3), region = 143 }

</bundles_post_ra>
